<compile_context>
chip_gen: v7x
topology: tpu7x:2x2x1
jax: 0.10.0
libtpu: 0.0.40
codegen_flags: <defaults>
</compile_context>

<pallas_src>
import functools

import jax
import jax.numpy as jnp
from jax.experimental import pallas as pl
from jax.experimental.pallas import tpu as pltpu

# ----------------------------- hyper-params (small, consistent w/ module) ---
VOCAB = 40
EMB = 32          # module hardcodes 300; scaled down for the synthetic kernel
HID = 32          # args.hidden_size
HID2 = HID // 2   # module does hidden_size / 2
NUM_LABELS = 5
NUM_LAYERS = 2
BATCH = 2
SEQ = 8

VMEM_SPEC = pl.BlockSpec(memory_space=pltpu.MemorySpace.VMEM)
SMEM_SPEC = pl.BlockSpec(memory_space=pltpu.MemorySpace.SMEM)


# ----------------------------- fused model kernel ---------------------------
def _textrnn_att_kernel(ids_ref, labels_ref, emb_ref,
                        wihF0_ref, wihR0_ref, b0_ref,
                        wi0_ref, wf0_ref, wg0_ref, wo0_ref,
                        wihF1_ref, wihR1_ref, b1_ref,
                        wi1_ref, wf1_ref, wg1_ref, wo1_ref,
                        attw_ref, fc1w_ref, fc1b_ref, fcw_ref, fcb_ref,
                        logits_ref, loss_ref,
                        h0_sc, h1_sc):
    # ids: (B, T) int32 SMEM        labels: (B,) int32 SMEM
    # emb: (V, E) VMEM              wihF*/wihR*: (Din, 8H)   b*: (1, 8H)
    # wi/wf/wg/wo: (2H, 2H) per-gate block-diagonal recurrent weights
    # attw: (1, 2H)  fc1w: (2H, H2)  fcw: (H2, C)
    # h0_sc: (T*B, 2H) flat, time-aligned layer-0 outputs (MXU LHS for layer 1)
    # h1_sc: (T, B, 2H) layer-1 outputs (time-softmax consumer)
    TB, H2 = h0_sc.shape
    T, B, _ = h1_sc.shape
    Hn = H2 // 2
    V = emb_ref.shape[0]

    # ---- fused embedding lookup: one-hot(ids) @ table, time-major rows -----
    lane_v = jax.lax.broadcasted_iota(jnp.int32, (1, V), 1)
    rows = []
    for t in range(T):
        for b in range(B):
            rows.append((lane_v == ids_ref[b, t]).astype(jnp.float32))
    onehot = jnp.concatenate(rows, axis=0)                         # (T*B, V)
    x0 = jnp.dot(onehot, emb_ref[...], preferred_element_type=jnp.float32)

    def run_layer(x_in, wihF_ref, wihR_ref, b_ref,
                  wi_ref, wf_ref, wg_ref, wo_ref, store_h):
        # Hoisted input projections (off the recurrent dependence chain).
        # Column layout: 4 gate groups [i|f|g|o], each 2H wide with the
        # forward half at lanes [0:H) and the reverse half at lanes [H:2H).
        gxF = jnp.dot(x_in, wihF_ref[...],
                      preferred_element_type=jnp.float32) + b_ref[...]
        gxR = jnp.dot(x_in, wihR_ref[...], preferred_element_type=jnp.float32)
        gF = [gxF[:, k * H2:(k + 1) * H2] for k in range(4)]       # (T*B, 2H)
        gR = [gxR[:, k * H2:(k + 1) * H2] for k in range(4)]
        wi = wi_ref[...]
        wf = wf_ref[...]
        wg = wg_ref[...]
        wo = wo_ref[...]
        h = jnp.zeros((B, H2), jnp.float32)
        c = jnp.zeros((B, H2), jnp.float32)
        for t in range(T):                        # fully unrolled (T static)
            tr = T - 1 - t
            rt = slice(t * B, (t + 1) * B)        # forward reads time t
            rr = slice(tr * B, (tr + 1) * B)      # reverse reads time T-1-t
            # Block-diagonal recurrent matmuls: every gate output lands at
            # lanes [0:2H), perfectly aligned with h/c -> no lane rotations
            # on the serial chain.  gx addends are pure row slices (off-chain).
            gi = gF[0][rt] + gR[0][rr] + jnp.dot(
                h, wi, preferred_element_type=jnp.float32)
            gf = gF[1][rt] + gR[1][rr] + jnp.dot(
                h, wf, preferred_element_type=jnp.float32)
            gg = gF[2][rt] + gR[2][rr] + jnp.dot(
                h, wg, preferred_element_type=jnp.float32)
            go = gF[3][rt] + gR[3][rr] + jnp.dot(
                h, wo, preferred_element_type=jnp.float32)
            c = jax.nn.sigmoid(gf) * c + jax.nn.sigmoid(gi) * jnp.tanh(gg)
            h = jax.nn.sigmoid(go) * jnp.tanh(c)
            store_h(t, tr, h)                     # off-chain stores

    # ---- layer 0: flat, time-aligned (T*B, 2H) scratch ----------------------
    def store_l0(t, tr, h):
        h0_sc[t * B:(t + 1) * B, 0:Hn] = h[:, 0:Hn]       # fwd half @ time t
        h0_sc[tr * B:(tr + 1) * B, Hn:H2] = h[:, Hn:H2]   # rev half @ time tr

    run_layer(x0, wihF0_ref, wihR0_ref, b0_ref,
              wi0_ref, wf0_ref, wg0_ref, wo0_ref, store_l0)

    # ---- layer 1: (T, B, 2H) scratch feeding the time-softmax ---------------
    def store_l1(t, tr, h):
        h1_sc[t, :, 0:Hn] = h[:, 0:Hn]
        h1_sc[tr, :, Hn:H2] = h[:, Hn:H2]

    run_layer(h0_sc[...], wihF1_ref, wihR1_ref, b1_ref,
              wi1_ref, wf1_ref, wg1_ref, wo1_ref, store_l1)

    # ---- attention over time + classifier -----------------------------------
    Hseq = h1_sc[...]                                       # (T, B, 2H)
    w = attw_ref[...]                                       # (1, 2H)
    scores = jnp.sum(jnp.tanh(Hseq) * w[None, :, :], axis=-1, keepdims=True)
    smax = jnp.max(scores, axis=0, keepdims=True)
    e = jnp.exp(scores - smax)
    alpha = e / jnp.sum(e, axis=0, keepdims=True)           # softmax over T
    ctx = jnp.maximum(jnp.sum(Hseq * alpha, axis=0), 0.0)   # (B, 2H), relu
    h1 = jnp.dot(ctx, fc1w_ref[...],
                 preferred_element_type=jnp.float32) + fc1b_ref[...]
    logits = jnp.dot(h1, fcw_ref[...],
                     preferred_element_type=jnp.float32) + fcb_ref[...]
    logits_ref[...] = logits

    # ---- mean cross-entropy (PyTorch CrossEntropyLoss default reduction) ----
    C = logits.shape[1]
    lmax = jnp.max(logits, axis=1, keepdims=True)
    lse = jnp.log(jnp.sum(jnp.exp(logits - lmax), axis=1, keepdims=True)) + lmax
    logp = logits - lse
    lane_c = jax.lax.broadcasted_iota(jnp.int32, (1, C), 1)
    total = jnp.float32(0.0)
    for b in range(B):                                      # labels from SMEM
        total += -jnp.sum(jnp.where(lane_c == labels_ref[b],
                                    logp[b:b + 1, :], 0.0))
    loss_ref[...] = jnp.reshape(total / B, (1, 1))


# ----------------------------- parameter layout prep (one-time, at init) ----
def _prep_layer(wih_f, whh_f, b_f, wih_r, whh_r, b_r):
    """Build kernel-layout weights for one bidirectional layer.

    Gate order [i, f, g, o] (PyTorch layout).  Per gate k:
      * wihF cols [k*2H, k*2H+H)   = fwd input weights (rev half zero)
      * wihR cols [k*2H+H, k*2H+2H)= rev input weights (fwd half zero)
      * bias combines both halves
      * whh_bd[k] = block_diag(whh_fwd_gate, whh_rev_gate)  (2H, 2H)
    """
    H = HID
    din = wih_f.shape[0]
    zcol = jnp.zeros((din, H), jnp.float32)
    zhh = jnp.zeros((H, H), jnp.float32)
    wihF_blocks, wihR_blocks, b_blocks, whh_bd = [], [], [], []
    for k in range(4):
        col = slice(k * H, (k + 1) * H)
        wihF_blocks += [wih_f[:, col], zcol]
        wihR_blocks += [zcol, wih_r[:, col]]
        b_blocks += [b_f[col], b_r[col]]
        top = jnp.concatenate([whh_f[:, col], zhh], axis=1)
        bot = jnp.concatenate([zhh, whh_r[:, col]], axis=1)
        whh_bd.append(jnp.concatenate([top, bot], axis=0))
    wihF = jnp.concatenate(wihF_blocks, axis=1)              # (din, 8H)
    wihR = jnp.concatenate(wihR_blocks, axis=1)              # (din, 8H)
    bias = jnp.concatenate(b_blocks).reshape(1, 8 * H)
    return wihF, wihR, bias, tuple(whh_bd)


def prepare_kernel_params(params):
    layers = []
    for layer in range(NUM_LAYERS):
        (wih_f, whh_f, b_f), (wih_r, whh_r, b_r) = params["lstm"][layer]
        layers.append(_prep_layer(wih_f, whh_f, b_f, wih_r, whh_r, b_r))
    return {
        "embedding": params["embedding"],
        "layers": layers,
        "att_w": params["w"].reshape(1, 2 * HID),
        "fc1_w": params["fc1_w"],
        "fc1_b": params["fc1_b"].reshape(1, -1),
        "fc_w": params["fc_w"],
        "fc_b": params["fc_b"].reshape(1, -1),
    }


# ----------------------------- parameters ------------------------------------
def init_params(key):
    ks = jax.random.split(key, 32)
    i = iter(range(32))
    p = {}
    p["embedding"] = jax.random.normal(ks[next(i)], (VOCAB, EMB), jnp.float32) * 0.1
    p["lstm"] = []
    for layer in range(NUM_LAYERS):
        din = EMB if layer == 0 else 2 * HID
        layer_p = []
        for _direction in range(2):                 # forward, reverse
            wih_t = jax.random.normal(ks[next(i)], (din, 4 * HID), jnp.float32) * 0.1
            whh_t = jax.random.normal(ks[next(i)], (HID, 4 * HID), jnp.float32) * 0.1
            b = jax.random.normal(ks[next(i)], (4 * HID,), jnp.float32) * 0.1
            layer_p.append((wih_t, whh_t, b))
        p["lstm"].append(layer_p)
    # nn.Parameter(torch.zeros(hidden*2)) -> small nonzero so attention is
    # non-degenerate while staying deterministic.
    p["w"] = jax.random.normal(ks[next(i)], (2 * HID,), jnp.float32) * 0.1
    p["fc1_w"] = jax.random.normal(ks[next(i)], (2 * HID, HID2), jnp.float32) * 0.1
    p["fc1_b"] = jax.random.normal(ks[next(i)], (HID2,), jnp.float32) * 0.1
    p["fc_w"] = jax.random.normal(ks[next(i)], (HID2, NUM_LABELS), jnp.float32) * 0.1
    p["fc_b"] = jax.random.normal(ks[next(i)], (NUM_LABELS,), jnp.float32) * 0.1
    return p


# ----------------------------- model forward ---------------------------------
@functools.partial(jax.jit, static_argnames=("mode",))
def textrnn_att_forward(kp, input_ids, attention_mask, label_ids, mode="test"):
    del attention_mask  # unused in the original module's forward
    B, T = input_ids.shape
    (wihF0, wihR0, b0, whh0), (wihF1, wihR1, b1, whh1) = kp["layers"]
    args = (input_ids.astype(jnp.int32), label_ids.astype(jnp.int32),
            kp["embedding"],
            wihF0, wihR0, b0, *whh0,
            wihF1, wihR1, b1, *whh1,
            kp["att_w"], kp["fc1_w"], kp["fc1_b"], kp["fc_w"], kp["fc_b"])

    logits, loss = pl.pallas_call(
        _textrnn_att_kernel,
        out_shape=(jax.ShapeDtypeStruct((B, NUM_LABELS), jnp.float32),
                   jax.ShapeDtypeStruct((1, 1), jnp.float32)),
        in_specs=[SMEM_SPEC, SMEM_SPEC] + [VMEM_SPEC] * (len(args) - 2),
        out_specs=(VMEM_SPEC, VMEM_SPEC),
        scratch_shapes=[pltpu.VMEM((T * B, 2 * HID), jnp.float32),
                        pltpu.VMEM((T, B, 2 * HID), jnp.float32)],
    )(*args)

    loss = loss[0, 0]
    if mode == "train":
        return loss
    elif mode == "test_topk":
        return loss, logits, label_ids
    else:
        return loss, jnp.argmax(logits, axis=-1), label_ids


# ----------------------------- pure-JAX reference (sanity check) -------------
def _ref_lstm_dir(x, wih_t, whh_t, b, reverse):
    B, T, _ = x.shape
    Hn = whh_t.shape[0]
    xs = jnp.transpose(x, (1, 0, 2))
    if reverse:
        xs = xs[::-1]

    def step(carry, xt):
        h, c = carry
        gates = xt @ wih_t + h @ whh_t + b
        i = jax.nn.sigmoid(gates[:, :Hn])
        f = jax.nn.sigmoid(gates[:, Hn:2 * Hn])
        g = jnp.tanh(gates[:, 2 * Hn:3 * Hn])
        o = jax.nn.sigmoid(gates[:, 3 * Hn:])
        c = f * c + i * g
        h = o * jnp.tanh(c)
        return (h, c), h

    (_, _), hs = jax.lax.scan(step, (jnp.zeros((B, Hn)), jnp.zeros((B, Hn))), xs)
    if reverse:
        hs = hs[::-1]
    return jnp.transpose(hs, (1, 0, 2))


def ref_forward(params, input_ids, label_ids):
    H = params["embedding"][input_ids]
    for layer in range(NUM_LAYERS):
        (wih_f, whh_f, b_f), (wih_r, whh_r, b_r) = params["lstm"][layer]
        fwd = _ref_lstm_dir(H, wih_f, whh_f, b_f, False)
        bwd = _ref_lstm_dir(H, wih_r, whh_r, b_r, True)
        H = jnp.concatenate([fwd, bwd], axis=-1)
    M = jnp.tanh(H)
    alpha = jax.nn.softmax(jnp.einsum("btd,d->bt", M, params["w"]), axis=1)
    out = jnp.maximum(jnp.sum(H * alpha[:, :, None], axis=1), 0.0)
    h1 = out @ params["fc1_w"] + params["fc1_b"]
    logits = h1 @ params["fc_w"] + params["fc_b"]
    logp = jax.nn.log_softmax(logits, axis=-1)
    loss = -jnp.mean(logp[jnp.arange(logits.shape[0]), label_ids])
    return loss, logits


# ----------------------------- main -------------------------------------------
if __name__ == "__main__":
    key = jax.random.PRNGKey(0)
    k_param, k_ids, k_lab = jax.random.split(key, 3)

    params = init_params(k_param)
    kp = prepare_kernel_params(params)          # one-time weight layout prep
    input_ids = jax.random.randint(k_ids, (BATCH, SEQ), 0, VOCAB, dtype=jnp.int32)
    attention_mask = jnp.ones((BATCH, SEQ), jnp.int32)
    label_ids = jax.random.randint(k_lab, (BATCH,), 0, NUM_LABELS, dtype=jnp.int32)

    loss, preds, labels = textrnn_att_forward(kp, input_ids, attention_mask,
                                              label_ids, mode="test")
    jax.block_until_ready((loss, preds, labels))

    # sanity check against a pure-JAX reference
    loss_kernel, logits_kernel, _ = textrnn_att_forward(
        kp, input_ids, attention_mask, label_ids, mode="test_topk")
    loss_ref, logits_ref = ref_forward(params, input_ids, label_ids)
    assert jnp.allclose(logits_kernel, logits_ref, atol=2e-4, rtol=2e-4)
    assert jnp.allclose(loss_kernel, loss_ref, atol=2e-4, rtol=2e-4)

    print("KERNEL_OK")
</pallas_src>

<mosaic_0001>
module attributes {stable_mosaic.version = 11 : i64} {
  func.func @_textrnn_att_kernel(%arg0: memref<2x8xi32, #tpu.memory_space<smem>>, %arg1: memref<2xi32, #tpu.memory_space<smem>>, %arg2: memref<40x32xf32, #tpu.memory_space<vmem>>, %arg3: memref<32x256xf32, #tpu.memory_space<vmem>>, %arg4: memref<32x256xf32, #tpu.memory_space<vmem>>, %arg5: memref<1x256xf32, #tpu.memory_space<vmem>>, %arg6: memref<64x64xf32, #tpu.memory_space<vmem>>, %arg7: memref<64x64xf32, #tpu.memory_space<vmem>>, %arg8: memref<64x64xf32, #tpu.memory_space<vmem>>, %arg9: memref<64x64xf32, #tpu.memory_space<vmem>>, %arg10: memref<64x256xf32, #tpu.memory_space<vmem>>, %arg11: memref<64x256xf32, #tpu.memory_space<vmem>>, %arg12: memref<1x256xf32, #tpu.memory_space<vmem>>, %arg13: memref<64x64xf32, #tpu.memory_space<vmem>>, %arg14: memref<64x64xf32, #tpu.memory_space<vmem>>, %arg15: memref<64x64xf32, #tpu.memory_space<vmem>>, %arg16: memref<64x64xf32, #tpu.memory_space<vmem>>, %arg17: memref<1x64xf32, #tpu.memory_space<vmem>>, %arg18: memref<64x16xf32, #tpu.memory_space<vmem>>, %arg19: memref<1x16xf32, #tpu.memory_space<vmem>>, %arg20: memref<16x5xf32, #tpu.memory_space<vmem>>, %arg21: memref<1x5xf32, #tpu.memory_space<vmem>>, %arg22: memref<2x5xf32, #tpu.memory_space<vmem>>, %arg23: memref<1x1xf32, #tpu.memory_space<vmem>>, %arg24: memref<16x64xf32, #tpu.memory_space<vmem>>, %arg25: memref<8x2x64xf32, #tpu.memory_space<vmem>>) attributes {dimension_semantics = [], scalar_prefetch = 0 : i64, scratch_operands = 2 : i64, tpu.core_type = #tpu.core_type<tc>} {
    %0 = tpu.iota {dimensions = array<i32: 1>} : vector<1x40xi32>
    %c0 = arith.constant 0 : index
    %c0_0 = arith.constant 0 : index
    %1 = memref.load %arg0[%c0, %c0_0] : memref<2x8xi32, #tpu.memory_space<smem>>
    %2 = vector.broadcast %1 : i32 to vector<1x40xi32>
    %3 = arith.cmpi eq, %0, %2 : vector<1x40xi32>
    %4 = arith.extui %3 : vector<1x40xi1> to vector<1x40xi32>
    %5 = arith.sitofp %4 : vector<1x40xi32> to vector<1x40xf32>
    %c1 = arith.constant 1 : index
    %c0_1 = arith.constant 0 : index
    %6 = memref.load %arg0[%c1, %c0_1] : memref<2x8xi32, #tpu.memory_space<smem>>
    %7 = vector.broadcast %6 : i32 to vector<1x40xi32>
    %8 = arith.cmpi eq, %0, %7 : vector<1x40xi32>
    %9 = arith.extui %8 : vector<1x40xi1> to vector<1x40xi32>
    %10 = arith.sitofp %9 : vector<1x40xi32> to vector<1x40xf32>
    %c0_2 = arith.constant 0 : index
    %c1_3 = arith.constant 1 : index
    %11 = memref.load %arg0[%c0_2, %c1_3] : memref<2x8xi32, #tpu.memory_space<smem>>
    %12 = vector.broadcast %11 : i32 to vector<1x40xi32>
    %13 = arith.cmpi eq, %0, %12 : vector<1x40xi32>
    %14 = arith.extui %13 : vector<1x40xi1> to vector<1x40xi32>
    %15 = arith.sitofp %14 : vector<1x40xi32> to vector<1x40xf32>
    %c1_4 = arith.constant 1 : index
    %c1_5 = arith.constant 1 : index
    %16 = memref.load %arg0[%c1_4, %c1_5] : memref<2x8xi32, #tpu.memory_space<smem>>
    %17 = vector.broadcast %16 : i32 to vector<1x40xi32>
    %18 = arith.cmpi eq, %0, %17 : vector<1x40xi32>
    %19 = arith.extui %18 : vector<1x40xi1> to vector<1x40xi32>
    %20 = arith.sitofp %19 : vector<1x40xi32> to vector<1x40xf32>
    %c0_6 = arith.constant 0 : index
    %c2 = arith.constant 2 : index
    %21 = memref.load %arg0[%c0_6, %c2] : memref<2x8xi32, #tpu.memory_space<smem>>
    %22 = vector.broadcast %21 : i32 to vector<1x40xi32>
    %23 = arith.cmpi eq, %0, %22 : vector<1x40xi32>
    %24 = arith.extui %23 : vector<1x40xi1> to vector<1x40xi32>
    %25 = arith.sitofp %24 : vector<1x40xi32> to vector<1x40xf32>
    %c1_7 = arith.constant 1 : index
    %c2_8 = arith.constant 2 : index
    %26 = memref.load %arg0[%c1_7, %c2_8] : memref<2x8xi32, #tpu.memory_space<smem>>
    %27 = vector.broadcast %26 : i32 to vector<1x40xi32>
    %28 = arith.cmpi eq, %0, %27 : vector<1x40xi32>
    %29 = arith.extui %28 : vector<1x40xi1> to vector<1x40xi32>
    %30 = arith.sitofp %29 : vector<1x40xi32> to vector<1x40xf32>
    %c0_9 = arith.constant 0 : index
    %c3 = arith.constant 3 : index
    %31 = memref.load %arg0[%c0_9, %c3] : memref<2x8xi32, #tpu.memory_space<smem>>
    %32 = vector.broadcast %31 : i32 to vector<1x40xi32>
    %33 = arith.cmpi eq, %0, %32 : vector<1x40xi32>
    %34 = arith.extui %33 : vector<1x40xi1> to vector<1x40xi32>
    %35 = arith.sitofp %34 : vector<1x40xi32> to vector<1x40xf32>
    %c1_10 = arith.constant 1 : index
    %c3_11 = arith.constant 3 : index
    %36 = memref.load %arg0[%c1_10, %c3_11] : memref<2x8xi32, #tpu.memory_space<smem>>
    %37 = vector.broadcast %36 : i32 to vector<1x40xi32>
    %38 = arith.cmpi eq, %0, %37 : vector<1x40xi32>
    %39 = arith.extui %38 : vector<1x40xi1> to vector<1x40xi32>
    %40 = arith.sitofp %39 : vector<1x40xi32> to vector<1x40xf32>
    %c0_12 = arith.constant 0 : index
    %c4 = arith.constant 4 : index
    %41 = memref.load %arg0[%c0_12, %c4] : memref<2x8xi32, #tpu.memory_space<smem>>
    %42 = vector.broadcast %41 : i32 to vector<1x40xi32>
    %43 = arith.cmpi eq, %0, %42 : vector<1x40xi32>
    %44 = arith.extui %43 : vector<1x40xi1> to vector<1x40xi32>
    %45 = arith.sitofp %44 : vector<1x40xi32> to vector<1x40xf32>
    %c1_13 = arith.constant 1 : index
    %c4_14 = arith.constant 4 : index
    %46 = memref.load %arg0[%c1_13, %c4_14] : memref<2x8xi32, #tpu.memory_space<smem>>
    %47 = vector.broadcast %46 : i32 to vector<1x40xi32>
    %48 = arith.cmpi eq, %0, %47 : vector<1x40xi32>
    %49 = arith.extui %48 : vector<1x40xi1> to vector<1x40xi32>
    %50 = arith.sitofp %49 : vector<1x40xi32> to vector<1x40xf32>
    %c0_15 = arith.constant 0 : index
    %c5 = arith.constant 5 : index
    %51 = memref.load %arg0[%c0_15, %c5] : memref<2x8xi32, #tpu.memory_space<smem>>
    %52 = vector.broadcast %51 : i32 to vector<1x40xi32>
    %53 = arith.cmpi eq, %0, %52 : vector<1x40xi32>
    %54 = arith.extui %53 : vector<1x40xi1> to vector<1x40xi32>
    %55 = arith.sitofp %54 : vector<1x40xi32> to vector<1x40xf32>
    %c1_16 = arith.constant 1 : index
    %c5_17 = arith.constant 5 : index
    %56 = memref.load %arg0[%c1_16, %c5_17] : memref<2x8xi32, #tpu.memory_space<smem>>
    %57 = vector.broadcast %56 : i32 to vector<1x40xi32>
    %58 = arith.cmpi eq, %0, %57 : vector<1x40xi32>
    %59 = arith.extui %58 : vector<1x40xi1> to vector<1x40xi32>
    %60 = arith.sitofp %59 : vector<1x40xi32> to vector<1x40xf32>
    %c0_18 = arith.constant 0 : index
    %c6 = arith.constant 6 : index
    %61 = memref.load %arg0[%c0_18, %c6] : memref<2x8xi32, #tpu.memory_space<smem>>
    %62 = vector.broadcast %61 : i32 to vector<1x40xi32>
    %63 = arith.cmpi eq, %0, %62 : vector<1x40xi32>
    %64 = arith.extui %63 : vector<1x40xi1> to vector<1x40xi32>
    %65 = arith.sitofp %64 : vector<1x40xi32> to vector<1x40xf32>
    %c1_19 = arith.constant 1 : index
    %c6_20 = arith.constant 6 : index
    %66 = memref.load %arg0[%c1_19, %c6_20] : memref<2x8xi32, #tpu.memory_space<smem>>
    %67 = vector.broadcast %66 : i32 to vector<1x40xi32>
    %68 = arith.cmpi eq, %0, %67 : vector<1x40xi32>
    %69 = arith.extui %68 : vector<1x40xi1> to vector<1x40xi32>
    %70 = arith.sitofp %69 : vector<1x40xi32> to vector<1x40xf32>
    %c0_21 = arith.constant 0 : index
    %c7 = arith.constant 7 : index
    %71 = memref.load %arg0[%c0_21, %c7] : memref<2x8xi32, #tpu.memory_space<smem>>
    %72 = vector.broadcast %71 : i32 to vector<1x40xi32>
    %73 = arith.cmpi eq, %0, %72 : vector<1x40xi32>
    %74 = arith.extui %73 : vector<1x40xi1> to vector<1x40xi32>
    %75 = arith.sitofp %74 : vector<1x40xi32> to vector<1x40xf32>
    %c1_22 = arith.constant 1 : index
    %c7_23 = arith.constant 7 : index
    %76 = memref.load %arg0[%c1_22, %c7_23] : memref<2x8xi32, #tpu.memory_space<smem>>
    %77 = vector.broadcast %76 : i32 to vector<1x40xi32>
    %78 = arith.cmpi eq, %0, %77 : vector<1x40xi32>
    %79 = arith.extui %78 : vector<1x40xi1> to vector<1x40xi32>
    %80 = arith.sitofp %79 : vector<1x40xi32> to vector<1x40xf32>
    %81 = tpu.concatenate %5, %10, %15, %20, %25, %30, %35, %40, %45, %50, %55, %60, %65, %70, %75, %80 in 0 : vector<1x40xf32>, vector<1x40xf32>, vector<1x40xf32>, vector<1x40xf32>, vector<1x40xf32>, vector<1x40xf32>, vector<1x40xf32>, vector<1x40xf32>, vector<1x40xf32>, vector<1x40xf32>, vector<1x40xf32>, vector<1x40xf32>, vector<1x40xf32>, vector<1x40xf32>, vector<1x40xf32>, vector<1x40xf32> -> vector<16x40xf32>
    %c0_24 = arith.constant 0 : index
    %c0_25 = arith.constant 0 : index
    %82 = vector.load %arg2[%c0_24, %c0_25] : memref<40x32xf32, #tpu.memory_space<vmem>>, vector<40x32xf32>
    %cst = arith.constant dense<0.000000e+00> : vector<16x32xf32>
    %83 = tpu.matmul %81, %82, %cst {dimension_numbers = #tpu.dot_dimension_numbers<[1], [0], [0], [1], [0, 0, 1, 1], [], []>} : vector<16x40xf32>, vector<40x32xf32>, vector<16x32xf32> -> vector<16x32xf32>
    %c0_26 = arith.constant 0 : index
    %c0_27 = arith.constant 0 : index
    %84 = vector.load %arg3[%c0_26, %c0_27] : memref<32x256xf32, #tpu.memory_space<vmem>>, vector<32x256xf32>
    %cst_28 = arith.constant dense<0.000000e+00> : vector<16x256xf32>
    %85 = tpu.matmul %83, %84, %cst_28 {dimension_numbers = #tpu.dot_dimension_numbers<[1], [0], [0], [1], [0, 0, 1, 1], [], []>} : vector<16x32xf32>, vector<32x256xf32>, vector<16x256xf32> -> vector<16x256xf32>
    %c0_29 = arith.constant 0 : index
    %c0_30 = arith.constant 0 : index
    %86 = vector.load %arg5[%c0_29, %c0_30] : memref<1x256xf32, #tpu.memory_space<vmem>>, vector<1x256xf32>
    %87 = vector.broadcast %86 : vector<1x256xf32> to vector<16x256xf32>
    %88 = arith.addf %85, %87 : vector<16x256xf32>
    %c0_31 = arith.constant 0 : index
    %c0_32 = arith.constant 0 : index
    %89 = vector.load %arg4[%c0_31, %c0_32] : memref<32x256xf32, #tpu.memory_space<vmem>>, vector<32x256xf32>
    %cst_33 = arith.constant dense<0.000000e+00> : vector<16x256xf32>
    %90 = tpu.matmul %83, %89, %cst_33 {dimension_numbers = #tpu.dot_dimension_numbers<[1], [0], [0], [1], [0, 0, 1, 1], [], []>} : vector<16x32xf32>, vector<32x256xf32>, vector<16x256xf32> -> vector<16x256xf32>
    %91 = vector.extract_strided_slice %88 {offsets = [0, 0], sizes = [16, 64], strides = [1, 1]} : vector<16x256xf32> to vector<16x64xf32>
    %92 = vector.extract_strided_slice %88 {offsets = [0, 64], sizes = [16, 64], strides = [1, 1]} : vector<16x256xf32> to vector<16x64xf32>
    %93 = vector.extract_strided_slice %88 {offsets = [0, 128], sizes = [16, 64], strides = [1, 1]} : vector<16x256xf32> to vector<16x64xf32>
    %94 = vector.extract_strided_slice %88 {offsets = [0, 192], sizes = [16, 64], strides = [1, 1]} : vector<16x256xf32> to vector<16x64xf32>
    %95 = vector.extract_strided_slice %90 {offsets = [0, 0], sizes = [16, 64], strides = [1, 1]} : vector<16x256xf32> to vector<16x64xf32>
    %96 = vector.extract_strided_slice %90 {offsets = [0, 64], sizes = [16, 64], strides = [1, 1]} : vector<16x256xf32> to vector<16x64xf32>
    %97 = vector.extract_strided_slice %90 {offsets = [0, 128], sizes = [16, 64], strides = [1, 1]} : vector<16x256xf32> to vector<16x64xf32>
    %98 = vector.extract_strided_slice %90 {offsets = [0, 192], sizes = [16, 64], strides = [1, 1]} : vector<16x256xf32> to vector<16x64xf32>
    %c0_34 = arith.constant 0 : index
    %c0_35 = arith.constant 0 : index
    %99 = vector.load %arg6[%c0_34, %c0_35] : memref<64x64xf32, #tpu.memory_space<vmem>>, vector<64x64xf32>
    %c0_36 = arith.constant 0 : index
    %c0_37 = arith.constant 0 : index
    %100 = vector.load %arg7[%c0_36, %c0_37] : memref<64x64xf32, #tpu.memory_space<vmem>>, vector<64x64xf32>
    %c0_38 = arith.constant 0 : index
    %c0_39 = arith.constant 0 : index
    %101 = vector.load %arg8[%c0_38, %c0_39] : memref<64x64xf32, #tpu.memory_space<vmem>>, vector<64x64xf32>
    %c0_40 = arith.constant 0 : index
    %c0_41 = arith.constant 0 : index
    %102 = vector.load %arg9[%c0_40, %c0_41] : memref<64x64xf32, #tpu.memory_space<vmem>>, vector<64x64xf32>
    %cst_42 = arith.constant 0.000000e+00 : f32
    %103 = vector.broadcast %cst_42 : f32 to vector<2x64xf32>
    %cst_43 = arith.constant 0.000000e+00 : f32
    %104 = vector.broadcast %cst_43 : f32 to vector<2x64xf32>
    %105 = vector.extract_strided_slice %91 {offsets = [0, 0], sizes = [2, 64], strides = [1, 1]} : vector<16x64xf32> to vector<2x64xf32>
    %106 = vector.extract_strided_slice %95 {offsets = [14, 0], sizes = [2, 64], strides = [1, 1]} : vector<16x64xf32> to vector<2x64xf32>
    %107 = arith.addf %105, %106 : vector<2x64xf32>
    %cst_44 = arith.constant dense<0.000000e+00> : vector<2x64xf32>
    %108 = tpu.matmul %103, %99, %cst_44 {dimension_numbers = #tpu.dot_dimension_numbers<[1], [0], [0], [1], [0, 0, 1, 1], [], []>} : vector<2x64xf32>, vector<64x64xf32>, vector<2x64xf32> -> vector<2x64xf32>
    %109 = arith.addf %107, %108 : vector<2x64xf32>
    %110 = vector.extract_strided_slice %92 {offsets = [0, 0], sizes = [2, 64], strides = [1, 1]} : vector<16x64xf32> to vector<2x64xf32>
    %111 = vector.extract_strided_slice %96 {offsets = [14, 0], sizes = [2, 64], strides = [1, 1]} : vector<16x64xf32> to vector<2x64xf32>
    %112 = arith.addf %110, %111 : vector<2x64xf32>
    %cst_45 = arith.constant dense<0.000000e+00> : vector<2x64xf32>
    %113 = tpu.matmul %103, %100, %cst_45 {dimension_numbers = #tpu.dot_dimension_numbers<[1], [0], [0], [1], [0, 0, 1, 1], [], []>} : vector<2x64xf32>, vector<64x64xf32>, vector<2x64xf32> -> vector<2x64xf32>
    %114 = arith.addf %112, %113 : vector<2x64xf32>
    %115 = vector.extract_strided_slice %93 {offsets = [0, 0], sizes = [2, 64], strides = [1, 1]} : vector<16x64xf32> to vector<2x64xf32>
    %116 = vector.extract_strided_slice %97 {offsets = [14, 0], sizes = [2, 64], strides = [1, 1]} : vector<16x64xf32> to vector<2x64xf32>
    %117 = arith.addf %115, %116 : vector<2x64xf32>
    %cst_46 = arith.constant dense<0.000000e+00> : vector<2x64xf32>
    %118 = tpu.matmul %103, %101, %cst_46 {dimension_numbers = #tpu.dot_dimension_numbers<[1], [0], [0], [1], [0, 0, 1, 1], [], []>} : vector<2x64xf32>, vector<64x64xf32>, vector<2x64xf32> -> vector<2x64xf32>
    %119 = arith.addf %117, %118 : vector<2x64xf32>
    %120 = vector.extract_strided_slice %94 {offsets = [0, 0], sizes = [2, 64], strides = [1, 1]} : vector<16x64xf32> to vector<2x64xf32>
    %121 = vector.extract_strided_slice %98 {offsets = [14, 0], sizes = [2, 64], strides = [1, 1]} : vector<16x64xf32> to vector<2x64xf32>
    %122 = arith.addf %120, %121 : vector<2x64xf32>
    %cst_47 = arith.constant dense<0.000000e+00> : vector<2x64xf32>
    %123 = tpu.matmul %103, %102, %cst_47 {dimension_numbers = #tpu.dot_dimension_numbers<[1], [0], [0], [1], [0, 0, 1, 1], [], []>} : vector<2x64xf32>, vector<64x64xf32>, vector<2x64xf32> -> vector<2x64xf32>
    %124 = arith.addf %122, %123 : vector<2x64xf32>
    %125 = arith.negf %114 : vector<2x64xf32>
    %126 = math.exp %125 : vector<2x64xf32>
    %cst_48 = arith.constant 1.000000e+00 : f32
    %127 = vector.broadcast %cst_48 : f32 to vector<2x64xf32>
    %128 = arith.addf %127, %126 : vector<2x64xf32>
    %129 = arith.divf %127, %128 : vector<2x64xf32>
    %130 = arith.mulf %129, %104 : vector<2x64xf32>
    %131 = arith.negf %109 : vector<2x64xf32>
    %132 = math.exp %131 : vector<2x64xf32>
    %cst_49 = arith.constant 1.000000e+00 : f32
    %133 = vector.broadcast %cst_49 : f32 to vector<2x64xf32>
    %134 = arith.addf %133, %132 : vector<2x64xf32>
    %135 = arith.divf %133, %134 : vector<2x64xf32>
    %136 = math.tanh %119 : vector<2x64xf32>
    %137 = arith.mulf %135, %136 : vector<2x64xf32>
    %138 = arith.addf %130, %137 : vector<2x64xf32>
    %139 = arith.negf %124 : vector<2x64xf32>
    %140 = math.exp %139 : vector<2x64xf32>
    %cst_50 = arith.constant 1.000000e+00 : f32
    %141 = vector.broadcast %cst_50 : f32 to vector<2x64xf32>
    %142 = arith.addf %141, %140 : vector<2x64xf32>
    %143 = arith.divf %141, %142 : vector<2x64xf32>
    %144 = math.tanh %138 : vector<2x64xf32>
    %145 = arith.mulf %143, %144 : vector<2x64xf32>
    %146 = vector.extract_strided_slice %145 {offsets = [0, 0], sizes = [2, 32], strides = [1, 1]} : vector<2x64xf32> to vector<2x32xf32>
    %c0_51 = arith.constant 0 : index
    %c0_52 = arith.constant 0 : index
    %147 = vector.load %arg24[%c0_51, %c0_52] : memref<16x64xf32, #tpu.memory_space<vmem>>, vector<2x32xf32>
    tpu.vector_store %arg24[%c0_51, %c0_52], %146 {strides = array<i32>} : memref<16x64xf32, #tpu.memory_space<vmem>>, vector<2x32xf32>,
    %148 = vector.extract_strided_slice %145 {offsets = [0, 32], sizes = [2, 32], strides = [1, 1]} : vector<2x64xf32> to vector<2x32xf32>
    %c14 = arith.constant 14 : index
    %c32 = arith.constant 32 : index
    %149 = vector.load %arg24[%c14, %c32] : memref<16x64xf32, #tpu.memory_space<vmem>>, vector<2x32xf32>
    tpu.vector_store %arg24[%c14, %c32], %148 {strides = array<i32>} : memref<16x64xf32, #tpu.memory_space<vmem>>, vector<2x32xf32>,
    %150 = vector.extract_strided_slice %91 {offsets = [2, 0], sizes = [2, 64], strides = [1, 1]} : vector<16x64xf32> to vector<2x64xf32>
    %151 = vector.extract_strided_slice %95 {offsets = [12, 0], sizes = [2, 64], strides = [1, 1]} : vector<16x64xf32> to vector<2x64xf32>
    %152 = arith.addf %150, %151 : vector<2x64xf32>
    %cst_53 = arith.constant dense<0.000000e+00> : vector<2x64xf32>
    %153 = tpu.matmul %145, %99, %cst_53 {dimension_numbers = #tpu.dot_dimension_numbers<[1], [0], [0], [1], [0, 0, 1, 1], [], []>} : vector<2x64xf32>, vector<64x64xf32>, vector<2x64xf32> -> vector<2x64xf32>
    %154 = arith.addf %152, %153 : vector<2x64xf32>
    %155 = vector.extract_strided_slice %92 {offsets = [2, 0], sizes = [2, 64], strides = [1, 1]} : vector<16x64xf32> to vector<2x64xf32>
    %156 = vector.extract_strided_slice %96 {offsets = [12, 0], sizes = [2, 64], strides = [1, 1]} : vector<16x64xf32> to vector<2x64xf32>
    %157 = arith.addf %155, %156 : vector<2x64xf32>
    %cst_54 = arith.constant dense<0.000000e+00> : vector<2x64xf32>
    %158 = tpu.matmul %145, %100, %cst_54 {dimension_numbers = #tpu.dot_dimension_numbers<[1], [0], [0], [1], [0, 0, 1, 1], [], []>} : vector<2x64xf32>, vector<64x64xf32>, vector<2x64xf32> -> vector<2x64xf32>
    %159 = arith.addf %157, %158 : vector<2x64xf32>
    %160 = vector.extract_strided_slice %93 {offsets = [2, 0], sizes = [2, 64], strides = [1, 1]} : vector<16x64xf32> to vector<2x64xf32>
    %161 = vector.extract_strided_slice %97 {offsets = [12, 0], sizes = [2, 64], strides = [1, 1]} : vector<16x64xf32> to vector<2x64xf32>
    %162 = arith.addf %160, %161 : vector<2x64xf32>
    %cst_55 = arith.constant dense<0.000000e+00> : vector<2x64xf32>
    %163 = tpu.matmul %145, %101, %cst_55 {dimension_numbers = #tpu.dot_dimension_numbers<[1], [0], [0], [1], [0, 0, 1, 1], [], []>} : vector<2x64xf32>, vector<64x64xf32>, vector<2x64xf32> -> vector<2x64xf32>
    %164 = arith.addf %162, %163 : vector<2x64xf32>
    %165 = vector.extract_strided_slice %94 {offsets = [2, 0], sizes = [2, 64], strides = [1, 1]} : vector<16x64xf32> to vector<2x64xf32>
    %166 = vector.extract_strided_slice %98 {offsets = [12, 0], sizes = [2, 64], strides = [1, 1]} : vector<16x64xf32> to vector<2x64xf32>
    %167 = arith.addf %165, %166 : vector<2x64xf32>
    %cst_56 = arith.constant dense<0.000000e+00> : vector<2x64xf32>
    %168 = tpu.matmul %145, %102, %cst_56 {dimension_numbers = #tpu.dot_dimension_numbers<[1], [0], [0], [1], [0, 0, 1, 1], [], []>} : vector<2x64xf32>, vector<64x64xf32>, vector<2x64xf32> -> vector<2x64xf32>
    %169 = arith.addf %167, %168 : vector<2x64xf32>
    %170 = arith.negf %159 : vector<2x64xf32>
    %171 = math.exp %170 : vector<2x64xf32>
    %cst_57 = arith.constant 1.000000e+00 : f32
    %172 = vector.broadcast %cst_57 : f32 to vector<2x64xf32>
    %173 = arith.addf %172, %171 : vector<2x64xf32>
    %174 = arith.divf %172, %173 : vector<2x64xf32>
    %175 = arith.mulf %174, %138 : vector<2x64xf32>
    %176 = arith.negf %154 : vector<2x64xf32>
    %177 = math.exp %176 : vector<2x64xf32>
    %cst_58 = arith.constant 1.000000e+00 : f32
    %178 = vector.broadcast %cst_58 : f32 to vector<2x64xf32>
    %179 = arith.addf %178, %177 : vector<2x64xf32>
    %180 = arith.divf %178, %179 : vector<2x64xf32>
    %181 = math.tanh %164 : vector<2x64xf32>
    %182 = arith.mulf %180, %181 : vector<2x64xf32>
    %183 = arith.addf %175, %182 : vector<2x64xf32>
    %184 = arith.negf %169 : vector<2x64xf32>
    %185 = math.exp %184 : vector<2x64xf32>
    %cst_59 = arith.constant 1.000000e+00 : f32
    %186 = vector.broadcast %cst_59 : f32 to vector<2x64xf32>
    %187 = arith.addf %186, %185 : vector<2x64xf32>
    %188 = arith.divf %186, %187 : vector<2x64xf32>
    %189 = math.tanh %183 : vector<2x64xf32>
    %190 = arith.mulf %188, %189 : vector<2x64xf32>
    %191 = vector.extract_strided_slice %190 {offsets = [0, 0], sizes = [2, 32], strides = [1, 1]} : vector<2x64xf32> to vector<2x32xf32>
    %c2_60 = arith.constant 2 : index
    %c0_61 = arith.constant 0 : index
    %192 = vector.load %arg24[%c2_60, %c0_61] : memref<16x64xf32, #tpu.memory_space<vmem>>, vector<2x32xf32>
    tpu.vector_store %arg24[%c2_60, %c0_61], %191 {strides = array<i32>} : memref<16x64xf32, #tpu.memory_space<vmem>>, vector<2x32xf32>,
    %193 = vector.extract_strided_slice %190 {offsets = [0, 32], sizes = [2, 32], strides = [1, 1]} : vector<2x64xf32> to vector<2x32xf32>
    %c12 = arith.constant 12 : index
    %c32_62 = arith.constant 32 : index
    %194 = vector.load %arg24[%c12, %c32_62] : memref<16x64xf32, #tpu.memory_space<vmem>>, vector<2x32xf32>
    tpu.vector_store %arg24[%c12, %c32_62], %193 {strides = array<i32>} : memref<16x64xf32, #tpu.memory_space<vmem>>, vector<2x32xf32>,
    %195 = vector.extract_strided_slice %91 {offsets = [4, 0], sizes = [2, 64], strides = [1, 1]} : vector<16x64xf32> to vector<2x64xf32>
    %196 = vector.extract_strided_slice %95 {offsets = [10, 0], sizes = [2, 64], strides = [1, 1]} : vector<16x64xf32> to vector<2x64xf32>
    %197 = arith.addf %195, %196 : vector<2x64xf32>
    %cst_63 = arith.constant dense<0.000000e+00> : vector<2x64xf32>
    %198 = tpu.matmul %190, %99, %cst_63 {dimension_numbers = #tpu.dot_dimension_numbers<[1], [0], [0], [1], [0, 0, 1, 1], [], []>} : vector<2x64xf32>, vector<64x64xf32>, vector<2x64xf32> -> vector<2x64xf32>
    %199 = arith.addf %197, %198 : vector<2x64xf32>
    %200 = vector.extract_strided_slice %92 {offsets = [4, 0], sizes = [2, 64], strides = [1, 1]} : vector<16x64xf32> to vector<2x64xf32>
    %201 = vector.extract_strided_slice %96 {offsets = [10, 0], sizes = [2, 64], strides = [1, 1]} : vector<16x64xf32> to vector<2x64xf32>
    %202 = arith.addf %200, %201 : vector<2x64xf32>
    %cst_64 = arith.constant dense<0.000000e+00> : vector<2x64xf32>
    %203 = tpu.matmul %190, %100, %cst_64 {dimension_numbers = #tpu.dot_dimension_numbers<[1], [0], [0], [1], [0, 0, 1, 1], [], []>} : vector<2x64xf32>, vector<64x64xf32>, vector<2x64xf32> -> vector<2x64xf32>
    %204 = arith.addf %202, %203 : vector<2x64xf32>
    %205 = vector.extract_strided_slice %93 {offsets = [4, 0], sizes = [2, 64], strides = [1, 1]} : vector<16x64xf32> to vector<2x64xf32>
    %206 = vector.extract_strided_slice %97 {offsets = [10, 0], sizes = [2, 64], strides = [1, 1]} : vector<16x64xf32> to vector<2x64xf32>
    %207 = arith.addf %205, %206 : vector<2x64xf32>
    %cst_65 = arith.constant dense<0.000000e+00> : vector<2x64xf32>
    %208 = tpu.matmul %190, %101, %cst_65 {dimension_numbers = #tpu.dot_dimension_numbers<[1], [0], [0], [1], [0, 0, 1, 1], [], []>} : vector<2x64xf32>, vector<64x64xf32>, vector<2x64xf32> -> vector<2x64xf32>
    %209 = arith.addf %207, %208 : vector<2x64xf32>
    %210 = vector.extract_strided_slice %94 {offsets = [4, 0], sizes = [2, 64], strides = [1, 1]} : vector<16x64xf32> to vector<2x64xf32>
    %211 = vector.extract_strided_slice %98 {offsets = [10, 0], sizes = [2, 64], strides = [1, 1]} : vector<16x64xf32> to vector<2x64xf32>
    %212 = arith.addf %210, %211 : vector<2x64xf32>
    %cst_66 = arith.constant dense<0.000000e+00> : vector<2x64xf32>
    %213 = tpu.matmul %190, %102, %cst_66 {dimension_numbers = #tpu.dot_dimension_numbers<[1], [0], [0], [1], [0, 0, 1, 1], [], []>} : vector<2x64xf32>, vector<64x64xf32>, vector<2x64xf32> -> vector<2x64xf32>
    %214 = arith.addf %212, %213 : vector<2x64xf32>
    %215 = arith.negf %204 : vector<2x64xf32>
    %216 = math.exp %215 : vector<2x64xf32>
    %cst_67 = arith.constant 1.000000e+00 : f32
    %217 = vector.broadcast %cst_67 : f32 to vector<2x64xf32>
    %218 = arith.addf %217, %216 : vector<2x64xf32>
    %219 = arith.divf %217, %218 : vector<2x64xf32>
    %220 = arith.mulf %219, %183 : vector<2x64xf32>
    %221 = arith.negf %199 : vector<2x64xf32>
    %222 = math.exp %221 : vector<2x64xf32>
    %cst_68 = arith.constant 1.000000e+00 : f32
    %223 = vector.broadcast %cst_68 : f32 to vector<2x64xf32>
    %224 = arith.addf %223, %222 : vector<2x64xf32>
    %225 = arith.divf %223, %224 : vector<2x64xf32>
    %226 = math.tanh %209 : vector<2x64xf32>
    %227 = arith.mulf %225, %226 : vector<2x64xf32>
    %228 = arith.addf %220, %227 : vector<2x64xf32>
    %229 = arith.negf %214 : vector<2x64xf32>
    %230 = math.exp %229 : vector<2x64xf32>
    %cst_69 = arith.constant 1.000000e+00 : f32
    %231 = vector.broadcast %cst_69 : f32 to vector<2x64xf32>
    %232 = arith.addf %231, %230 : vector<2x64xf32>
    %233 = arith.divf %231, %232 : vector<2x64xf32>
    %234 = math.tanh %228 : vector<2x64xf32>
    %235 = arith.mulf %233, %234 : vector<2x64xf32>
    %236 = vector.extract_strided_slice %235 {offsets = [0, 0], sizes = [2, 32], strides = [1, 1]} : vector<2x64xf32> to vector<2x32xf32>
    %c4_70 = arith.constant 4 : index
    %c0_71 = arith.constant 0 : index
    %237 = vector.load %arg24[%c4_70, %c0_71] : memref<16x64xf32, #tpu.memory_space<vmem>>, vector<2x32xf32>
    tpu.vector_store %arg24[%c4_70, %c0_71], %236 {strides = array<i32>} : memref<16x64xf32, #tpu.memory_space<vmem>>, vector<2x32xf32>,
    %238 = vector.extract_strided_slice %235 {offsets = [0, 32], sizes = [2, 32], strides = [1, 1]} : vector<2x64xf32> to vector<2x32xf32>
    %c10 = arith.constant 10 : index
    %c32_72 = arith.constant 32 : index
    %239 = vector.load %arg24[%c10, %c32_72] : memref<16x64xf32, #tpu.memory_space<vmem>>, vector<2x32xf32>
    tpu.vector_store %arg24[%c10, %c32_72], %238 {strides = array<i32>} : memref<16x64xf32, #tpu.memory_space<vmem>>, vector<2x32xf32>,
    %240 = vector.extract_strided_slice %91 {offsets = [6, 0], sizes = [2, 64], strides = [1, 1]} : vector<16x64xf32> to vector<2x64xf32>
    %241 = vector.extract_strided_slice %95 {offsets = [8, 0], sizes = [2, 64], strides = [1, 1]} : vector<16x64xf32> to vector<2x64xf32>
    %242 = arith.addf %240, %241 : vector<2x64xf32>
    %cst_73 = arith.constant dense<0.000000e+00> : vector<2x64xf32>
    %243 = tpu.matmul %235, %99, %cst_73 {dimension_numbers = #tpu.dot_dimension_numbers<[1], [0], [0], [1], [0, 0, 1, 1], [], []>} : vector<2x64xf32>, vector<64x64xf32>, vector<2x64xf32> -> vector<2x64xf32>
    %244 = arith.addf %242, %243 : vector<2x64xf32>
    %245 = vector.extract_strided_slice %92 {offsets = [6, 0], sizes = [2, 64], strides = [1, 1]} : vector<16x64xf32> to vector<2x64xf32>
    %246 = vector.extract_strided_slice %96 {offsets = [8, 0], sizes = [2, 64], strides = [1, 1]} : vector<16x64xf32> to vector<2x64xf32>
    %247 = arith.addf %245, %246 : vector<2x64xf32>
    %cst_74 = arith.constant dense<0.000000e+00> : vector<2x64xf32>
    %248 = tpu.matmul %235, %100, %cst_74 {dimension_numbers = #tpu.dot_dimension_numbers<[1], [0], [0], [1], [0, 0, 1, 1], [], []>} : vector<2x64xf32>, vector<64x64xf32>, vector<2x64xf32> -> vector<2x64xf32>
    %249 = arith.addf %247, %248 : vector<2x64xf32>
    %250 = vector.extract_strided_slice %93 {offsets = [6, 0], sizes = [2, 64], strides = [1, 1]} : vector<16x64xf32> to vector<2x64xf32>
    %251 = vector.extract_strided_slice %97 {offsets = [8, 0], sizes = [2, 64], strides = [1, 1]} : vector<16x64xf32> to vector<2x64xf32>
    %252 = arith.addf %250, %251 : vector<2x64xf32>
    %cst_75 = arith.constant dense<0.000000e+00> : vector<2x64xf32>
    %253 = tpu.matmul %235, %101, %cst_75 {dimension_numbers = #tpu.dot_dimension_numbers<[1], [0], [0], [1], [0, 0, 1, 1], [], []>} : vector<2x64xf32>, vector<64x64xf32>, vector<2x64xf32> -> vector<2x64xf32>
    %254 = arith.addf %252, %253 : vector<2x64xf32>
    %255 = vector.extract_strided_slice %94 {offsets = [6, 0], sizes = [2, 64], strides = [1, 1]} : vector<16x64xf32> to vector<2x64xf32>
    %256 = vector.extract_strided_slice %98 {offsets = [8, 0], sizes = [2, 64], strides = [1, 1]} : vector<16x64xf32> to vector<2x64xf32>
    %257 = arith.addf %255, %256 : vector<2x64xf32>
    %cst_76 = arith.constant dense<0.000000e+00> : vector<2x64xf32>
    %258 = tpu.matmul %235, %102, %cst_76 {dimension_numbers = #tpu.dot_dimension_numbers<[1], [0], [0], [1], [0, 0, 1, 1], [], []>} : vector<2x64xf32>, vector<64x64xf32>, vector<2x64xf32> -> vector<2x64xf32>
    %259 = arith.addf %257, %258 : vector<2x64xf32>
    %260 = arith.negf %249 : vector<2x64xf32>
    %261 = math.exp %260 : vector<2x64xf32>
    %cst_77 = arith.constant 1.000000e+00 : f32
    %262 = vector.broadcast %cst_77 : f32 to vector<2x64xf32>
    %263 = arith.addf %262, %261 : vector<2x64xf32>
    %264 = arith.divf %262, %263 : vector<2x64xf32>
    %265 = arith.mulf %264, %228 : vector<2x64xf32>
    %266 = arith.negf %244 : vector<2x64xf32>
    %267 = math.exp %266 : vector<2x64xf32>
    %cst_78 = arith.constant 1.000000e+00 : f32
    %268 = vector.broadcast %cst_78 : f32 to vector<2x64xf32>
    %269 = arith.addf %268, %267 : vector<2x64xf32>
    %270 = arith.divf %268, %269 : vector<2x64xf32>
    %271 = math.tanh %254 : vector<2x64xf32>
    %272 = arith.mulf %270, %271 : vector<2x64xf32>
    %273 = arith.addf %265, %272 : vector<2x64xf32>
    %274 = arith.negf %259 : vector<2x64xf32>
    %275 = math.exp %274 : vector<2x64xf32>
    %cst_79 = arith.constant 1.000000e+00 : f32
    %276 = vector.broadcast %cst_79 : f32 to vector<2x64xf32>
    %277 = arith.addf %276, %275 : vector<2x64xf32>
    %278 = arith.divf %276, %277 : vector<2x64xf32>
    %279 = math.tanh %273 : vector<2x64xf32>
    %280 = arith.mulf %278, %279 : vector<2x64xf32>
    %281 = vector.extract_strided_slice %280 {offsets = [0, 0], sizes = [2, 32], strides = [1, 1]} : vector<2x64xf32> to vector<2x32xf32>
    %c6_80 = arith.constant 6 : index
    %c0_81 = arith.constant 0 : index
    %282 = vector.load %arg24[%c6_80, %c0_81] : memref<16x64xf32, #tpu.memory_space<vmem>>, vector<2x32xf32>
    tpu.vector_store %arg24[%c6_80, %c0_81], %281 {strides = array<i32>} : memref<16x64xf32, #tpu.memory_space<vmem>>, vector<2x32xf32>,
    %283 = vector.extract_strided_slice %280 {offsets = [0, 32], sizes = [2, 32], strides = [1, 1]} : vector<2x64xf32> to vector<2x32xf32>
    %c8 = arith.constant 8 : index
    %c32_82 = arith.constant 32 : index
    %284 = vector.load %arg24[%c8, %c32_82] : memref<16x64xf32, #tpu.memory_space<vmem>>, vector<2x32xf32>
    tpu.vector_store %arg24[%c8, %c32_82], %283 {strides = array<i32>} : memref<16x64xf32, #tpu.memory_space<vmem>>, vector<2x32xf32>,
    %285 = vector.extract_strided_slice %91 {offsets = [8, 0], sizes = [2, 64], strides = [1, 1]} : vector<16x64xf32> to vector<2x64xf32>
    %286 = vector.extract_strided_slice %95 {offsets = [6, 0], sizes = [2, 64], strides = [1, 1]} : vector<16x64xf32> to vector<2x64xf32>
    %287 = arith.addf %285, %286 : vector<2x64xf32>
    %cst_83 = arith.constant dense<0.000000e+00> : vector<2x64xf32>
    %288 = tpu.matmul %280, %99, %cst_83 {dimension_numbers = #tpu.dot_dimension_numbers<[1], [0], [0], [1], [0, 0, 1, 1], [], []>} : vector<2x64xf32>, vector<64x64xf32>, vector<2x64xf32> -> vector<2x64xf32>
    %289 = arith.addf %287, %288 : vector<2x64xf32>
    %290 = vector.extract_strided_slice %92 {offsets = [8, 0], sizes = [2, 64], strides = [1, 1]} : vector<16x64xf32> to vector<2x64xf32>
    %291 = vector.extract_strided_slice %96 {offsets = [6, 0], sizes = [2, 64], strides = [1, 1]} : vector<16x64xf32> to vector<2x64xf32>
    %292 = arith.addf %290, %291 : vector<2x64xf32>
    %cst_84 = arith.constant dense<0.000000e+00> : vector<2x64xf32>
    %293 = tpu.matmul %280, %100, %cst_84 {dimension_numbers = #tpu.dot_dimension_numbers<[1], [0], [0], [1], [0, 0, 1, 1], [], []>} : vector<2x64xf32>, vector<64x64xf32>, vector<2x64xf32> -> vector<2x64xf32>
    %294 = arith.addf %292, %293 : vector<2x64xf32>
    %295 = vector.extract_strided_slice %93 {offsets = [8, 0], sizes = [2, 64], strides = [1, 1]} : vector<16x64xf32> to vector<2x64xf32>
    %296 = vector.extract_strided_slice %97 {offsets = [6, 0], sizes = [2, 64], strides = [1, 1]} : vector<16x64xf32> to vector<2x64xf32>
    %297 = arith.addf %295, %296 : vector<2x64xf32>
    %cst_85 = arith.constant dense<0.000000e+00> : vector<2x64xf32>
    %298 = tpu.matmul %280, %101, %cst_85 {dimension_numbers = #tpu.dot_dimension_numbers<[1], [0], [0], [1], [0, 0, 1, 1], [], []>} : vector<2x64xf32>, vector<64x64xf32>, vector<2x64xf32> -> vector<2x64xf32>
    %299 = arith.addf %297, %298 : vector<2x64xf32>
    %300 = vector.extract_strided_slice %94 {offsets = [8, 0], sizes = [2, 64], strides = [1, 1]} : vector<16x64xf32> to vector<2x64xf32>
    %301 = vector.extract_strided_slice %98 {offsets = [6, 0], sizes = [2, 64], strides = [1, 1]} : vector<16x64xf32> to vector<2x64xf32>
    %302 = arith.addf %300, %301 : vector<2x64xf32>
    %cst_86 = arith.constant dense<0.000000e+00> : vector<2x64xf32>
    %303 = tpu.matmul %280, %102, %cst_86 {dimension_numbers = #tpu.dot_dimension_numbers<[1], [0], [0], [1], [0, 0, 1, 1], [], []>} : vector<2x64xf32>, vector<64x64xf32>, vector<2x64xf32> -> vector<2x64xf32>
    %304 = arith.addf %302, %303 : vector<2x64xf32>
    %305 = arith.negf %294 : vector<2x64xf32>
    %306 = math.exp %305 : vector<2x64xf32>
    %cst_87 = arith.constant 1.000000e+00 : f32
    %307 = vector.broadcast %cst_87 : f32 to vector<2x64xf32>
    %308 = arith.addf %307, %306 : vector<2x64xf32>
    %309 = arith.divf %307, %308 : vector<2x64xf32>
    %310 = arith.mulf %309, %273 : vector<2x64xf32>
    %311 = arith.negf %289 : vector<2x64xf32>
    %312 = math.exp %311 : vector<2x64xf32>
    %cst_88 = arith.constant 1.000000e+00 : f32
    %313 = vector.broadcast %cst_88 : f32 to vector<2x64xf32>
    %314 = arith.addf %313, %312 : vector<2x64xf32>
    %315 = arith.divf %313, %314 : vector<2x64xf32>
    %316 = math.tanh %299 : vector<2x64xf32>
    %317 = arith.mulf %315, %316 : vector<2x64xf32>
    %318 = arith.addf %310, %317 : vector<2x64xf32>
    %319 = arith.negf %304 : vector<2x64xf32>
    %320 = math.exp %319 : vector<2x64xf32>
    %cst_89 = arith.constant 1.000000e+00 : f32
    %321 = vector.broadcast %cst_89 : f32 to vector<2x64xf32>
    %322 = arith.addf %321, %320 : vector<2x64xf32>
    %323 = arith.divf %321, %322 : vector<2x64xf32>
    %324 = math.tanh %318 : vector<2x64xf32>
    %325 = arith.mulf %323, %324 : vector<2x64xf32>
    %326 = vector.extract_strided_slice %325 {offsets = [0, 0], sizes = [2, 32], strides = [1, 1]} : vector<2x64xf32> to vector<2x32xf32>
    %c8_90 = arith.constant 8 : index
    %c0_91 = arith.constant 0 : index
    %327 = vector.load %arg24[%c8_90, %c0_91] : memref<16x64xf32, #tpu.memory_space<vmem>>, vector<2x32xf32>
    tpu.vector_store %arg24[%c8_90, %c0_91], %326 {strides = array<i32>} : memref<16x64xf32, #tpu.memory_space<vmem>>, vector<2x32xf32>,
    %328 = vector.extract_strided_slice %325 {offsets = [0, 32], sizes = [2, 32], strides = [1, 1]} : vector<2x64xf32> to vector<2x32xf32>
    %c6_92 = arith.constant 6 : index
    %c32_93 = arith.constant 32 : index
    %329 = vector.load %arg24[%c6_92, %c32_93] : memref<16x64xf32, #tpu.memory_space<vmem>>, vector<2x32xf32>
    tpu.vector_store %arg24[%c6_92, %c32_93], %328 {strides = array<i32>} : memref<16x64xf32, #tpu.memory_space<vmem>>, vector<2x32xf32>,
    %330 = vector.extract_strided_slice %91 {offsets = [10, 0], sizes = [2, 64], strides = [1, 1]} : vector<16x64xf32> to vector<2x64xf32>
    %331 = vector.extract_strided_slice %95 {offsets = [4, 0], sizes = [2, 64], strides = [1, 1]} : vector<16x64xf32> to vector<2x64xf32>
    %332 = arith.addf %330, %331 : vector<2x64xf32>
    %cst_94 = arith.constant dense<0.000000e+00> : vector<2x64xf32>
    %333 = tpu.matmul %325, %99, %cst_94 {dimension_numbers = #tpu.dot_dimension_numbers<[1], [0], [0], [1], [0, 0, 1, 1], [], []>} : vector<2x64xf32>, vector<64x64xf32>, vector<2x64xf32> -> vector<2x64xf32>
    %334 = arith.addf %332, %333 : vector<2x64xf32>
    %335 = vector.extract_strided_slice %92 {offsets = [10, 0], sizes = [2, 64], strides = [1, 1]} : vector<16x64xf32> to vector<2x64xf32>
    %336 = vector.extract_strided_slice %96 {offsets = [4, 0], sizes = [2, 64], strides = [1, 1]} : vector<16x64xf32> to vector<2x64xf32>
    %337 = arith.addf %335, %336 : vector<2x64xf32>
    %cst_95 = arith.constant dense<0.000000e+00> : vector<2x64xf32>
    %338 = tpu.matmul %325, %100, %cst_95 {dimension_numbers = #tpu.dot_dimension_numbers<[1], [0], [0], [1], [0, 0, 1, 1], [], []>} : vector<2x64xf32>, vector<64x64xf32>, vector<2x64xf32> -> vector<2x64xf32>
    %339 = arith.addf %337, %338 : vector<2x64xf32>
    %340 = vector.extract_strided_slice %93 {offsets = [10, 0], sizes = [2, 64], strides = [1, 1]} : vector<16x64xf32> to vector<2x64xf32>
    %341 = vector.extract_strided_slice %97 {offsets = [4, 0], sizes = [2, 64], strides = [1, 1]} : vector<16x64xf32> to vector<2x64xf32>
    %342 = arith.addf %340, %341 : vector<2x64xf32>
    %cst_96 = arith.constant dense<0.000000e+00> : vector<2x64xf32>
    %343 = tpu.matmul %325, %101, %cst_96 {dimension_numbers = #tpu.dot_dimension_numbers<[1], [0], [0], [1], [0, 0, 1, 1], [], []>} : vector<2x64xf32>, vector<64x64xf32>, vector<2x64xf32> -> vector<2x64xf32>
    %344 = arith.addf %342, %343 : vector<2x64xf32>
    %345 = vector.extract_strided_slice %94 {offsets = [10, 0], sizes = [2, 64], strides = [1, 1]} : vector<16x64xf32> to vector<2x64xf32>
    %346 = vector.extract_strided_slice %98 {offsets = [4, 0], sizes = [2, 64], strides = [1, 1]} : vector<16x64xf32> to vector<2x64xf32>
    %347 = arith.addf %345, %346 : vector<2x64xf32>
    %cst_97 = arith.constant dense<0.000000e+00> : vector<2x64xf32>
    %348 = tpu.matmul %325, %102, %cst_97 {dimension_numbers = #tpu.dot_dimension_numbers<[1], [0], [0], [1], [0, 0, 1, 1], [], []>} : vector<2x64xf32>, vector<64x64xf32>, vector<2x64xf32> -> vector<2x64xf32>
    %349 = arith.addf %347, %348 : vector<2x64xf32>
    %350 = arith.negf %339 : vector<2x64xf32>
    %351 = math.exp %350 : vector<2x64xf32>
    %cst_98 = arith.constant 1.000000e+00 : f32
    %352 = vector.broadcast %cst_98 : f32 to vector<2x64xf32>
    %353 = arith.addf %352, %351 : vector<2x64xf32>
    %354 = arith.divf %352, %353 : vector<2x64xf32>
    %355 = arith.mulf %354, %318 : vector<2x64xf32>
    %356 = arith.negf %334 : vector<2x64xf32>
    %357 = math.exp %356 : vector<2x64xf32>
    %cst_99 = arith.constant 1.000000e+00 : f32
    %358 = vector.broadcast %cst_99 : f32 to vector<2x64xf32>
    %359 = arith.addf %358, %357 : vector<2x64xf32>
    %360 = arith.divf %358, %359 : vector<2x64xf32>
    %361 = math.tanh %344 : vector<2x64xf32>
    %362 = arith.mulf %360, %361 : vector<2x64xf32>
    %363 = arith.addf %355, %362 : vector<2x64xf32>
    %364 = arith.negf %349 : vector<2x64xf32>
    %365 = math.exp %364 : vector<2x64xf32>
    %cst_100 = arith.constant 1.000000e+00 : f32
    %366 = vector.broadcast %cst_100 : f32 to vector<2x64xf32>
    %367 = arith.addf %366, %365 : vector<2x64xf32>
    %368 = arith.divf %366, %367 : vector<2x64xf32>
    %369 = math.tanh %363 : vector<2x64xf32>
    %370 = arith.mulf %368, %369 : vector<2x64xf32>
    %371 = vector.extract_strided_slice %370 {offsets = [0, 0], sizes = [2, 32], strides = [1, 1]} : vector<2x64xf32> to vector<2x32xf32>
    %c10_101 = arith.constant 10 : index
    %c0_102 = arith.constant 0 : index
    %372 = vector.load %arg24[%c10_101, %c0_102] : memref<16x64xf32, #tpu.memory_space<vmem>>, vector<2x32xf32>
    tpu.vector_store %arg24[%c10_101, %c0_102], %371 {strides = array<i32>} : memref<16x64xf32, #tpu.memory_space<vmem>>, vector<2x32xf32>,
    %373 = vector.extract_strided_slice %370 {offsets = [0, 32], sizes = [2, 32], strides = [1, 1]} : vector<2x64xf32> to vector<2x32xf32>
    %c4_103 = arith.constant 4 : index
    %c32_104 = arith.constant 32 : index
    %374 = vector.load %arg24[%c4_103, %c32_104] : memref<16x64xf32, #tpu.memory_space<vmem>>, vector<2x32xf32>
    tpu.vector_store %arg24[%c4_103, %c32_104], %373 {strides = array<i32>} : memref<16x64xf32, #tpu.memory_space<vmem>>, vector<2x32xf32>,
    %375 = vector.extract_strided_slice %91 {offsets = [12, 0], sizes = [2, 64], strides = [1, 1]} : vector<16x64xf32> to vector<2x64xf32>
    %376 = vector.extract_strided_slice %95 {offsets = [2, 0], sizes = [2, 64], strides = [1, 1]} : vector<16x64xf32> to vector<2x64xf32>
    %377 = arith.addf %375, %376 : vector<2x64xf32>
    %cst_105 = arith.constant dense<0.000000e+00> : vector<2x64xf32>
    %378 = tpu.matmul %370, %99, %cst_105 {dimension_numbers = #tpu.dot_dimension_numbers<[1], [0], [0], [1], [0, 0, 1, 1], [], []>} : vector<2x64xf32>, vector<64x64xf32>, vector<2x64xf32> -> vector<2x64xf32>
    %379 = arith.addf %377, %378 : vector<2x64xf32>
    %380 = vector.extract_strided_slice %92 {offsets = [12, 0], sizes = [2, 64], strides = [1, 1]} : vector<16x64xf32> to vector<2x64xf32>
    %381 = vector.extract_strided_slice %96 {offsets = [2, 0], sizes = [2, 64], strides = [1, 1]} : vector<16x64xf32> to vector<2x64xf32>
    %382 = arith.addf %380, %381 : vector<2x64xf32>
    %cst_106 = arith.constant dense<0.000000e+00> : vector<2x64xf32>
    %383 = tpu.matmul %370, %100, %cst_106 {dimension_numbers = #tpu.dot_dimension_numbers<[1], [0], [0], [1], [0, 0, 1, 1], [], []>} : vector<2x64xf32>, vector<64x64xf32>, vector<2x64xf32> -> vector<2x64xf32>
    %384 = arith.addf %382, %383 : vector<2x64xf32>
    %385 = vector.extract_strided_slice %93 {offsets = [12, 0], sizes = [2, 64], strides = [1, 1]} : vector<16x64xf32> to vector<2x64xf32>
    %386 = vector.extract_strided_slice %97 {offsets = [2, 0], sizes = [2, 64], strides = [1, 1]} : vector<16x64xf32> to vector<2x64xf32>
    %387 = arith.addf %385, %386 : vector<2x64xf32>
    %cst_107 = arith.constant dense<0.000000e+00> : vector<2x64xf32>
    %388 = tpu.matmul %370, %101, %cst_107 {dimension_numbers = #tpu.dot_dimension_numbers<[1], [0], [0], [1], [0, 0, 1, 1], [], []>} : vector<2x64xf32>, vector<64x64xf32>, vector<2x64xf32> -> vector<2x64xf32>
    %389 = arith.addf %387, %388 : vector<2x64xf32>
    %390 = vector.extract_strided_slice %94 {offsets = [12, 0], sizes = [2, 64], strides = [1, 1]} : vector<16x64xf32> to vector<2x64xf32>
    %391 = vector.extract_strided_slice %98 {offsets = [2, 0], sizes = [2, 64], strides = [1, 1]} : vector<16x64xf32> to vector<2x64xf32>
    %392 = arith.addf %390, %391 : vector<2x64xf32>
    %cst_108 = arith.constant dense<0.000000e+00> : vector<2x64xf32>
    %393 = tpu.matmul %370, %102, %cst_108 {dimension_numbers = #tpu.dot_dimension_numbers<[1], [0], [0], [1], [0, 0, 1, 1], [], []>} : vector<2x64xf32>, vector<64x64xf32>, vector<2x64xf32> -> vector<2x64xf32>
    %394 = arith.addf %392, %393 : vector<2x64xf32>
    %395 = arith.negf %384 : vector<2x64xf32>
    %396 = math.exp %395 : vector<2x64xf32>
    %cst_109 = arith.constant 1.000000e+00 : f32
    %397 = vector.broadcast %cst_109 : f32 to vector<2x64xf32>
    %398 = arith.addf %397, %396 : vector<2x64xf32>
    %399 = arith.divf %397, %398 : vector<2x64xf32>
    %400 = arith.mulf %399, %363 : vector<2x64xf32>
    %401 = arith.negf %379 : vector<2x64xf32>
    %402 = math.exp %401 : vector<2x64xf32>
    %cst_110 = arith.constant 1.000000e+00 : f32
    %403 = vector.broadcast %cst_110 : f32 to vector<2x64xf32>
    %404 = arith.addf %403, %402 : vector<2x64xf32>
    %405 = arith.divf %403, %404 : vector<2x64xf32>
    %406 = math.tanh %389 : vector<2x64xf32>
    %407 = arith.mulf %405, %406 : vector<2x64xf32>
    %408 = arith.addf %400, %407 : vector<2x64xf32>
    %409 = arith.negf %394 : vector<2x64xf32>
    %410 = math.exp %409 : vector<2x64xf32>
    %cst_111 = arith.constant 1.000000e+00 : f32
    %411 = vector.broadcast %cst_111 : f32 to vector<2x64xf32>
    %412 = arith.addf %411, %410 : vector<2x64xf32>
    %413 = arith.divf %411, %412 : vector<2x64xf32>
    %414 = math.tanh %408 : vector<2x64xf32>
    %415 = arith.mulf %413, %414 : vector<2x64xf32>
    %416 = vector.extract_strided_slice %415 {offsets = [0, 0], sizes = [2, 32], strides = [1, 1]} : vector<2x64xf32> to vector<2x32xf32>
    %c12_112 = arith.constant 12 : index
    %c0_113 = arith.constant 0 : index
    %417 = vector.load %arg24[%c12_112, %c0_113] : memref<16x64xf32, #tpu.memory_space<vmem>>, vector<2x32xf32>
    tpu.vector_store %arg24[%c12_112, %c0_113], %416 {strides = array<i32>} : memref<16x64xf32, #tpu.memory_space<vmem>>, vector<2x32xf32>,
    %418 = vector.extract_strided_slice %415 {offsets = [0, 32], sizes = [2, 32], strides = [1, 1]} : vector<2x64xf32> to vector<2x32xf32>
    %c2_114 = arith.constant 2 : index
    %c32_115 = arith.constant 32 : index
    %419 = vector.load %arg24[%c2_114, %c32_115] : memref<16x64xf32, #tpu.memory_space<vmem>>, vector<2x32xf32>
    tpu.vector_store %arg24[%c2_114, %c32_115], %418 {strides = array<i32>} : memref<16x64xf32, #tpu.memory_space<vmem>>, vector<2x32xf32>,
    %420 = vector.extract_strided_slice %91 {offsets = [14, 0], sizes = [2, 64], strides = [1, 1]} : vector<16x64xf32> to vector<2x64xf32>
    %421 = vector.extract_strided_slice %95 {offsets = [0, 0], sizes = [2, 64], strides = [1, 1]} : vector<16x64xf32> to vector<2x64xf32>
    %422 = arith.addf %420, %421 : vector<2x64xf32>
    %cst_116 = arith.constant dense<0.000000e+00> : vector<2x64xf32>
    %423 = tpu.matmul %415, %99, %cst_116 {dimension_numbers = #tpu.dot_dimension_numbers<[1], [0], [0], [1], [0, 0, 1, 1], [], []>} : vector<2x64xf32>, vector<64x64xf32>, vector<2x64xf32> -> vector<2x64xf32>
    %424 = arith.addf %422, %423 : vector<2x64xf32>
    %425 = vector.extract_strided_slice %92 {offsets = [14, 0], sizes = [2, 64], strides = [1, 1]} : vector<16x64xf32> to vector<2x64xf32>
    %426 = vector.extract_strided_slice %96 {offsets = [0, 0], sizes = [2, 64], strides = [1, 1]} : vector<16x64xf32> to vector<2x64xf32>
    %427 = arith.addf %425, %426 : vector<2x64xf32>
    %cst_117 = arith.constant dense<0.000000e+00> : vector<2x64xf32>
    %428 = tpu.matmul %415, %100, %cst_117 {dimension_numbers = #tpu.dot_dimension_numbers<[1], [0], [0], [1], [0, 0, 1, 1], [], []>} : vector<2x64xf32>, vector<64x64xf32>, vector<2x64xf32> -> vector<2x64xf32>
    %429 = arith.addf %427, %428 : vector<2x64xf32>
    %430 = vector.extract_strided_slice %93 {offsets = [14, 0], sizes = [2, 64], strides = [1, 1]} : vector<16x64xf32> to vector<2x64xf32>
    %431 = vector.extract_strided_slice %97 {offsets = [0, 0], sizes = [2, 64], strides = [1, 1]} : vector<16x64xf32> to vector<2x64xf32>
    %432 = arith.addf %430, %431 : vector<2x64xf32>
    %cst_118 = arith.constant dense<0.000000e+00> : vector<2x64xf32>
    %433 = tpu.matmul %415, %101, %cst_118 {dimension_numbers = #tpu.dot_dimension_numbers<[1], [0], [0], [1], [0, 0, 1, 1], [], []>} : vector<2x64xf32>, vector<64x64xf32>, vector<2x64xf32> -> vector<2x64xf32>
    %434 = arith.addf %432, %433 : vector<2x64xf32>
    %435 = vector.extract_strided_slice %94 {offsets = [14, 0], sizes = [2, 64], strides = [1, 1]} : vector<16x64xf32> to vector<2x64xf32>
    %436 = vector.extract_strided_slice %98 {offsets = [0, 0], sizes = [2, 64], strides = [1, 1]} : vector<16x64xf32> to vector<2x64xf32>
    %437 = arith.addf %435, %436 : vector<2x64xf32>
    %cst_119 = arith.constant dense<0.000000e+00> : vector<2x64xf32>
    %438 = tpu.matmul %415, %102, %cst_119 {dimension_numbers = #tpu.dot_dimension_numbers<[1], [0], [0], [1], [0, 0, 1, 1], [], []>} : vector<2x64xf32>, vector<64x64xf32>, vector<2x64xf32> -> vector<2x64xf32>
    %439 = arith.addf %437, %438 : vector<2x64xf32>
    %440 = arith.negf %429 : vector<2x64xf32>
    %441 = math.exp %440 : vector<2x64xf32>
    %cst_120 = arith.constant 1.000000e+00 : f32
    %442 = vector.broadcast %cst_120 : f32 to vector<2x64xf32>
    %443 = arith.addf %442, %441 : vector<2x64xf32>
    %444 = arith.divf %442, %443 : vector<2x64xf32>
    %445 = arith.mulf %444, %408 : vector<2x64xf32>
    %446 = arith.negf %424 : vector<2x64xf32>
    %447 = math.exp %446 : vector<2x64xf32>
    %cst_121 = arith.constant 1.000000e+00 : f32
    %448 = vector.broadcast %cst_121 : f32 to vector<2x64xf32>
    %449 = arith.addf %448, %447 : vector<2x64xf32>
    %450 = arith.divf %448, %449 : vector<2x64xf32>
    %451 = math.tanh %434 : vector<2x64xf32>
    %452 = arith.mulf %450, %451 : vector<2x64xf32>
    %453 = arith.addf %445, %452 : vector<2x64xf32>
    %454 = arith.negf %439 : vector<2x64xf32>
    %455 = math.exp %454 : vector<2x64xf32>
    %cst_122 = arith.constant 1.000000e+00 : f32
    %456 = vector.broadcast %cst_122 : f32 to vector<2x64xf32>
    %457 = arith.addf %456, %455 : vector<2x64xf32>
    %458 = arith.divf %456, %457 : vector<2x64xf32>
    %459 = math.tanh %453 : vector<2x64xf32>
    %460 = arith.mulf %458, %459 : vector<2x64xf32>
    %461 = vector.extract_strided_slice %460 {offsets = [0, 0], sizes = [2, 32], strides = [1, 1]} : vector<2x64xf32> to vector<2x32xf32>
    %c14_123 = arith.constant 14 : index
    %c0_124 = arith.constant 0 : index
    %462 = vector.load %arg24[%c14_123, %c0_124] : memref<16x64xf32, #tpu.memory_space<vmem>>, vector<2x32xf32>
    tpu.vector_store %arg24[%c14_123, %c0_124], %461 {strides = array<i32>} : memref<16x64xf32, #tpu.memory_space<vmem>>, vector<2x32xf32>,
    %463 = vector.extract_strided_slice %460 {offsets = [0, 32], sizes = [2, 32], strides = [1, 1]} : vector<2x64xf32> to vector<2x32xf32>
    %c0_125 = arith.constant 0 : index
    %c32_126 = arith.constant 32 : index
    %464 = vector.load %arg24[%c0_125, %c32_126] : memref<16x64xf32, #tpu.memory_space<vmem>>, vector<2x32xf32>
    tpu.vector_store %arg24[%c0_125, %c32_126], %463 {strides = array<i32>} : memref<16x64xf32, #tpu.memory_space<vmem>>, vector<2x32xf32>,
    %c0_127 = arith.constant 0 : index
    %c0_128 = arith.constant 0 : index
    %465 = vector.load %arg24[%c0_127, %c0_128] : memref<16x64xf32, #tpu.memory_space<vmem>>, vector<16x64xf32>
    %c0_129 = arith.constant 0 : index
    %c0_130 = arith.constant 0 : index
    %466 = vector.load %arg10[%c0_129, %c0_130] : memref<64x256xf32, #tpu.memory_space<vmem>>, vector<64x256xf32>
    %cst_131 = arith.constant dense<0.000000e+00> : vector<16x256xf32>
    %467 = tpu.matmul %465, %466, %cst_131 {dimension_numbers = #tpu.dot_dimension_numbers<[1], [0], [0], [1], [0, 0, 1, 1], [], []>} : vector<16x64xf32>, vector<64x256xf32>, vector<16x256xf32> -> vector<16x256xf32>
    %c0_132 = arith.constant 0 : index
    %c0_133 = arith.constant 0 : index
    %468 = vector.load %arg12[%c0_132, %c0_133] : memref<1x256xf32, #tpu.memory_space<vmem>>, vector<1x256xf32>
    %469 = vector.broadcast %468 : vector<1x256xf32> to vector<16x256xf32>
    %470 = arith.addf %467, %469 : vector<16x256xf32>
    %c0_134 = arith.constant 0 : index
    %c0_135 = arith.constant 0 : index
    %471 = vector.load %arg11[%c0_134, %c0_135] : memref<64x256xf32, #tpu.memory_space<vmem>>, vector<64x256xf32>
    %cst_136 = arith.constant dense<0.000000e+00> : vector<16x256xf32>
    %472 = tpu.matmul %465, %471, %cst_136 {dimension_numbers = #tpu.dot_dimension_numbers<[1], [0], [0], [1], [0, 0, 1, 1], [], []>} : vector<16x64xf32>, vector<64x256xf32>, vector<16x256xf32> -> vector<16x256xf32>
    %473 = vector.extract_strided_slice %470 {offsets = [0, 0], sizes = [16, 64], strides = [1, 1]} : vector<16x256xf32> to vector<16x64xf32>
    %474 = vector.extract_strided_slice %470 {offsets = [0, 64], sizes = [16, 64], strides = [1, 1]} : vector<16x256xf32> to vector<16x64xf32>
    %475 = vector.extract_strided_slice %470 {offsets = [0, 128], sizes = [16, 64], strides = [1, 1]} : vector<16x256xf32> to vector<16x64xf32>
    %476 = vector.extract_strided_slice %470 {offsets = [0, 192], sizes = [16, 64], strides = [1, 1]} : vector<16x256xf32> to vector<16x64xf32>
    %477 = vector.extract_strided_slice %472 {offsets = [0, 0], sizes = [16, 64], strides = [1, 1]} : vector<16x256xf32> to vector<16x64xf32>
    %478 = vector.extract_strided_slice %472 {offsets = [0, 64], sizes = [16, 64], strides = [1, 1]} : vector<16x256xf32> to vector<16x64xf32>
    %479 = vector.extract_strided_slice %472 {offsets = [0, 128], sizes = [16, 64], strides = [1, 1]} : vector<16x256xf32> to vector<16x64xf32>
    %480 = vector.extract_strided_slice %472 {offsets = [0, 192], sizes = [16, 64], strides = [1, 1]} : vector<16x256xf32> to vector<16x64xf32>
    %c0_137 = arith.constant 0 : index
    %c0_138 = arith.constant 0 : index
    %481 = vector.load %arg13[%c0_137, %c0_138] : memref<64x64xf32, #tpu.memory_space<vmem>>, vector<64x64xf32>
    %c0_139 = arith.constant 0 : index
    %c0_140 = arith.constant 0 : index
    %482 = vector.load %arg14[%c0_139, %c0_140] : memref<64x64xf32, #tpu.memory_space<vmem>>, vector<64x64xf32>
    %c0_141 = arith.constant 0 : index
    %c0_142 = arith.constant 0 : index
    %483 = vector.load %arg15[%c0_141, %c0_142] : memref<64x64xf32, #tpu.memory_space<vmem>>, vector<64x64xf32>
    %c0_143 = arith.constant 0 : index
    %c0_144 = arith.constant 0 : index
    %484 = vector.load %arg16[%c0_143, %c0_144] : memref<64x64xf32, #tpu.memory_space<vmem>>, vector<64x64xf32>
    %cst_145 = arith.constant 0.000000e+00 : f32
    %485 = vector.broadcast %cst_145 : f32 to vector<2x64xf32>
    %cst_146 = arith.constant 0.000000e+00 : f32
    %486 = vector.broadcast %cst_146 : f32 to vector<2x64xf32>
    %487 = vector.extract_strided_slice %473 {offsets = [0, 0], sizes = [2, 64], strides = [1, 1]} : vector<16x64xf32> to vector<2x64xf32>
    %488 = vector.extract_strided_slice %477 {offsets = [14, 0], sizes = [2, 64], strides = [1, 1]} : vector<16x64xf32> to vector<2x64xf32>
    %489 = arith.addf %487, %488 : vector<2x64xf32>
    %cst_147 = arith.constant dense<0.000000e+00> : vector<2x64xf32>
    %490 = tpu.matmul %485, %481, %cst_147 {dimension_numbers = #tpu.dot_dimension_numbers<[1], [0], [0], [1], [0, 0, 1, 1], [], []>} : vector<2x64xf32>, vector<64x64xf32>, vector<2x64xf32> -> vector<2x64xf32>
    %491 = arith.addf %489, %490 : vector<2x64xf32>
    %492 = vector.extract_strided_slice %474 {offsets = [0, 0], sizes = [2, 64], strides = [1, 1]} : vector<16x64xf32> to vector<2x64xf32>
    %493 = vector.extract_strided_slice %478 {offsets = [14, 0], sizes = [2, 64], strides = [1, 1]} : vector<16x64xf32> to vector<2x64xf32>
    %494 = arith.addf %492, %493 : vector<2x64xf32>
    %cst_148 = arith.constant dense<0.000000e+00> : vector<2x64xf32>
    %495 = tpu.matmul %485, %482, %cst_148 {dimension_numbers = #tpu.dot_dimension_numbers<[1], [0], [0], [1], [0, 0, 1, 1], [], []>} : vector<2x64xf32>, vector<64x64xf32>, vector<2x64xf32> -> vector<2x64xf32>
    %496 = arith.addf %494, %495 : vector<2x64xf32>
    %497 = vector.extract_strided_slice %475 {offsets = [0, 0], sizes = [2, 64], strides = [1, 1]} : vector<16x64xf32> to vector<2x64xf32>
    %498 = vector.extract_strided_slice %479 {offsets = [14, 0], sizes = [2, 64], strides = [1, 1]} : vector<16x64xf32> to vector<2x64xf32>
    %499 = arith.addf %497, %498 : vector<2x64xf32>
    %cst_149 = arith.constant dense<0.000000e+00> : vector<2x64xf32>
    %500 = tpu.matmul %485, %483, %cst_149 {dimension_numbers = #tpu.dot_dimension_numbers<[1], [0], [0], [1], [0, 0, 1, 1], [], []>} : vector<2x64xf32>, vector<64x64xf32>, vector<2x64xf32> -> vector<2x64xf32>
    %501 = arith.addf %499, %500 : vector<2x64xf32>
    %502 = vector.extract_strided_slice %476 {offsets = [0, 0], sizes = [2, 64], strides = [1, 1]} : vector<16x64xf32> to vector<2x64xf32>
    %503 = vector.extract_strided_slice %480 {offsets = [14, 0], sizes = [2, 64], strides = [1, 1]} : vector<16x64xf32> to vector<2x64xf32>
    %504 = arith.addf %502, %503 : vector<2x64xf32>
    %cst_150 = arith.constant dense<0.000000e+00> : vector<2x64xf32>
    %505 = tpu.matmul %485, %484, %cst_150 {dimension_numbers = #tpu.dot_dimension_numbers<[1], [0], [0], [1], [0, 0, 1, 1], [], []>} : vector<2x64xf32>, vector<64x64xf32>, vector<2x64xf32> -> vector<2x64xf32>
    %506 = arith.addf %504, %505 : vector<2x64xf32>
    %507 = arith.negf %496 : vector<2x64xf32>
    %508 = math.exp %507 : vector<2x64xf32>
    %cst_151 = arith.constant 1.000000e+00 : f32
    %509 = vector.broadcast %cst_151 : f32 to vector<2x64xf32>
    %510 = arith.addf %509, %508 : vector<2x64xf32>
    %511 = arith.divf %509, %510 : vector<2x64xf32>
    %512 = arith.mulf %511, %486 : vector<2x64xf32>
    %513 = arith.negf %491 : vector<2x64xf32>
    %514 = math.exp %513 : vector<2x64xf32>
    %cst_152 = arith.constant 1.000000e+00 : f32
    %515 = vector.broadcast %cst_152 : f32 to vector<2x64xf32>
    %516 = arith.addf %515, %514 : vector<2x64xf32>
    %517 = arith.divf %515, %516 : vector<2x64xf32>
    %518 = math.tanh %501 : vector<2x64xf32>
    %519 = arith.mulf %517, %518 : vector<2x64xf32>
    %520 = arith.addf %512, %519 : vector<2x64xf32>
    %521 = arith.negf %506 : vector<2x64xf32>
    %522 = math.exp %521 : vector<2x64xf32>
    %cst_153 = arith.constant 1.000000e+00 : f32
    %523 = vector.broadcast %cst_153 : f32 to vector<2x64xf32>
    %524 = arith.addf %523, %522 : vector<2x64xf32>
    %525 = arith.divf %523, %524 : vector<2x64xf32>
    %526 = math.tanh %520 : vector<2x64xf32>
    %527 = arith.mulf %525, %526 : vector<2x64xf32>
    %528 = vector.extract_strided_slice %527 {offsets = [0, 0], sizes = [2, 32], strides = [1, 1]} : vector<2x64xf32> to vector<2x32xf32>
    %c0_154 = arith.constant 0 : index
    %c0_155 = arith.constant 0 : index
    %c0_156 = arith.constant 0 : index
    %529 = vector.load %arg25[%c0_154, %c0_155, %c0_156] : memref<8x2x64xf32, #tpu.memory_space<vmem>>, vector<1x2x32xf32>
    %530 = vector.shape_cast %529 : vector<1x2x32xf32> to vector<2x32xf32>
    %531 = vector.shape_cast %528 : vector<2x32xf32> to vector<1x2x32xf32>
    tpu.vector_store %arg25[%c0_154, %c0_155, %c0_156], %531 {strides = array<i32>} : memref<8x2x64xf32, #tpu.memory_space<vmem>>, vector<1x2x32xf32>,
    %532 = vector.extract_strided_slice %527 {offsets = [0, 32], sizes = [2, 32], strides = [1, 1]} : vector<2x64xf32> to vector<2x32xf32>
    %c7_157 = arith.constant 7 : index
    %c0_158 = arith.constant 0 : index
    %c32_159 = arith.constant 32 : index
    %533 = vector.load %arg25[%c7_157, %c0_158, %c32_159] : memref<8x2x64xf32, #tpu.memory_space<vmem>>, vector<1x2x32xf32>
    %534 = vector.shape_cast %533 : vector<1x2x32xf32> to vector<2x32xf32>
    %535 = vector.shape_cast %532 : vector<2x32xf32> to vector<1x2x32xf32>
    tpu.vector_store %arg25[%c7_157, %c0_158, %c32_159], %535 {strides = array<i32>} : memref<8x2x64xf32, #tpu.memory_space<vmem>>, vector<1x2x32xf32>,
    %536 = vector.extract_strided_slice %473 {offsets = [2, 0], sizes = [2, 64], strides = [1, 1]} : vector<16x64xf32> to vector<2x64xf32>
    %537 = vector.extract_strided_slice %477 {offsets = [12, 0], sizes = [2, 64], strides = [1, 1]} : vector<16x64xf32> to vector<2x64xf32>
    %538 = arith.addf %536, %537 : vector<2x64xf32>
    %cst_160 = arith.constant dense<0.000000e+00> : vector<2x64xf32>
    %539 = tpu.matmul %527, %481, %cst_160 {dimension_numbers = #tpu.dot_dimension_numbers<[1], [0], [0], [1], [0, 0, 1, 1], [], []>} : vector<2x64xf32>, vector<64x64xf32>, vector<2x64xf32> -> vector<2x64xf32>
    %540 = arith.addf %538, %539 : vector<2x64xf32>
    %541 = vector.extract_strided_slice %474 {offsets = [2, 0], sizes = [2, 64], strides = [1, 1]} : vector<16x64xf32> to vector<2x64xf32>
    %542 = vector.extract_strided_slice %478 {offsets = [12, 0], sizes = [2, 64], strides = [1, 1]} : vector<16x64xf32> to vector<2x64xf32>
    %543 = arith.addf %541, %542 : vector<2x64xf32>
    %cst_161 = arith.constant dense<0.000000e+00> : vector<2x64xf32>
    %544 = tpu.matmul %527, %482, %cst_161 {dimension_numbers = #tpu.dot_dimension_numbers<[1], [0], [0], [1], [0, 0, 1, 1], [], []>} : vector<2x64xf32>, vector<64x64xf32>, vector<2x64xf32> -> vector<2x64xf32>
    %545 = arith.addf %543, %544 : vector<2x64xf32>
    %546 = vector.extract_strided_slice %475 {offsets = [2, 0], sizes = [2, 64], strides = [1, 1]} : vector<16x64xf32> to vector<2x64xf32>
    %547 = vector.extract_strided_slice %479 {offsets = [12, 0], sizes = [2, 64], strides = [1, 1]} : vector<16x64xf32> to vector<2x64xf32>
    %548 = arith.addf %546, %547 : vector<2x64xf32>
    %cst_162 = arith.constant dense<0.000000e+00> : vector<2x64xf32>
    %549 = tpu.matmul %527, %483, %cst_162 {dimension_numbers = #tpu.dot_dimension_numbers<[1], [0], [0], [1], [0, 0, 1, 1], [], []>} : vector<2x64xf32>, vector<64x64xf32>, vector<2x64xf32> -> vector<2x64xf32>
    %550 = arith.addf %548, %549 : vector<2x64xf32>
    %551 = vector.extract_strided_slice %476 {offsets = [2, 0], sizes = [2, 64], strides = [1, 1]} : vector<16x64xf32> to vector<2x64xf32>
    %552 = vector.extract_strided_slice %480 {offsets = [12, 0], sizes = [2, 64], strides = [1, 1]} : vector<16x64xf32> to vector<2x64xf32>
    %553 = arith.addf %551, %552 : vector<2x64xf32>
    %cst_163 = arith.constant dense<0.000000e+00> : vector<2x64xf32>
    %554 = tpu.matmul %527, %484, %cst_163 {dimension_numbers = #tpu.dot_dimension_numbers<[1], [0], [0], [1], [0, 0, 1, 1], [], []>} : vector<2x64xf32>, vector<64x64xf32>, vector<2x64xf32> -> vector<2x64xf32>
    %555 = arith.addf %553, %554 : vector<2x64xf32>
    %556 = arith.negf %545 : vector<2x64xf32>
    %557 = math.exp %556 : vector<2x64xf32>
    %cst_164 = arith.constant 1.000000e+00 : f32
    %558 = vector.broadcast %cst_164 : f32 to vector<2x64xf32>
    %559 = arith.addf %558, %557 : vector<2x64xf32>
    %560 = arith.divf %558, %559 : vector<2x64xf32>
    %561 = arith.mulf %560, %520 : vector<2x64xf32>
    %562 = arith.negf %540 : vector<2x64xf32>
    %563 = math.exp %562 : vector<2x64xf32>
    %cst_165 = arith.constant 1.000000e+00 : f32
    %564 = vector.broadcast %cst_165 : f32 to vector<2x64xf32>
    %565 = arith.addf %564, %563 : vector<2x64xf32>
    %566 = arith.divf %564, %565 : vector<2x64xf32>
    %567 = math.tanh %550 : vector<2x64xf32>
    %568 = arith.mulf %566, %567 : vector<2x64xf32>
    %569 = arith.addf %561, %568 : vector<2x64xf32>
    %570 = arith.negf %555 : vector<2x64xf32>
    %571 = math.exp %570 : vector<2x64xf32>
    %cst_166 = arith.constant 1.000000e+00 : f32
    %572 = vector.broadcast %cst_166 : f32 to vector<2x64xf32>
    %573 = arith.addf %572, %571 : vector<2x64xf32>
    %574 = arith.divf %572, %573 : vector<2x64xf32>
    %575 = math.tanh %569 : vector<2x64xf32>
    %576 = arith.mulf %574, %575 : vector<2x64xf32>
    %577 = vector.extract_strided_slice %576 {offsets = [0, 0], sizes = [2, 32], strides = [1, 1]} : vector<2x64xf32> to vector<2x32xf32>
    %c1_167 = arith.constant 1 : index
    %c0_168 = arith.constant 0 : index
    %c0_169 = arith.constant 0 : index
    %578 = vector.load %arg25[%c1_167, %c0_168, %c0_169] : memref<8x2x64xf32, #tpu.memory_space<vmem>>, vector<1x2x32xf32>
    %579 = vector.shape_cast %578 : vector<1x2x32xf32> to vector<2x32xf32>
    %580 = vector.shape_cast %577 : vector<2x32xf32> to vector<1x2x32xf32>
    tpu.vector_store %arg25[%c1_167, %c0_168, %c0_169], %580 {strides = array<i32>} : memref<8x2x64xf32, #tpu.memory_space<vmem>>, vector<1x2x32xf32>,
    %581 = vector.extract_strided_slice %576 {offsets = [0, 32], sizes = [2, 32], strides = [1, 1]} : vector<2x64xf32> to vector<2x32xf32>
    %c6_170 = arith.constant 6 : index
    %c0_171 = arith.constant 0 : index
    %c32_172 = arith.constant 32 : index
    %582 = vector.load %arg25[%c6_170, %c0_171, %c32_172] : memref<8x2x64xf32, #tpu.memory_space<vmem>>, vector<1x2x32xf32>
    %583 = vector.shape_cast %582 : vector<1x2x32xf32> to vector<2x32xf32>
    %584 = vector.shape_cast %581 : vector<2x32xf32> to vector<1x2x32xf32>
    tpu.vector_store %arg25[%c6_170, %c0_171, %c32_172], %584 {strides = array<i32>} : memref<8x2x64xf32, #tpu.memory_space<vmem>>, vector<1x2x32xf32>,
    %585 = vector.extract_strided_slice %473 {offsets = [4, 0], sizes = [2, 64], strides = [1, 1]} : vector<16x64xf32> to vector<2x64xf32>
    %586 = vector.extract_strided_slice %477 {offsets = [10, 0], sizes = [2, 64], strides = [1, 1]} : vector<16x64xf32> to vector<2x64xf32>
    %587 = arith.addf %585, %586 : vector<2x64xf32>
    %cst_173 = arith.constant dense<0.000000e+00> : vector<2x64xf32>
    %588 = tpu.matmul %576, %481, %cst_173 {dimension_numbers = #tpu.dot_dimension_numbers<[1], [0], [0], [1], [0, 0, 1, 1], [], []>} : vector<2x64xf32>, vector<64x64xf32>, vector<2x64xf32> -> vector<2x64xf32>
    %589 = arith.addf %587, %588 : vector<2x64xf32>
    %590 = vector.extract_strided_slice %474 {offsets = [4, 0], sizes = [2, 64], strides = [1, 1]} : vector<16x64xf32> to vector<2x64xf32>
    %591 = vector.extract_strided_slice %478 {offsets = [10, 0], sizes = [2, 64], strides = [1, 1]} : vector<16x64xf32> to vector<2x64xf32>
    %592 = arith.addf %590, %591 : vector<2x64xf32>
    %cst_174 = arith.constant dense<0.000000e+00> : vector<2x64xf32>
    %593 = tpu.matmul %576, %482, %cst_174 {dimension_numbers = #tpu.dot_dimension_numbers<[1], [0], [0], [1], [0, 0, 1, 1], [], []>} : vector<2x64xf32>, vector<64x64xf32>, vector<2x64xf32> -> vector<2x64xf32>
    %594 = arith.addf %592, %593 : vector<2x64xf32>
    %595 = vector.extract_strided_slice %475 {offsets = [4, 0], sizes = [2, 64], strides = [1, 1]} : vector<16x64xf32> to vector<2x64xf32>
    %596 = vector.extract_strided_slice %479 {offsets = [10, 0], sizes = [2, 64], strides = [1, 1]} : vector<16x64xf32> to vector<2x64xf32>
    %597 = arith.addf %595, %596 : vector<2x64xf32>
    %cst_175 = arith.constant dense<0.000000e+00> : vector<2x64xf32>
    %598 = tpu.matmul %576, %483, %cst_175 {dimension_numbers = #tpu.dot_dimension_numbers<[1], [0], [0], [1], [0, 0, 1, 1], [], []>} : vector<2x64xf32>, vector<64x64xf32>, vector<2x64xf32> -> vector<2x64xf32>
    %599 = arith.addf %597, %598 : vector<2x64xf32>
    %600 = vector.extract_strided_slice %476 {offsets = [4, 0], sizes = [2, 64], strides = [1, 1]} : vector<16x64xf32> to vector<2x64xf32>
    %601 = vector.extract_strided_slice %480 {offsets = [10, 0], sizes = [2, 64], strides = [1, 1]} : vector<16x64xf32> to vector<2x64xf32>
    %602 = arith.addf %600, %601 : vector<2x64xf32>
    %cst_176 = arith.constant dense<0.000000e+00> : vector<2x64xf32>
    %603 = tpu.matmul %576, %484, %cst_176 {dimension_numbers = #tpu.dot_dimension_numbers<[1], [0], [0], [1], [0, 0, 1, 1], [], []>} : vector<2x64xf32>, vector<64x64xf32>, vector<2x64xf32> -> vector<2x64xf32>
    %604 = arith.addf %602, %603 : vector<2x64xf32>
    %605 = arith.negf %594 : vector<2x64xf32>
    %606 = math.exp %605 : vector<2x64xf32>
    %cst_177 = arith.constant 1.000000e+00 : f32
    %607 = vector.broadcast %cst_177 : f32 to vector<2x64xf32>
    %608 = arith.addf %607, %606 : vector<2x64xf32>
    %609 = arith.divf %607, %608 : vector<2x64xf32>
    %610 = arith.mulf %609, %569 : vector<2x64xf32>
    %611 = arith.negf %589 : vector<2x64xf32>
    %612 = math.exp %611 : vector<2x64xf32>
    %cst_178 = arith.constant 1.000000e+00 : f32
    %613 = vector.broadcast %cst_178 : f32 to vector<2x64xf32>
    %614 = arith.addf %613, %612 : vector<2x64xf32>
    %615 = arith.divf %613, %614 : vector<2x64xf32>
    %616 = math.tanh %599 : vector<2x64xf32>
    %617 = arith.mulf %615, %616 : vector<2x64xf32>
    %618 = arith.addf %610, %617 : vector<2x64xf32>
    %619 = arith.negf %604 : vector<2x64xf32>
    %620 = math.exp %619 : vector<2x64xf32>
    %cst_179 = arith.constant 1.000000e+00 : f32
    %621 = vector.broadcast %cst_179 : f32 to vector<2x64xf32>
    %622 = arith.addf %621, %620 : vector<2x64xf32>
    %623 = arith.divf %621, %622 : vector<2x64xf32>
    %624 = math.tanh %618 : vector<2x64xf32>
    %625 = arith.mulf %623, %624 : vector<2x64xf32>
    %626 = vector.extract_strided_slice %625 {offsets = [0, 0], sizes = [2, 32], strides = [1, 1]} : vector<2x64xf32> to vector<2x32xf32>
    %c2_180 = arith.constant 2 : index
    %c0_181 = arith.constant 0 : index
    %c0_182 = arith.constant 0 : index
    %627 = vector.load %arg25[%c2_180, %c0_181, %c0_182] : memref<8x2x64xf32, #tpu.memory_space<vmem>>, vector<1x2x32xf32>
    %628 = vector.shape_cast %627 : vector<1x2x32xf32> to vector<2x32xf32>
    %629 = vector.shape_cast %626 : vector<2x32xf32> to vector<1x2x32xf32>
    tpu.vector_store %arg25[%c2_180, %c0_181, %c0_182], %629 {strides = array<i32>} : memref<8x2x64xf32, #tpu.memory_space<vmem>>, vector<1x2x32xf32>,
    %630 = vector.extract_strided_slice %625 {offsets = [0, 32], sizes = [2, 32], strides = [1, 1]} : vector<2x64xf32> to vector<2x32xf32>
    %c5_183 = arith.constant 5 : index
    %c0_184 = arith.constant 0 : index
    %c32_185 = arith.constant 32 : index
    %631 = vector.load %arg25[%c5_183, %c0_184, %c32_185] : memref<8x2x64xf32, #tpu.memory_space<vmem>>, vector<1x2x32xf32>
    %632 = vector.shape_cast %631 : vector<1x2x32xf32> to vector<2x32xf32>
    %633 = vector.shape_cast %630 : vector<2x32xf32> to vector<1x2x32xf32>
    tpu.vector_store %arg25[%c5_183, %c0_184, %c32_185], %633 {strides = array<i32>} : memref<8x2x64xf32, #tpu.memory_space<vmem>>, vector<1x2x32xf32>,
    %634 = vector.extract_strided_slice %473 {offsets = [6, 0], sizes = [2, 64], strides = [1, 1]} : vector<16x64xf32> to vector<2x64xf32>
    %635 = vector.extract_strided_slice %477 {offsets = [8, 0], sizes = [2, 64], strides = [1, 1]} : vector<16x64xf32> to vector<2x64xf32>
    %636 = arith.addf %634, %635 : vector<2x64xf32>
    %cst_186 = arith.constant dense<0.000000e+00> : vector<2x64xf32>
    %637 = tpu.matmul %625, %481, %cst_186 {dimension_numbers = #tpu.dot_dimension_numbers<[1], [0], [0], [1], [0, 0, 1, 1], [], []>} : vector<2x64xf32>, vector<64x64xf32>, vector<2x64xf32> -> vector<2x64xf32>
    %638 = arith.addf %636, %637 : vector<2x64xf32>
    %639 = vector.extract_strided_slice %474 {offsets = [6, 0], sizes = [2, 64], strides = [1, 1]} : vector<16x64xf32> to vector<2x64xf32>
    %640 = vector.extract_strided_slice %478 {offsets = [8, 0], sizes = [2, 64], strides = [1, 1]} : vector<16x64xf32> to vector<2x64xf32>
    %641 = arith.addf %639, %640 : vector<2x64xf32>
    %cst_187 = arith.constant dense<0.000000e+00> : vector<2x64xf32>
    %642 = tpu.matmul %625, %482, %cst_187 {dimension_numbers = #tpu.dot_dimension_numbers<[1], [0], [0], [1], [0, 0, 1, 1], [], []>} : vector<2x64xf32>, vector<64x64xf32>, vector<2x64xf32> -> vector<2x64xf32>
    %643 = arith.addf %641, %642 : vector<2x64xf32>
    %644 = vector.extract_strided_slice %475 {offsets = [6, 0], sizes = [2, 64], strides = [1, 1]} : vector<16x64xf32> to vector<2x64xf32>
    %645 = vector.extract_strided_slice %479 {offsets = [8, 0], sizes = [2, 64], strides = [1, 1]} : vector<16x64xf32> to vector<2x64xf32>
    %646 = arith.addf %644, %645 : vector<2x64xf32>
    %cst_188 = arith.constant dense<0.000000e+00> : vector<2x64xf32>
    %647 = tpu.matmul %625, %483, %cst_188 {dimension_numbers = #tpu.dot_dimension_numbers<[1], [0], [0], [1], [0, 0, 1, 1], [], []>} : vector<2x64xf32>, vector<64x64xf32>, vector<2x64xf32> -> vector<2x64xf32>
    %648 = arith.addf %646, %647 : vector<2x64xf32>
    %649 = vector.extract_strided_slice %476 {offsets = [6, 0], sizes = [2, 64], strides = [1, 1]} : vector<16x64xf32> to vector<2x64xf32>
    %650 = vector.extract_strided_slice %480 {offsets = [8, 0], sizes = [2, 64], strides = [1, 1]} : vector<16x64xf32> to vector<2x64xf32>
    %651 = arith.addf %649, %650 : vector<2x64xf32>
    %cst_189 = arith.constant dense<0.000000e+00> : vector<2x64xf32>
    %652 = tpu.matmul %625, %484, %cst_189 {dimension_numbers = #tpu.dot_dimension_numbers<[1], [0], [0], [1], [0, 0, 1, 1], [], []>} : vector<2x64xf32>, vector<64x64xf32>, vector<2x64xf32> -> vector<2x64xf32>
    %653 = arith.addf %651, %652 : vector<2x64xf32>
    %654 = arith.negf %643 : vector<2x64xf32>
    %655 = math.exp %654 : vector<2x64xf32>
    %cst_190 = arith.constant 1.000000e+00 : f32
    %656 = vector.broadcast %cst_190 : f32 to vector<2x64xf32>
    %657 = arith.addf %656, %655 : vector<2x64xf32>
    %658 = arith.divf %656, %657 : vector<2x64xf32>
    %659 = arith.mulf %658, %618 : vector<2x64xf32>
    %660 = arith.negf %638 : vector<2x64xf32>
    %661 = math.exp %660 : vector<2x64xf32>
    %cst_191 = arith.constant 1.000000e+00 : f32
    %662 = vector.broadcast %cst_191 : f32 to vector<2x64xf32>
    %663 = arith.addf %662, %661 : vector<2x64xf32>
    %664 = arith.divf %662, %663 : vector<2x64xf32>
    %665 = math.tanh %648 : vector<2x64xf32>
    %666 = arith.mulf %664, %665 : vector<2x64xf32>
    %667 = arith.addf %659, %666 : vector<2x64xf32>
    %668 = arith.negf %653 : vector<2x64xf32>
    %669 = math.exp %668 : vector<2x64xf32>
    %cst_192 = arith.constant 1.000000e+00 : f32
    %670 = vector.broadcast %cst_192 : f32 to vector<2x64xf32>
    %671 = arith.addf %670, %669 : vector<2x64xf32>
    %672 = arith.divf %670, %671 : vector<2x64xf32>
    %673 = math.tanh %667 : vector<2x64xf32>
    %674 = arith.mulf %672, %673 : vector<2x64xf32>
    %675 = vector.extract_strided_slice %674 {offsets = [0, 0], sizes = [2, 32], strides = [1, 1]} : vector<2x64xf32> to vector<2x32xf32>
    %c3_193 = arith.constant 3 : index
    %c0_194 = arith.constant 0 : index
    %c0_195 = arith.constant 0 : index
    %676 = vector.load %arg25[%c3_193, %c0_194, %c0_195] : memref<8x2x64xf32, #tpu.memory_space<vmem>>, vector<1x2x32xf32>
    %677 = vector.shape_cast %676 : vector<1x2x32xf32> to vector<2x32xf32>
    %678 = vector.shape_cast %675 : vector<2x32xf32> to vector<1x2x32xf32>
    tpu.vector_store %arg25[%c3_193, %c0_194, %c0_195], %678 {strides = array<i32>} : memref<8x2x64xf32, #tpu.memory_space<vmem>>, vector<1x2x32xf32>,
    %679 = vector.extract_strided_slice %674 {offsets = [0, 32], sizes = [2, 32], strides = [1, 1]} : vector<2x64xf32> to vector<2x32xf32>
    %c4_196 = arith.constant 4 : index
    %c0_197 = arith.constant 0 : index
    %c32_198 = arith.constant 32 : index
    %680 = vector.load %arg25[%c4_196, %c0_197, %c32_198] : memref<8x2x64xf32, #tpu.memory_space<vmem>>, vector<1x2x32xf32>
    %681 = vector.shape_cast %680 : vector<1x2x32xf32> to vector<2x32xf32>
    %682 = vector.shape_cast %679 : vector<2x32xf32> to vector<1x2x32xf32>
    tpu.vector_store %arg25[%c4_196, %c0_197, %c32_198], %682 {strides = array<i32>} : memref<8x2x64xf32, #tpu.memory_space<vmem>>, vector<1x2x32xf32>,
    %683 = vector.extract_strided_slice %473 {offsets = [8, 0], sizes = [2, 64], strides = [1, 1]} : vector<16x64xf32> to vector<2x64xf32>
    %684 = vector.extract_strided_slice %477 {offsets = [6, 0], sizes = [2, 64], strides = [1, 1]} : vector<16x64xf32> to vector<2x64xf32>
    %685 = arith.addf %683, %684 : vector<2x64xf32>
    %cst_199 = arith.constant dense<0.000000e+00> : vector<2x64xf32>
    %686 = tpu.matmul %674, %481, %cst_199 {dimension_numbers = #tpu.dot_dimension_numbers<[1], [0], [0], [1], [0, 0, 1, 1], [], []>} : vector<2x64xf32>, vector<64x64xf32>, vector<2x64xf32> -> vector<2x64xf32>
    %687 = arith.addf %685, %686 : vector<2x64xf32>
    %688 = vector.extract_strided_slice %474 {offsets = [8, 0], sizes = [2, 64], strides = [1, 1]} : vector<16x64xf32> to vector<2x64xf32>
    %689 = vector.extract_strided_slice %478 {offsets = [6, 0], sizes = [2, 64], strides = [1, 1]} : vector<16x64xf32> to vector<2x64xf32>
    %690 = arith.addf %688, %689 : vector<2x64xf32>
    %cst_200 = arith.constant dense<0.000000e+00> : vector<2x64xf32>
    %691 = tpu.matmul %674, %482, %cst_200 {dimension_numbers = #tpu.dot_dimension_numbers<[1], [0], [0], [1], [0, 0, 1, 1], [], []>} : vector<2x64xf32>, vector<64x64xf32>, vector<2x64xf32> -> vector<2x64xf32>
    %692 = arith.addf %690, %691 : vector<2x64xf32>
    %693 = vector.extract_strided_slice %475 {offsets = [8, 0], sizes = [2, 64], strides = [1, 1]} : vector<16x64xf32> to vector<2x64xf32>
    %694 = vector.extract_strided_slice %479 {offsets = [6, 0], sizes = [2, 64], strides = [1, 1]} : vector<16x64xf32> to vector<2x64xf32>
    %695 = arith.addf %693, %694 : vector<2x64xf32>
    %cst_201 = arith.constant dense<0.000000e+00> : vector<2x64xf32>
    %696 = tpu.matmul %674, %483, %cst_201 {dimension_numbers = #tpu.dot_dimension_numbers<[1], [0], [0], [1], [0, 0, 1, 1], [], []>} : vector<2x64xf32>, vector<64x64xf32>, vector<2x64xf32> -> vector<2x64xf32>
    %697 = arith.addf %695, %696 : vector<2x64xf32>
    %698 = vector.extract_strided_slice %476 {offsets = [8, 0], sizes = [2, 64], strides = [1, 1]} : vector<16x64xf32> to vector<2x64xf32>
    %699 = vector.extract_strided_slice %480 {offsets = [6, 0], sizes = [2, 64], strides = [1, 1]} : vector<16x64xf32> to vector<2x64xf32>
    %700 = arith.addf %698, %699 : vector<2x64xf32>
    %cst_202 = arith.constant dense<0.000000e+00> : vector<2x64xf32>
    %701 = tpu.matmul %674, %484, %cst_202 {dimension_numbers = #tpu.dot_dimension_numbers<[1], [0], [0], [1], [0, 0, 1, 1], [], []>} : vector<2x64xf32>, vector<64x64xf32>, vector<2x64xf32> -> vector<2x64xf32>
    %702 = arith.addf %700, %701 : vector<2x64xf32>
    %703 = arith.negf %692 : vector<2x64xf32>
    %704 = math.exp %703 : vector<2x64xf32>
    %cst_203 = arith.constant 1.000000e+00 : f32
    %705 = vector.broadcast %cst_203 : f32 to vector<2x64xf32>
    %706 = arith.addf %705, %704 : vector<2x64xf32>
    %707 = arith.divf %705, %706 : vector<2x64xf32>
    %708 = arith.mulf %707, %667 : vector<2x64xf32>
    %709 = arith.negf %687 : vector<2x64xf32>
    %710 = math.exp %709 : vector<2x64xf32>
    %cst_204 = arith.constant 1.000000e+00 : f32
    %711 = vector.broadcast %cst_204 : f32 to vector<2x64xf32>
    %712 = arith.addf %711, %710 : vector<2x64xf32>
    %713 = arith.divf %711, %712 : vector<2x64xf32>
    %714 = math.tanh %697 : vector<2x64xf32>
    %715 = arith.mulf %713, %714 : vector<2x64xf32>
    %716 = arith.addf %708, %715 : vector<2x64xf32>
    %717 = arith.negf %702 : vector<2x64xf32>
    %718 = math.exp %717 : vector<2x64xf32>
    %cst_205 = arith.constant 1.000000e+00 : f32
    %719 = vector.broadcast %cst_205 : f32 to vector<2x64xf32>
    %720 = arith.addf %719, %718 : vector<2x64xf32>
    %721 = arith.divf %719, %720 : vector<2x64xf32>
    %722 = math.tanh %716 : vector<2x64xf32>
    %723 = arith.mulf %721, %722 : vector<2x64xf32>
    %724 = vector.extract_strided_slice %723 {offsets = [0, 0], sizes = [2, 32], strides = [1, 1]} : vector<2x64xf32> to vector<2x32xf32>
    %c4_206 = arith.constant 4 : index
    %c0_207 = arith.constant 0 : index
    %c0_208 = arith.constant 0 : index
    %725 = vector.load %arg25[%c4_206, %c0_207, %c0_208] : memref<8x2x64xf32, #tpu.memory_space<vmem>>, vector<1x2x32xf32>
    %726 = vector.shape_cast %725 : vector<1x2x32xf32> to vector<2x32xf32>
    %727 = vector.shape_cast %724 : vector<2x32xf32> to vector<1x2x32xf32>
    tpu.vector_store %arg25[%c4_206, %c0_207, %c0_208], %727 {strides = array<i32>} : memref<8x2x64xf32, #tpu.memory_space<vmem>>, vector<1x2x32xf32>,
    %728 = vector.extract_strided_slice %723 {offsets = [0, 32], sizes = [2, 32], strides = [1, 1]} : vector<2x64xf32> to vector<2x32xf32>
    %c3_209 = arith.constant 3 : index
    %c0_210 = arith.constant 0 : index
    %c32_211 = arith.constant 32 : index
    %729 = vector.load %arg25[%c3_209, %c0_210, %c32_211] : memref<8x2x64xf32, #tpu.memory_space<vmem>>, vector<1x2x32xf32>
    %730 = vector.shape_cast %729 : vector<1x2x32xf32> to vector<2x32xf32>
    %731 = vector.shape_cast %728 : vector<2x32xf32> to vector<1x2x32xf32>
    tpu.vector_store %arg25[%c3_209, %c0_210, %c32_211], %731 {strides = array<i32>} : memref<8x2x64xf32, #tpu.memory_space<vmem>>, vector<1x2x32xf32>,
    %732 = vector.extract_strided_slice %473 {offsets = [10, 0], sizes = [2, 64], strides = [1, 1]} : vector<16x64xf32> to vector<2x64xf32>
    %733 = vector.extract_strided_slice %477 {offsets = [4, 0], sizes = [2, 64], strides = [1, 1]} : vector<16x64xf32> to vector<2x64xf32>
    %734 = arith.addf %732, %733 : vector<2x64xf32>
    %cst_212 = arith.constant dense<0.000000e+00> : vector<2x64xf32>
    %735 = tpu.matmul %723, %481, %cst_212 {dimension_numbers = #tpu.dot_dimension_numbers<[1], [0], [0], [1], [0, 0, 1, 1], [], []>} : vector<2x64xf32>, vector<64x64xf32>, vector<2x64xf32> -> vector<2x64xf32>
    %736 = arith.addf %734, %735 : vector<2x64xf32>
    %737 = vector.extract_strided_slice %474 {offsets = [10, 0], sizes = [2, 64], strides = [1, 1]} : vector<16x64xf32> to vector<2x64xf32>
    %738 = vector.extract_strided_slice %478 {offsets = [4, 0], sizes = [2, 64], strides = [1, 1]} : vector<16x64xf32> to vector<2x64xf32>
    %739 = arith.addf %737, %738 : vector<2x64xf32>
    %cst_213 = arith.constant dense<0.000000e+00> : vector<2x64xf32>
    %740 = tpu.matmul %723, %482, %cst_213 {dimension_numbers = #tpu.dot_dimension_numbers<[1], [0], [0], [1], [0, 0, 1, 1], [], []>} : vector<2x64xf32>, vector<64x64xf32>, vector<2x64xf32> -> vector<2x64xf32>
    %741 = arith.addf %739, %740 : vector<2x64xf32>
    %742 = vector.extract_strided_slice %475 {offsets = [10, 0], sizes = [2, 64], strides = [1, 1]} : vector<16x64xf32> to vector<2x64xf32>
    %743 = vector.extract_strided_slice %479 {offsets = [4, 0], sizes = [2, 64], strides = [1, 1]} : vector<16x64xf32> to vector<2x64xf32>
    %744 = arith.addf %742, %743 : vector<2x64xf32>
    %cst_214 = arith.constant dense<0.000000e+00> : vector<2x64xf32>
    %745 = tpu.matmul %723, %483, %cst_214 {dimension_numbers = #tpu.dot_dimension_numbers<[1], [0], [0], [1], [0, 0, 1, 1], [], []>} : vector<2x64xf32>, vector<64x64xf32>, vector<2x64xf32> -> vector<2x64xf32>
    %746 = arith.addf %744, %745 : vector<2x64xf32>
    %747 = vector.extract_strided_slice %476 {offsets = [10, 0], sizes = [2, 64], strides = [1, 1]} : vector<16x64xf32> to vector<2x64xf32>
    %748 = vector.extract_strided_slice %480 {offsets = [4, 0], sizes = [2, 64], strides = [1, 1]} : vector<16x64xf32> to vector<2x64xf32>
    %749 = arith.addf %747, %748 : vector<2x64xf32>
    %cst_215 = arith.constant dense<0.000000e+00> : vector<2x64xf32>
    %750 = tpu.matmul %723, %484, %cst_215 {dimension_numbers = #tpu.dot_dimension_numbers<[1], [0], [0], [1], [0, 0, 1, 1], [], []>} : vector<2x64xf32>, vector<64x64xf32>, vector<2x64xf32> -> vector<2x64xf32>
    %751 = arith.addf %749, %750 : vector<2x64xf32>
    %752 = arith.negf %741 : vector<2x64xf32>
    %753 = math.exp %752 : vector<2x64xf32>
    %cst_216 = arith.constant 1.000000e+00 : f32
    %754 = vector.broadcast %cst_216 : f32 to vector<2x64xf32>
    %755 = arith.addf %754, %753 : vector<2x64xf32>
    %756 = arith.divf %754, %755 : vector<2x64xf32>
    %757 = arith.mulf %756, %716 : vector<2x64xf32>
    %758 = arith.negf %736 : vector<2x64xf32>
    %759 = math.exp %758 : vector<2x64xf32>
    %cst_217 = arith.constant 1.000000e+00 : f32
    %760 = vector.broadcast %cst_217 : f32 to vector<2x64xf32>
    %761 = arith.addf %760, %759 : vector<2x64xf32>
    %762 = arith.divf %760, %761 : vector<2x64xf32>
    %763 = math.tanh %746 : vector<2x64xf32>
    %764 = arith.mulf %762, %763 : vector<2x64xf32>
    %765 = arith.addf %757, %764 : vector<2x64xf32>
    %766 = arith.negf %751 : vector<2x64xf32>
    %767 = math.exp %766 : vector<2x64xf32>
    %cst_218 = arith.constant 1.000000e+00 : f32
    %768 = vector.broadcast %cst_218 : f32 to vector<2x64xf32>
    %769 = arith.addf %768, %767 : vector<2x64xf32>
    %770 = arith.divf %768, %769 : vector<2x64xf32>
    %771 = math.tanh %765 : vector<2x64xf32>
    %772 = arith.mulf %770, %771 : vector<2x64xf32>
    %773 = vector.extract_strided_slice %772 {offsets = [0, 0], sizes = [2, 32], strides = [1, 1]} : vector<2x64xf32> to vector<2x32xf32>
    %c5_219 = arith.constant 5 : index
    %c0_220 = arith.constant 0 : index
    %c0_221 = arith.constant 0 : index
    %774 = vector.load %arg25[%c5_219, %c0_220, %c0_221] : memref<8x2x64xf32, #tpu.memory_space<vmem>>, vector<1x2x32xf32>
    %775 = vector.shape_cast %774 : vector<1x2x32xf32> to vector<2x32xf32>
    %776 = vector.shape_cast %773 : vector<2x32xf32> to vector<1x2x32xf32>
    tpu.vector_store %arg25[%c5_219, %c0_220, %c0_221], %776 {strides = array<i32>} : memref<8x2x64xf32, #tpu.memory_space<vmem>>, vector<1x2x32xf32>,
    %777 = vector.extract_strided_slice %772 {offsets = [0, 32], sizes = [2, 32], strides = [1, 1]} : vector<2x64xf32> to vector<2x32xf32>
    %c2_222 = arith.constant 2 : index
    %c0_223 = arith.constant 0 : index
    %c32_224 = arith.constant 32 : index
    %778 = vector.load %arg25[%c2_222, %c0_223, %c32_224] : memref<8x2x64xf32, #tpu.memory_space<vmem>>, vector<1x2x32xf32>
    %779 = vector.shape_cast %778 : vector<1x2x32xf32> to vector<2x32xf32>
    %780 = vector.shape_cast %777 : vector<2x32xf32> to vector<1x2x32xf32>
    tpu.vector_store %arg25[%c2_222, %c0_223, %c32_224], %780 {strides = array<i32>} : memref<8x2x64xf32, #tpu.memory_space<vmem>>, vector<1x2x32xf32>,
    %781 = vector.extract_strided_slice %473 {offsets = [12, 0], sizes = [2, 64], strides = [1, 1]} : vector<16x64xf32> to vector<2x64xf32>
    %782 = vector.extract_strided_slice %477 {offsets = [2, 0], sizes = [2, 64], strides = [1, 1]} : vector<16x64xf32> to vector<2x64xf32>
    %783 = arith.addf %781, %782 : vector<2x64xf32>
    %cst_225 = arith.constant dense<0.000000e+00> : vector<2x64xf32>
    %784 = tpu.matmul %772, %481, %cst_225 {dimension_numbers = #tpu.dot_dimension_numbers<[1], [0], [0], [1], [0, 0, 1, 1], [], []>} : vector<2x64xf32>, vector<64x64xf32>, vector<2x64xf32> -> vector<2x64xf32>
    %785 = arith.addf %783, %784 : vector<2x64xf32>
    %786 = vector.extract_strided_slice %474 {offsets = [12, 0], sizes = [2, 64], strides = [1, 1]} : vector<16x64xf32> to vector<2x64xf32>
    %787 = vector.extract_strided_slice %478 {offsets = [2, 0], sizes = [2, 64], strides = [1, 1]} : vector<16x64xf32> to vector<2x64xf32>
    %788 = arith.addf %786, %787 : vector<2x64xf32>
    %cst_226 = arith.constant dense<0.000000e+00> : vector<2x64xf32>
    %789 = tpu.matmul %772, %482, %cst_226 {dimension_numbers = #tpu.dot_dimension_numbers<[1], [0], [0], [1], [0, 0, 1, 1], [], []>} : vector<2x64xf32>, vector<64x64xf32>, vector<2x64xf32> -> vector<2x64xf32>
    %790 = arith.addf %788, %789 : vector<2x64xf32>
    %791 = vector.extract_strided_slice %475 {offsets = [12, 0], sizes = [2, 64], strides = [1, 1]} : vector<16x64xf32> to vector<2x64xf32>
    %792 = vector.extract_strided_slice %479 {offsets = [2, 0], sizes = [2, 64], strides = [1, 1]} : vector<16x64xf32> to vector<2x64xf32>
    %793 = arith.addf %791, %792 : vector<2x64xf32>
    %cst_227 = arith.constant dense<0.000000e+00> : vector<2x64xf32>
    %794 = tpu.matmul %772, %483, %cst_227 {dimension_numbers = #tpu.dot_dimension_numbers<[1], [0], [0], [1], [0, 0, 1, 1], [], []>} : vector<2x64xf32>, vector<64x64xf32>, vector<2x64xf32> -> vector<2x64xf32>
    %795 = arith.addf %793, %794 : vector<2x64xf32>
    %796 = vector.extract_strided_slice %476 {offsets = [12, 0], sizes = [2, 64], strides = [1, 1]} : vector<16x64xf32> to vector<2x64xf32>
    %797 = vector.extract_strided_slice %480 {offsets = [2, 0], sizes = [2, 64], strides = [1, 1]} : vector<16x64xf32> to vector<2x64xf32>
    %798 = arith.addf %796, %797 : vector<2x64xf32>
    %cst_228 = arith.constant dense<0.000000e+00> : vector<2x64xf32>
    %799 = tpu.matmul %772, %484, %cst_228 {dimension_numbers = #tpu.dot_dimension_numbers<[1], [0], [0], [1], [0, 0, 1, 1], [], []>} : vector<2x64xf32>, vector<64x64xf32>, vector<2x64xf32> -> vector<2x64xf32>
    %800 = arith.addf %798, %799 : vector<2x64xf32>
    %801 = arith.negf %790 : vector<2x64xf32>
    %802 = math.exp %801 : vector<2x64xf32>
    %cst_229 = arith.constant 1.000000e+00 : f32
    %803 = vector.broadcast %cst_229 : f32 to vector<2x64xf32>
    %804 = arith.addf %803, %802 : vector<2x64xf32>
    %805 = arith.divf %803, %804 : vector<2x64xf32>
    %806 = arith.mulf %805, %765 : vector<2x64xf32>
    %807 = arith.negf %785 : vector<2x64xf32>
    %808 = math.exp %807 : vector<2x64xf32>
    %cst_230 = arith.constant 1.000000e+00 : f32
    %809 = vector.broadcast %cst_230 : f32 to vector<2x64xf32>
    %810 = arith.addf %809, %808 : vector<2x64xf32>
    %811 = arith.divf %809, %810 : vector<2x64xf32>
    %812 = math.tanh %795 : vector<2x64xf32>
    %813 = arith.mulf %811, %812 : vector<2x64xf32>
    %814 = arith.addf %806, %813 : vector<2x64xf32>
    %815 = arith.negf %800 : vector<2x64xf32>
    %816 = math.exp %815 : vector<2x64xf32>
    %cst_231 = arith.constant 1.000000e+00 : f32
    %817 = vector.broadcast %cst_231 : f32 to vector<2x64xf32>
    %818 = arith.addf %817, %816 : vector<2x64xf32>
    %819 = arith.divf %817, %818 : vector<2x64xf32>
    %820 = math.tanh %814 : vector<2x64xf32>
    %821 = arith.mulf %819, %820 : vector<2x64xf32>
    %822 = vector.extract_strided_slice %821 {offsets = [0, 0], sizes = [2, 32], strides = [1, 1]} : vector<2x64xf32> to vector<2x32xf32>
    %c6_232 = arith.constant 6 : index
    %c0_233 = arith.constant 0 : index
    %c0_234 = arith.constant 0 : index
    %823 = vector.load %arg25[%c6_232, %c0_233, %c0_234] : memref<8x2x64xf32, #tpu.memory_space<vmem>>, vector<1x2x32xf32>
    %824 = vector.shape_cast %823 : vector<1x2x32xf32> to vector<2x32xf32>
    %825 = vector.shape_cast %822 : vector<2x32xf32> to vector<1x2x32xf32>
    tpu.vector_store %arg25[%c6_232, %c0_233, %c0_234], %825 {strides = array<i32>} : memref<8x2x64xf32, #tpu.memory_space<vmem>>, vector<1x2x32xf32>,
    %826 = vector.extract_strided_slice %821 {offsets = [0, 32], sizes = [2, 32], strides = [1, 1]} : vector<2x64xf32> to vector<2x32xf32>
    %c1_235 = arith.constant 1 : index
    %c0_236 = arith.constant 0 : index
    %c32_237 = arith.constant 32 : index
    %827 = vector.load %arg25[%c1_235, %c0_236, %c32_237] : memref<8x2x64xf32, #tpu.memory_space<vmem>>, vector<1x2x32xf32>
    %828 = vector.shape_cast %827 : vector<1x2x32xf32> to vector<2x32xf32>
    %829 = vector.shape_cast %826 : vector<2x32xf32> to vector<1x2x32xf32>
    tpu.vector_store %arg25[%c1_235, %c0_236, %c32_237], %829 {strides = array<i32>} : memref<8x2x64xf32, #tpu.memory_space<vmem>>, vector<1x2x32xf32>,
    %830 = vector.extract_strided_slice %473 {offsets = [14, 0], sizes = [2, 64], strides = [1, 1]} : vector<16x64xf32> to vector<2x64xf32>
    %831 = vector.extract_strided_slice %477 {offsets = [0, 0], sizes = [2, 64], strides = [1, 1]} : vector<16x64xf32> to vector<2x64xf32>
    %832 = arith.addf %830, %831 : vector<2x64xf32>
    %cst_238 = arith.constant dense<0.000000e+00> : vector<2x64xf32>
    %833 = tpu.matmul %821, %481, %cst_238 {dimension_numbers = #tpu.dot_dimension_numbers<[1], [0], [0], [1], [0, 0, 1, 1], [], []>} : vector<2x64xf32>, vector<64x64xf32>, vector<2x64xf32> -> vector<2x64xf32>
    %834 = arith.addf %832, %833 : vector<2x64xf32>
    %835 = vector.extract_strided_slice %474 {offsets = [14, 0], sizes = [2, 64], strides = [1, 1]} : vector<16x64xf32> to vector<2x64xf32>
    %836 = vector.extract_strided_slice %478 {offsets = [0, 0], sizes = [2, 64], strides = [1, 1]} : vector<16x64xf32> to vector<2x64xf32>
    %837 = arith.addf %835, %836 : vector<2x64xf32>
    %cst_239 = arith.constant dense<0.000000e+00> : vector<2x64xf32>
    %838 = tpu.matmul %821, %482, %cst_239 {dimension_numbers = #tpu.dot_dimension_numbers<[1], [0], [0], [1], [0, 0, 1, 1], [], []>} : vector<2x64xf32>, vector<64x64xf32>, vector<2x64xf32> -> vector<2x64xf32>
    %839 = arith.addf %837, %838 : vector<2x64xf32>
    %840 = vector.extract_strided_slice %475 {offsets = [14, 0], sizes = [2, 64], strides = [1, 1]} : vector<16x64xf32> to vector<2x64xf32>
    %841 = vector.extract_strided_slice %479 {offsets = [0, 0], sizes = [2, 64], strides = [1, 1]} : vector<16x64xf32> to vector<2x64xf32>
    %842 = arith.addf %840, %841 : vector<2x64xf32>
    %cst_240 = arith.constant dense<0.000000e+00> : vector<2x64xf32>
    %843 = tpu.matmul %821, %483, %cst_240 {dimension_numbers = #tpu.dot_dimension_numbers<[1], [0], [0], [1], [0, 0, 1, 1], [], []>} : vector<2x64xf32>, vector<64x64xf32>, vector<2x64xf32> -> vector<2x64xf32>
    %844 = arith.addf %842, %843 : vector<2x64xf32>
    %845 = vector.extract_strided_slice %476 {offsets = [14, 0], sizes = [2, 64], strides = [1, 1]} : vector<16x64xf32> to vector<2x64xf32>
    %846 = vector.extract_strided_slice %480 {offsets = [0, 0], sizes = [2, 64], strides = [1, 1]} : vector<16x64xf32> to vector<2x64xf32>
    %847 = arith.addf %845, %846 : vector<2x64xf32>
    %cst_241 = arith.constant dense<0.000000e+00> : vector<2x64xf32>
    %848 = tpu.matmul %821, %484, %cst_241 {dimension_numbers = #tpu.dot_dimension_numbers<[1], [0], [0], [1], [0, 0, 1, 1], [], []>} : vector<2x64xf32>, vector<64x64xf32>, vector<2x64xf32> -> vector<2x64xf32>
    %849 = arith.addf %847, %848 : vector<2x64xf32>
    %850 = arith.negf %839 : vector<2x64xf32>
    %851 = math.exp %850 : vector<2x64xf32>
    %cst_242 = arith.constant 1.000000e+00 : f32
    %852 = vector.broadcast %cst_242 : f32 to vector<2x64xf32>
    %853 = arith.addf %852, %851 : vector<2x64xf32>
    %854 = arith.divf %852, %853 : vector<2x64xf32>
    %855 = arith.mulf %854, %814 : vector<2x64xf32>
    %856 = arith.negf %834 : vector<2x64xf32>
    %857 = math.exp %856 : vector<2x64xf32>
    %cst_243 = arith.constant 1.000000e+00 : f32
    %858 = vector.broadcast %cst_243 : f32 to vector<2x64xf32>
    %859 = arith.addf %858, %857 : vector<2x64xf32>
    %860 = arith.divf %858, %859 : vector<2x64xf32>
    %861 = math.tanh %844 : vector<2x64xf32>
    %862 = arith.mulf %860, %861 : vector<2x64xf32>
    %863 = arith.addf %855, %862 : vector<2x64xf32>
    %864 = arith.negf %849 : vector<2x64xf32>
    %865 = math.exp %864 : vector<2x64xf32>
    %cst_244 = arith.constant 1.000000e+00 : f32
    %866 = vector.broadcast %cst_244 : f32 to vector<2x64xf32>
    %867 = arith.addf %866, %865 : vector<2x64xf32>
    %868 = arith.divf %866, %867 : vector<2x64xf32>
    %869 = math.tanh %863 : vector<2x64xf32>
    %870 = arith.mulf %868, %869 : vector<2x64xf32>
    %871 = vector.extract_strided_slice %870 {offsets = [0, 0], sizes = [2, 32], strides = [1, 1]} : vector<2x64xf32> to vector<2x32xf32>
    %c7_245 = arith.constant 7 : index
    %c0_246 = arith.constant 0 : index
    %c0_247 = arith.constant 0 : index
    %872 = vector.load %arg25[%c7_245, %c0_246, %c0_247] : memref<8x2x64xf32, #tpu.memory_space<vmem>>, vector<1x2x32xf32>
    %873 = vector.shape_cast %872 : vector<1x2x32xf32> to vector<2x32xf32>
    %874 = vector.shape_cast %871 : vector<2x32xf32> to vector<1x2x32xf32>
    tpu.vector_store %arg25[%c7_245, %c0_246, %c0_247], %874 {strides = array<i32>} : memref<8x2x64xf32, #tpu.memory_space<vmem>>, vector<1x2x32xf32>,
    %875 = vector.extract_strided_slice %870 {offsets = [0, 32], sizes = [2, 32], strides = [1, 1]} : vector<2x64xf32> to vector<2x32xf32>
    %c0_248 = arith.constant 0 : index
    %c0_249 = arith.constant 0 : index
    %c32_250 = arith.constant 32 : index
    %876 = vector.load %arg25[%c0_248, %c0_249, %c32_250] : memref<8x2x64xf32, #tpu.memory_space<vmem>>, vector<1x2x32xf32>
    %877 = vector.shape_cast %876 : vector<1x2x32xf32> to vector<2x32xf32>
    %878 = vector.shape_cast %875 : vector<2x32xf32> to vector<1x2x32xf32>
    tpu.vector_store %arg25[%c0_248, %c0_249, %c32_250], %878 {strides = array<i32>} : memref<8x2x64xf32, #tpu.memory_space<vmem>>, vector<1x2x32xf32>,
    %c0_251 = arith.constant 0 : index
    %c0_252 = arith.constant 0 : index
    %c0_253 = arith.constant 0 : index
    %879 = vector.load %arg25[%c0_251, %c0_252, %c0_253] : memref<8x2x64xf32, #tpu.memory_space<vmem>>, vector<8x2x64xf32>
    %c0_254 = arith.constant 0 : index
    %c0_255 = arith.constant 0 : index
    %880 = vector.load %arg17[%c0_254, %c0_255] : memref<1x64xf32, #tpu.memory_space<vmem>>, vector<1x64xf32>
    %881 = math.tanh %879 : vector<8x2x64xf32>
    %882 = vector.shape_cast %880 : vector<1x64xf32> to vector<1x1x64xf32>
    %883 = vector.broadcast %882 : vector<1x1x64xf32> to vector<8x2x64xf32>
    %884 = arith.mulf %881, %883 : vector<8x2x64xf32>
    %cst_256 = arith.constant dense<0.000000e+00> : vector<8x2xf32>
    %885 = vector.multi_reduction <add>, %884, %cst_256 [2] : vector<8x2x64xf32> to vector<8x2xf32>
    %886 = vector.shape_cast %885 : vector<8x2xf32> to vector<8x2x1xf32>
    %cst_257 = arith.constant dense<0xFF800000> : vector<2x1xf32>
    %887 = vector.multi_reduction <maximumf>, %886, %cst_257 [0] : vector<8x2x1xf32> to vector<2x1xf32>
    %888 = vector.shape_cast %887 : vector<2x1xf32> to vector<1x2x1xf32>
    %889 = vector.broadcast %888 : vector<1x2x1xf32> to vector<8x2x1xf32>
    %890 = arith.subf %886, %889 : vector<8x2x1xf32>
    %891 = math.exp %890 : vector<8x2x1xf32>
    %cst_258 = arith.constant dense<0.000000e+00> : vector<2x1xf32>
    %892 = vector.multi_reduction <add>, %891, %cst_258 [0] : vector<8x2x1xf32> to vector<2x1xf32>
    %893 = vector.shape_cast %892 : vector<2x1xf32> to vector<1x2x1xf32>
    %894 = vector.broadcast %893 : vector<1x2x1xf32> to vector<8x2x1xf32>
    %895 = arith.divf %891, %894 : vector<8x2x1xf32>
    %896 = vector.broadcast %895 : vector<8x2x1xf32> to vector<8x2x64xf32>
    %897 = arith.mulf %879, %896 : vector<8x2x64xf32>
    %cst_259 = arith.constant dense<0.000000e+00> : vector<2x64xf32>
    %898 = vector.multi_reduction <add>, %897, %cst_259 [0] : vector<8x2x64xf32> to vector<2x64xf32>
    %cst_260 = arith.constant 0.000000e+00 : f32
    %899 = vector.broadcast %cst_260 : f32 to vector<2x64xf32>
    %900 = arith.maximumf %898, %899 : vector<2x64xf32>
    %c0_261 = arith.constant 0 : index
    %c0_262 = arith.constant 0 : index
    %901 = vector.load %arg18[%c0_261, %c0_262] : memref<64x16xf32, #tpu.memory_space<vmem>>, vector<64x16xf32>
    %cst_263 = arith.constant dense<0.000000e+00> : vector<2x16xf32>
    %902 = tpu.matmul %900, %901, %cst_263 {dimension_numbers = #tpu.dot_dimension_numbers<[1], [0], [0], [1], [0, 0, 1, 1], [], []>} : vector<2x64xf32>, vector<64x16xf32>, vector<2x16xf32> -> vector<2x16xf32>
    %c0_264 = arith.constant 0 : index
    %c0_265 = arith.constant 0 : index
    %903 = vector.load %arg19[%c0_264, %c0_265] : memref<1x16xf32, #tpu.memory_space<vmem>>, vector<1x16xf32>
    %904 = vector.broadcast %903 : vector<1x16xf32> to vector<2x16xf32>
    %905 = arith.addf %902, %904 : vector<2x16xf32>
    %c0_266 = arith.constant 0 : index
    %c0_267 = arith.constant 0 : index
    %906 = vector.load %arg20[%c0_266, %c0_267] : memref<16x5xf32, #tpu.memory_space<vmem>>, vector<16x5xf32>
    %cst_268 = arith.constant dense<0.000000e+00> : vector<2x5xf32>
    %907 = tpu.matmul %905, %906, %cst_268 {dimension_numbers = #tpu.dot_dimension_numbers<[1], [0], [0], [1], [0, 0, 1, 1], [], []>} : vector<2x16xf32>, vector<16x5xf32>, vector<2x5xf32> -> vector<2x5xf32>
    %c0_269 = arith.constant 0 : index
    %c0_270 = arith.constant 0 : index
    %908 = vector.load %arg21[%c0_269, %c0_270] : memref<1x5xf32, #tpu.memory_space<vmem>>, vector<1x5xf32>
    %909 = vector.broadcast %908 : vector<1x5xf32> to vector<2x5xf32>
    %910 = arith.addf %907, %909 : vector<2x5xf32>
    %c0_271 = arith.constant 0 : index
    %c0_272 = arith.constant 0 : index
    %911 = vector.load %arg22[%c0_271, %c0_272] : memref<2x5xf32, #tpu.memory_space<vmem>>, vector<2x5xf32>
    tpu.vector_store %arg22[%c0_271, %c0_272], %910 {strides = array<i32>} : memref<2x5xf32, #tpu.memory_space<vmem>>, vector<2x5xf32>,
    %cst_273 = arith.constant dense<0xFF800000> : vector<2xf32>
    %912 = vector.multi_reduction <maximumf>, %910, %cst_273 [1] : vector<2x5xf32> to vector<2xf32>
    %913 = vector.shape_cast %912 : vector<2xf32> to vector<2x1xf32>
    %914 = vector.broadcast %913 : vector<2x1xf32> to vector<2x5xf32>
    %915 = arith.subf %910, %914 : vector<2x5xf32>
    %916 = math.exp %915 : vector<2x5xf32>
    %cst_274 = arith.constant dense<0.000000e+00> : vector<2xf32>
    %917 = vector.multi_reduction <add>, %916, %cst_274 [1] : vector<2x5xf32> to vector<2xf32>
    %918 = vector.shape_cast %917 : vector<2xf32> to vector<2x1xf32>
    %919 = math.log %918 : vector<2x1xf32>
    %920 = arith.addf %919, %913 : vector<2x1xf32>
    %921 = vector.broadcast %920 : vector<2x1xf32> to vector<2x5xf32>
    %922 = arith.subf %910, %921 : vector<2x5xf32>
    %923 = tpu.iota {dimensions = array<i32: 1>} : vector<1x5xi32>
    %c0_275 = arith.constant 0 : index
    %924 = memref.load %arg1[%c0_275] : memref<2xi32, #tpu.memory_space<smem>>
    %925 = vector.broadcast %924 : i32 to vector<1x5xi32>
    %926 = arith.cmpi eq, %923, %925 : vector<1x5xi32>
    %927 = vector.extract_strided_slice %922 {offsets = [0, 0], sizes = [1, 5], strides = [1, 1]} : vector<2x5xf32> to vector<1x5xf32>
    %cst_276 = arith.constant 0.000000e+00 : f32
    %928 = vector.broadcast %cst_276 : f32 to vector<1x5xf32>
    %929 = arith.select %926, %927, %928 : vector<1x5xi1>, vector<1x5xf32>
    %930 = vector.shape_cast %929 : vector<1x5xf32> to vector<1x1x5xf32>
    %cst_277 = arith.constant dense<0.000000e+00> : vector<1xf32>
    %931 = vector.multi_reduction <add>, %930, %cst_277 [1, 2] : vector<1x1x5xf32> to vector<1xf32>
    %932 = vector.shape_cast %931 : vector<1xf32> to vector<1x1x1xf32>
    %933 = vector.extract %932[0, 0, 0] : f32 from vector<1x1x1xf32>
    %cst_278 = arith.constant 0.000000e+00 : f32
    %934 = arith.subf %cst_278, %933 : f32
    %cst_279 = arith.constant 0.000000e+00 : f32
    %935 = arith.addf %cst_279, %934 : f32
    %c1_280 = arith.constant 1 : index
    %936 = memref.load %arg1[%c1_280] : memref<2xi32, #tpu.memory_space<smem>>
    %937 = vector.broadcast %936 : i32 to vector<1x5xi32>
    %938 = arith.cmpi eq, %923, %937 : vector<1x5xi32>
    %939 = vector.extract_strided_slice %922 {offsets = [1, 0], sizes = [1, 5], strides = [1, 1]} : vector<2x5xf32> to vector<1x5xf32>
    %cst_281 = arith.constant 0.000000e+00 : f32
    %940 = vector.broadcast %cst_281 : f32 to vector<1x5xf32>
    %941 = arith.select %938, %939, %940 : vector<1x5xi1>, vector<1x5xf32>
    %942 = vector.shape_cast %941 : vector<1x5xf32> to vector<1x1x5xf32>
    %cst_282 = arith.constant dense<0.000000e+00> : vector<1xf32>
    %943 = vector.multi_reduction <add>, %942, %cst_282 [1, 2] : vector<1x1x5xf32> to vector<1xf32>
    %944 = vector.shape_cast %943 : vector<1xf32> to vector<1x1x1xf32>
    %945 = vector.extract %944[0, 0, 0] : f32 from vector<1x1x1xf32>
    %cst_283 = arith.constant 0.000000e+00 : f32
    %946 = arith.subf %cst_283, %945 : f32
    %947 = arith.addf %935, %946 : f32
    %cst_284 = arith.constant 2.000000e+00 : f32
    %948 = arith.divf %947, %cst_284 : f32
    %949 = vector.broadcast %948 : f32 to vector<1x1xf32>
    %c0_285 = arith.constant 0 : index
    %c0_286 = arith.constant 0 : index
    %950 = vector.load %arg23[%c0_285, %c0_286] : memref<1x1xf32, #tpu.memory_space<vmem>>, vector<1x1xf32>
    tpu.vector_store %arg23[%c0_285, %c0_286], %949 {strides = array<i32>} : memref<1x1xf32, #tpu.memory_space<vmem>>, vector<1x1xf32>,
    return
  }
}

</mosaic_0001>

<bundles_post_ra>
// kernel: textrnn_att_forward.1
= control target key start
LH: loop header
LB: loop body
LE: loop exit
PB: predicated region body
PF: predicated region fallthrough
CT: control target
= control target key end

     0   :  { %s12177_s0 = inlined_call_operand.vmem [shape: s32[2,8], index: 0, kind: input, shape index: {}]   ;;  %s12178_s1 = inlined_call_operand.hbm [shape: s32[2], index: 1, kind: input, shape index: {}]   ;;  %s12179_s2 = inlined_call_operand.vmem [shape: f32[40,32], index: 2, kind: input, shape index: {}]   ;;  %s12180_s3 = inlined_call_operand.vmem [shape: f32[32,256], index: 3, kind: input, shape index: {}]   ;;  %s12181_s4 = inlined_call_operand.hbm [shape: f32[32,256], index: 4, kind: input, shape index: {}]   ;;  %s12182_s5 = inlined_call_operand.hbm [shape: f32[1,256], index: 5, kind: input, shape index: {}]   ;;  %s12183_s6 = inlined_call_operand.hbm [shape: f32[64,64], index: 6, kind: input, shape index: {}]   ;;  %s12184_s7 = inlined_call_operand.hbm [shape: f32[64,64], index: 7, kind: input, shape index: {}]   ;;  %s12185_s8 = inlined_call_operand.hbm [shape: f32[64,64], index: 8, kind: input, shape index: {}]   ;;  %s12186_s9 = inlined_call_operand.hbm [shape: f32[64,64], index: 9, kind: input, shape index: {}]   ;;  %s12187_s10 = inlined_call_operand.vmem [shape: f32[64,256], index: 10, kind: input, shape index: {}]   ;;  %s12188_s11 = inlined_call_operand.hbm [shape: f32[64,256], index: 11, kind: input, shape index: {}]   ;;  %s12189_s12 = inlined_call_operand.hbm [shape: f32[1,256], index: 12, kind: input, shape index: {}]   ;;  %s12190_s13 = inlined_call_operand.hbm [shape: f32[64,64], index: 13, kind: input, shape index: {}]   ;;  %s12191_s14 = inlined_call_operand.hbm [shape: f32[64,64], index: 14, kind: input, shape index: {}]   ;;  %s12192_s15 = inlined_call_operand.hbm [shape: f32[64,64], index: 15, kind: input, shape index: {}]   ;;  %s12193_s16 = inlined_call_operand.hbm [shape: f32[64,64], index: 16, kind: input, shape index: {}]   ;;  %s12194_s17 = inlined_call_operand.hbm [shape: f32[1,64], index: 17, kind: input, shape index: {}]   ;;  %s12195_s18 = inlined_call_operand.vmem [shape: f32[64,16], index: 18, kind: input, shape index: {}]   ;;  %s12196_s19 = inlined_call_operand.hbm [shape: f32[1,16], index: 19, kind: input, shape index: {}]   ;;  %s12197_s20 = inlined_call_operand.vmem [shape: f32[16,5], index: 20, kind: input, shape index: {}]   ;;  %s12198_s21 = inlined_call_operand.hbm [shape: f32[1,5], index: 21, kind: input, shape index: {}]   ;;  %s12199_s22 = inlined_call_operand.vmem [shape: f32[2,5], index: 22, kind: output, shape index: {0}]   ;;  %s12200_s23 = inlined_call_operand.hbm [shape: f32[1,1], index: 23, kind: output, shape index: {1}]  }
   0x1   :  { %12209 = sst [smem:[#allocation44_spill]] %s12177_s0 }
   0x2   :  { %12210 = sst [smem:[#allocation45_spill]] %s12178_s1 }
   0x3   :  { %12211 = sst [smem:[#allocation46_spill]] %s12179_s2 }
   0x4   :  { %12212 = sst [smem:[#allocation47_spill]] %s12180_s3 }
   0x5   :  { %12213 = sst [smem:[#allocation48_spill]] %s12181_s4 }
   0x6   :  { %12214 = sst [smem:[#allocation49_spill]] %s12182_s5 }
   0x7   :  { %12215 = sst [smem:[#allocation50_spill]] %s12183_s6 }
   0x8   :  { %12216 = sst [smem:[#allocation51_spill]] %s12184_s7 }
   0x9   :  { %12217 = sst [smem:[#allocation52_spill]] %s12200_s23 }
   0xa   :  { %29 = vsyncpa [#allocation8], 0 }
   0xb   :  { %30 = vsyncpa [#allocation7], 0 }
   0xc   :  { %31 = vsyncpa [#allocation5], 0 }
   0xd   :  { %32 = vsyncpa [#allocation12], 0 }
   0xe   :  { %33 = vsyncpa [#allocation15], 0 }
   0xf   :  { %34 = vsyncpa [#allocation18], 0 }
  0x10   :  { %35 = vsyncpa [#allocation21], 0 }
  0x11   :  { %36 = vsyncpa [#allocation24], 0 }
  0x12   :  { %37 = vsyncpa [#allocation27], 0 }
  0x13   :  { %38 = vsyncpa [#allocation30], 0 }
  0x14   :  { %39 = vsyncpa [#allocation6], 0  ;;  %s10385_s4 = smov [#allocation11]   ;;  %s12218_s5 = sld [smem:[#allocation49_spill]] }
  0x15   :  { %s80_s30 = sshll.u32 %s10385_s4, 4  ;;  %s81_s30 = int_to_ptr.vmem [resolvable:$true] %s80_s30 }
  0x1a   :  { %s9989_s1 = scalar_lea.hbm %s12218_s5, 32 }
  0x1b   :  { %p9990_p0 = scmp.ne.s32.totalorder %s12218_s5, %s9989_s1  ;;  %p9993_p1 = scmp.lt.u32.totalorder %s9989_s1, %s12218_s5 }
  0x1d   :  { %p9995_p2 = pnand %p9993_p1, %p9990_p0 }
  0x1f   :  { %9998 = shalt.err (!%p9995_p2)
}
  0x20   :  { %s9999_s7 = scalar_lea.vmem %s81_s30, 32  ;;  %p10004_p4 = scmp.lt.s32.totalorder %s81_s30, %s81_s30 }
  0x21   :  { %p10000_p3 = scmp.ne.s32.totalorder %s81_s30, %s9999_s7  ;;  %p10005_p5 = scmp.lt.s32.totalorder %s9999_s7, %s9999_s7 }
  0x23   :  { %p10006_p6 = por %p10005_p5, %p10004_p4 }
  0x25   :  { %p10007_p7 = pnand %p10006_p6, %p10000_p3 }
  0x27   :  { %10010 = shalt.err (!%p10007_p7)
}
  0x28   :  { %83 = dma.hbm_to_vmem [thread:$0]  %s12218_s5, 32, %s81_s30, [#allocation12]  }
  0x29   :  { %s10386_s3 = smov [#allocation14]   ;;  %s10387_s4 = smov [#allocation17]  }
  0x2a   :  { %s101_s0 = sshll.u32 %s10386_s3, 4  ;;  %s125_s24 = sshll.u32 %s10387_s4, 4  ;;  %s102_s0 = int_to_ptr.vmem [resolvable:$true] %s101_s0  ;;  %s126_s24 = int_to_ptr.vmem [resolvable:$true] %s125_s24 }
  0x2b   :  { %s12219_s26 = sld [smem:[#allocation51_spill]] }
  0x31   :  { %s10011_s2 = scalar_lea.hbm %s12219_s26, 1024 }
  0x32   :  { %p10012_p8 = scmp.ne.s32.totalorder %s12219_s26, %s10011_s2  ;;  %p10015_p9 = scmp.lt.u32.totalorder %s10011_s2, %s12219_s26 }
  0x34   :  { %p10017_p10 = pnand %p10015_p9, %p10012_p8 }
  0x36   :  { %10020 = shalt.err (!%p10017_p10)
}
  0x37   :  { %s10021_s30 = scalar_lea.vmem %s102_s0, 1024  ;;  %p10026_p12 = scmp.lt.s32.totalorder %s102_s0, %s102_s0 }
  0x38   :  { %p10022_p11 = scmp.ne.s32.totalorder %s102_s0, %s10021_s30  ;;  %p10027_p13 = scmp.lt.s32.totalorder %s10021_s30, %s10021_s30 }
  0x3a   :  { %p10028_p0 = por %p10027_p13, %p10026_p12 }
  0x3c   :  { %p10029_p1 = pnand %p10028_p0, %p10022_p11 }
  0x3e   :  { %10032 = shalt.err (!%p10029_p1)
}
  0x3f   :  { %s10388_s5 = smov 128   ;;  %s10389_s28 = smov 8  }
  0x40   :  { %107 = dma.hbm_to_vmem [thread:$0]  %s12219_s26, 1024, %s102_s0, [#allocation15], %s10388_s5, %s10388_s5, %s10389_s28  }
  0x41   :  { %s10033_s25 = scalar_lea.hbm %s12186_s9, 1024 }
  0x42   :  { %p10034_p2 = scmp.ne.s32.totalorder %s12186_s9, %s10033_s25  ;;  %p10037_p3 = scmp.lt.u32.totalorder %s10033_s25, %s12186_s9 }
  0x44   :  { %p10039_p4 = pnand %p10037_p3, %p10034_p2 }
  0x46   :  { %10042 = shalt.err (!%p10039_p4)
}
  0x47   :  { %s10043_s7 = scalar_lea.vmem %s126_s24, 1024  ;;  %p10048_p6 = scmp.lt.s32.totalorder %s126_s24, %s126_s24 }
  0x48   :  { %p10044_p5 = scmp.ne.s32.totalorder %s126_s24, %s10043_s7  ;;  %p10049_p7 = scmp.lt.s32.totalorder %s10043_s7, %s10043_s7 }
  0x4a   :  { %p10050_p8 = por %p10049_p7, %p10048_p6 }
  0x4c   :  { %p10051_p9 = pnand %p10050_p8, %p10044_p5 }
  0x4e   :  { %10054 = shalt.err (!%p10051_p9)
}
  0x4f   :  { %131 = dma.hbm_to_vmem [thread:$0]  %s12186_s9, 1024, %s126_s24, [#allocation18], %s10388_s5, %s10388_s5, %s10389_s28  }
  0x50   :  { %s10390_s30 = smov [#allocation20]   ;;  %s10391_s3 = smov [#allocation23]  }
  0x51   :  { %s152_s29 = sshll.u32 %s10390_s30, 4  ;;  %s173_s23 = sshll.u32 %s10391_s3, 4  ;;  %s153_s29 = int_to_ptr.vmem [resolvable:$true] %s152_s29  ;;  %s174_s23 = int_to_ptr.vmem [resolvable:$true] %s173_s23 }
  0x52   :  { %s10055_s1 = scalar_lea.hbm %s12189_s12, 32 }
  0x53   :  { %p10056_p10 = scmp.ne.s32.totalorder %s12189_s12, %s10055_s1  ;;  %p10059_p11 = scmp.lt.u32.totalorder %s10055_s1, %s12189_s12 }
  0x55   :  { %p10061_p12 = pnand %p10059_p11, %p10056_p10 }
  0x57   :  { %10064 = shalt.err (!%p10061_p12)
}
  0x58   :  { %s10065_s9 = scalar_lea.vmem %s153_s29, 32  ;;  %p10070_p0 = scmp.lt.s32.totalorder %s153_s29, %s153_s29 }
  0x59   :  { %p10066_p13 = scmp.ne.s32.totalorder %s153_s29, %s10065_s9  ;;  %p10071_p1 = scmp.lt.s32.totalorder %s10065_s9, %s10065_s9 }
  0x5b   :  { %p10072_p2 = por %p10071_p1, %p10070_p0 }
  0x5d   :  { %p10073_p3 = pnand %p10072_p2, %p10066_p13 }
  0x5f   :  { %10076 = shalt.err (!%p10073_p3)
}
  0x60   :  { %155 = dma.hbm_to_vmem [thread:$0]  %s12189_s12, 32, %s153_s29, [#allocation21]  }
  0x61   :  { %s10077_s3 = scalar_lea.hbm %s12191_s14, 1024 }
  0x62   :  { %p10078_p4 = scmp.ne.s32.totalorder %s12191_s14, %s10077_s3  ;;  %p10081_p5 = scmp.lt.u32.totalorder %s10077_s3, %s12191_s14 }
  0x64   :  { %p10083_p6 = pnand %p10081_p5, %p10078_p4 }
  0x66   :  { %10086 = shalt.err (!%p10083_p6)
}
  0x67   :  { %s10087_s6 = scalar_lea.vmem %s174_s23, 1024  ;;  %p10092_p8 = scmp.lt.s32.totalorder %s174_s23, %s174_s23 }
  0x68   :  { %p10088_p7 = scmp.ne.s32.totalorder %s174_s23, %s10087_s6  ;;  %p10093_p9 = scmp.lt.s32.totalorder %s10087_s6, %s10087_s6 }
  0x6a   :  { %p10094_p10 = por %p10093_p9, %p10092_p8 }
  0x6c   :  { %p10095_p11 = pnand %p10094_p10, %p10088_p7 }
  0x6e   :  { %10098 = shalt.err (!%p10095_p11)
}
  0x6f   :  { %179 = dma.hbm_to_vmem [thread:$0]  %s12191_s14, 1024, %s174_s23, [#allocation24], %s10388_s5, %s10388_s5, %s10389_s28  }
  0x70   :  { %s10392_s27 = smov [#allocation26]   ;;  %s10393_s9 = smov [#allocation29]  }
  0x71   :  { %s197_s7 = sshll.u32 %s10392_s27, 4  ;;  %s222_s24 = sshll.u32 %s10393_s9, 4  ;;  %s198_s7 = int_to_ptr.vmem [resolvable:$true] %s197_s7  ;;  %s223_s24 = int_to_ptr.vmem [resolvable:$true] %s222_s24 }
  0x72   :  { %s10099_s30 = scalar_lea.hbm %s12193_s16, 1024 }
  0x73   :  { %p10100_p12 = scmp.ne.s32.totalorder %s12193_s16, %s10099_s30  ;;  %p10103_p13 = scmp.lt.u32.totalorder %s10099_s30, %s12193_s16 }
  0x75   :  { %p10105_p0 = pnand %p10103_p13, %p10100_p12 }
  0x77   :  { %10108 = shalt.err (!%p10105_p0)
}
  0x78   :  { %s10109_s14 = scalar_lea.vmem %s198_s7, 1024  ;;  %p10114_p2 = scmp.lt.s32.totalorder %s198_s7, %s198_s7 }
  0x79   :  { %p10110_p1 = scmp.ne.s32.totalorder %s198_s7, %s10109_s14  ;;  %p10115_p3 = scmp.lt.s32.totalorder %s10109_s14, %s10109_s14 }
  0x7b   :  { %p10116_p4 = por %p10115_p3, %p10114_p2 }
  0x7d   :  { %p10117_p5 = pnand %p10116_p4, %p10110_p1 }
  0x7f   :  { %10120 = shalt.err (!%p10117_p5)
}
  0x80   :  { %203 = dma.hbm_to_vmem [thread:$0]  %s12193_s16, 1024, %s198_s7, [#allocation27], %s10388_s5, %s10388_s5, %s10389_s28  }
  0x81   :  { %s12220_s29 = sld [smem:[#allocation44_spill]]  ;;  %s10121_s26 = scalar_lea.hbm %s12196_s19, 16 }
  0x82   :  { %p10122_p6 = scmp.ne.s32.totalorder %s12196_s19, %s10121_s26  ;;  %p10125_p7 = scmp.lt.u32.totalorder %s10121_s26, %s12196_s19 }
  0x84   :  { %p10127_p8 = pnand %p10125_p7, %p10122_p6 }
  0x87   :  { %s46_s27 = sshll.u32 %s12220_s29, 4  ;;  %s47_s27 = int_to_ptr.vmem [resolvable:$true] %s46_s27 }
  0x88   :  { %10130 = shalt.err (!%p10127_p8)
}
  0x89   :  { %s10131_s16 = scalar_lea.vmem %s223_s24, 16  ;;  %s10135_s7 = scalar_lea.vmem %s223_s24, 32 }
  0x8a   :  { %p10132_p9 = scmp.ne.s32.totalorder %s223_s24, %s10131_s16  ;;  %p10136_p10 = scmp.lt.s32.totalorder %s223_s24, %s223_s24 }
  0x8b   :  { %p10137_p11 = scmp.lt.s32.totalorder %s10135_s7, %s10131_s16 }
  0x8d   :  { %p10138_p12 = por %p10137_p11, %p10136_p10 }
  0x8f   :  { %p10139_p13 = pnand %p10138_p12, %p10132_p9 }
  0x91   :  { %10142 = shalt.err (!%p10139_p13)
}
  0x92   :  { %225 = dma.hbm_to_vmem [thread:$0]  %s12196_s19, 16, %s223_s24, [#allocation30]  }
  0x93   :  { %s10143_s23 = scalar_lea.vmem %s47_s27, 32  ;;  %p10148_p1 = scmp.lt.s32.totalorder %s47_s27, %s47_s27 }
  0x94   :  { %p10144_p0 = scmp.ne.s32.totalorder %s47_s27, %s10143_s23  ;;  %p10149_p2 = scmp.lt.s32.totalorder %s10143_s23, %s10143_s23 }
  0x96   :  { %p10150_p3 = por %p10149_p2, %p10148_p1 }
  0x98   :  { %p10151_p4 = pnand %p10150_p3, %p10144_p0 }
  0x9a   :  { %10154 = shalt.err (!%p10151_p4)
}
  0x9b   :  { %s10394_s2 = smov [#allocation4]   ;;  %s12221_s29 = sld [smem:[#allocation45_spill]] }
  0x9c   :  { %49 = dma.vmem_to_smem %s47_s27, 32, %s10394_s2, [#allocation8]  }
  0xa1   :  { %s10155_s9 = scalar_lea.hbm %s12221_s29, 16 }
  0xa2   :  { %p10156_p5 = scmp.ne.s32.totalorder %s12221_s29, %s10155_s9  ;;  %p10159_p6 = scmp.lt.u32.totalorder %s10155_s9, %s12221_s29 }
  0xa4   :  { %p10161_p7 = pnand %p10159_p6, %p10156_p5 }
  0xa6   :  { %10164 = shalt.err (!%p10161_p7)
}
  0xa7   :  { %s10395_s24 = smov [#allocation9]   ;;  %s10396_s27 = smov [#allocation10]  }
  0xa8   :  { %57 = dma.hbm_to_smem %s12221_s29, 16, %s10395_s24, [#allocation7]  }
  0xa9   :  { %s67_s25 = sshll.u32 %s10396_s27, 4  ;;  %s12222_s1 = sld [smem:[#allocation48_spill]]  ;;  %s68_s25 = int_to_ptr.vmem [resolvable:$true] %s67_s25 }
  0xaf   :  { %s10165_s14 = scalar_lea.hbm %s12222_s1, 1024 }
  0xb0   :  { %p10166_p8 = scmp.ne.s32.totalorder %s12222_s1, %s10165_s14  ;;  %p10169_p9 = scmp.lt.u32.totalorder %s10165_s14, %s12222_s1 }
  0xb2   :  { %p10171_p10 = pnand %p10169_p9, %p10166_p8 }
  0xb4   :  { %10174 = shalt.err (!%p10171_p10)
}
  0xb5   :  { %s10175_s9 = scalar_lea.vmem %s68_s25, 1024  ;;  %p10180_p12 = scmp.lt.s32.totalorder %s68_s25, %s68_s25 }
  0xb6   :  { %p10176_p11 = scmp.ne.s32.totalorder %s68_s25, %s10175_s9  ;;  %p10181_p13 = scmp.lt.s32.totalorder %s10175_s9, %s10175_s9 }
  0xb8   :  { %p10182_p0 = por %p10181_p13, %p10180_p12 }
  0xba   :  { %p10183_p1 = pnand %p10182_p0, %p10176_p11 }
  0xbc   :  { %10186 = shalt.err (!%p10183_p1)
}
  0xbd   :  { %s10397_s29 = smov 256   ;;  %s10398_s0 = smov 16  }
  0xbe   :  { %73 = dma.hbm_to_vmem [thread:$0]  %s12222_s1, 1024, %s68_s25, [#allocation5], %s10397_s29, %s10397_s29, %s10398_s0  }
  0xbf   :  { %s10399_s19 = smov [#allocation13]   ;;  %s10400_s3 = smov [#allocation16]  }
  0xc0   :  { %s89_s24 = sshll.u32 %s10399_s19, 4  ;;  %s113_s4 = sshll.u32 %s10400_s3, 4  ;;  %s90_s24 = int_to_ptr.vmem [resolvable:$true] %s89_s24  ;;  %s10657_s4 = int_to_ptr.vmem [resolvable:$true] %s113_s4 }
  0xc1   :  { %s12223_s7 = sld [smem:[#allocation50_spill]] }
  0xc7   :  { %s10187_s14 = scalar_lea.hbm %s12223_s7, 1024 }
  0xc8   :  { %p10188_p2 = scmp.ne.s32.totalorder %s12223_s7, %s10187_s14  ;;  %p10191_p3 = scmp.lt.u32.totalorder %s10187_s14, %s12223_s7 }
  0xca   :  { %p10193_p4 = pnand %p10191_p3, %p10188_p2 }
  0xcc   :  { %10196 = shalt.err (!%p10193_p4)
}
  0xcd   :  { %s10197_s25 = scalar_lea.vmem %s90_s24, 1024  ;;  %p10202_p6 = scmp.lt.s32.totalorder %s90_s24, %s90_s24 }
  0xce   :  { %p10198_p5 = scmp.ne.s32.totalorder %s90_s24, %s10197_s25  ;;  %p10203_p7 = scmp.lt.s32.totalorder %s10197_s25, %s10197_s25 }
  0xd0   :  { %p10204_p8 = por %p10203_p7, %p10202_p6 }
  0xd2   :  { %p10205_p9 = pnand %p10204_p8, %p10198_p5 }
  0xd4   :  { %10208 = shalt.err (!%p10205_p9)
}
  0xd5   :  { %95 = dma.hbm_to_vmem [thread:$0]  %s12223_s7, 1024, %s90_s24, [#allocation12], %s10388_s5, %s10388_s5, %s10389_s28  }
  0xd6   :  { %s10209_s19 = scalar_lea.hbm %s12185_s8, 1024 }
  0xd7   :  { %p10210_p10 = scmp.ne.s32.totalorder %s12185_s8, %s10209_s19  ;;  %p10213_p11 = scmp.lt.u32.totalorder %s10209_s19, %s12185_s8 }
  0xd9   :  { %p10215_p12 = pnand %p10213_p11, %p10210_p10 }
  0xdb   :  { %10218 = shalt.err (!%p10215_p12)
}
  0xdc   :  { %s10219_s23 = scalar_lea.vmem %s10657_s4, 1024  ;;  %p10224_p0 = scmp.lt.s32.totalorder %s10657_s4, %s10657_s4 }
  0xdd   :  { %p10220_p13 = scmp.ne.s32.totalorder %s10657_s4, %s10219_s23  ;;  %p10225_p1 = scmp.lt.s32.totalorder %s10219_s23, %s10219_s23 }
  0xdf   :  { %p10226_p2 = por %p10225_p1, %p10224_p0 }
  0xe1   :  { %p10227_p3 = pnand %p10226_p2, %p10220_p13 }
  0xe3   :  { %10230 = shalt.err (!%p10227_p3)
}
  0xe4   :  { %119 = dma.hbm_to_vmem [thread:$0]  %s12185_s8, 1024, %s10657_s4, [#allocation15], %s10388_s5, %s10388_s5, %s10389_s28  }
  0xe5   :  { %s10401_s2 = smov [#allocation19]   ;;  %s10402_s12 = smov [#allocation22]  }
  0xe6   :  { %s139_s6 = sshll.u32 %s10401_s2, 4  ;;  %s161_s25 = sshll.u32 %s10402_s12, 4  ;;  %s140_s6 = int_to_ptr.vmem [resolvable:$true] %s139_s6  ;;  %s10694_s25 = int_to_ptr.vmem [resolvable:$true] %s161_s25 }
  0xe7   :  { %s10231_s26 = scalar_lea.hbm %s12188_s11, 2048 }
  0xe8   :  { %p10232_p4 = scmp.ne.s32.totalorder %s12188_s11, %s10231_s26  ;;  %p10235_p5 = scmp.lt.u32.totalorder %s10231_s26, %s12188_s11 }
  0xea   :  { %p10237_p6 = pnand %p10235_p5, %p10232_p4 }
  0xec   :  { %10240 = shalt.err (!%p10237_p6)
}
  0xed   :  { %s10241_s8 = scalar_lea.vmem %s140_s6, 2048  ;;  %p10246_p8 = scmp.lt.s32.totalorder %s140_s6, %s140_s6 }
  0xee   :  { %p10242_p7 = scmp.ne.s32.totalorder %s140_s6, %s10241_s8  ;;  %p10247_p9 = scmp.lt.s32.totalorder %s10241_s8, %s10241_s8 }
  0xf0   :  { %p10248_p10 = por %p10247_p9, %p10246_p8 }
  0xf2   :  { %p10249_p11 = pnand %p10248_p10, %p10242_p7 }
  0xf4   :  { %10252 = shalt.err (!%p10249_p11)
}
  0xf5   :  { %145 = dma.hbm_to_vmem [thread:$0]  %s12188_s11, 2048, %s140_s6, [#allocation18], %s10397_s29, %s10397_s29, %s10398_s0  }
  0xf6   :  { %s10253_s24 = scalar_lea.hbm %s12190_s13, 1024 }
  0xf7   :  { %p10254_p12 = scmp.ne.s32.totalorder %s12190_s13, %s10253_s24  ;;  %p10257_p13 = scmp.lt.u32.totalorder %s10253_s24, %s12190_s13 }
  0xf9   :  { %p10259_p0 = pnand %p10257_p13, %p10254_p12 }
  0xfb   :  { %10262 = shalt.err (!%p10259_p0)
}
  0xfc   :  { %s10263_s9 = scalar_lea.vmem %s10694_s25, 1024  ;;  %p10268_p2 = scmp.lt.s32.totalorder %s10694_s25, %s10694_s25 }
  0xfd   :  { %p10264_p1 = scmp.ne.s32.totalorder %s10694_s25, %s10263_s9  ;;  %p10269_p3 = scmp.lt.s32.totalorder %s10263_s9, %s10263_s9 }
  0xff   :  { %p10270_p4 = por %p10269_p3, %p10268_p2 }
 0x101   :  { %p10271_p5 = pnand %p10270_p4, %p10264_p1 }
 0x103   :  { %10274 = shalt.err (!%p10271_p5)
}
 0x104   :  { %167 = dma.hbm_to_vmem [thread:$0]  %s12190_s13, 1024, %s10694_s25, [#allocation21], %s10388_s5, %s10388_s5, %s10389_s28  }
 0x105   :  { %s10403_s0 = smov [#allocation25]   ;;  %s10404_s26 = smov [#allocation28]  }
 0x106   :  { %s185_s6 = sshll.u32 %s10403_s0, 4  ;;  %s210_s30 = sshll.u32 %s10404_s26, 4  ;;  %s186_s6 = int_to_ptr.vmem [resolvable:$true] %s185_s6  ;;  %s211_s30 = int_to_ptr.vmem [resolvable:$true] %s210_s30 }
 0x107   :  { %s10275_s27 = scalar_lea.hbm %s12192_s15, 1024 }
 0x108   :  { %p10276_p6 = scmp.ne.s32.totalorder %s12192_s15, %s10275_s27  ;;  %p10279_p7 = scmp.lt.u32.totalorder %s10275_s27, %s12192_s15 }
 0x10a   :  { %p10281_p8 = pnand %p10279_p7, %p10276_p6 }
 0x10c   :  { %10284 = shalt.err (!%p10281_p8)
}
 0x10d   :  { %s10285_s13 = scalar_lea.vmem %s186_s6, 1024  ;;  %p10290_p10 = scmp.lt.s32.totalorder %s186_s6, %s186_s6 }
 0x10e   :  { %p10286_p9 = scmp.ne.s32.totalorder %s186_s6, %s10285_s13  ;;  %p10291_p11 = scmp.lt.s32.totalorder %s10285_s13, %s10285_s13 }
 0x110   :  { %p10292_p12 = por %p10291_p11, %p10290_p10 }
 0x112   :  { %p10293_p13 = pnand %p10292_p12, %p10286_p9 }
 0x114   :  { %10296 = shalt.err (!%p10293_p13)
}
 0x115   :  { %191 = dma.hbm_to_vmem [thread:$0]  %s12192_s15, 1024, %s186_s6, [#allocation24], %s10388_s5, %s10388_s5, %s10389_s28  }
 0x116   :  { %s10297_s2 = scalar_lea.hbm %s12194_s17, 16 }
 0x117   :  { %p10298_p0 = scmp.ne.s32.totalorder %s12194_s17, %s10297_s2  ;;  %p10301_p1 = scmp.lt.u32.totalorder %s10297_s2, %s12194_s17 }
 0x119   :  { %p10303_p2 = pnand %p10301_p1, %p10298_p0 }
 0x11b   :  { %10306 = shalt.err (!%p10303_p2)
}
 0x11c   :  { %s10307_s29 = scalar_lea.vmem %s211_s30, 16  ;;  %s10311_s0 = scalar_lea.vmem %s211_s30, 32 }
 0x11d   :  { %p10308_p3 = scmp.ne.s32.totalorder %s211_s30, %s10307_s29  ;;  %p10312_p4 = scmp.lt.s32.totalorder %s211_s30, %s211_s30 }
 0x11e   :  { %p10313_p5 = scmp.lt.s32.totalorder %s10311_s0, %s10307_s29 }
 0x120   :  { %p10314_p6 = por %p10313_p5, %p10312_p4 }
 0x122   :  { %p10315_p7 = pnand %p10314_p6, %p10308_p3 }
 0x124   :  { %10318 = shalt.err (!%p10315_p7)
}
 0x125   :  { %213 = dma.hbm_to_vmem [thread:$0]  %s12194_s17, 16, %s211_s30, [#allocation27]  }
 0x126   :  { %s10405_s28 = smov [#allocation31]   ;;  %s10319_s3 = scalar_lea.hbm %s12198_s21, 16 }
 0x127   :  { %s234_s6 = sshll.u32 %s10405_s28, 4  ;;  %p10320_p8 = scmp.ne.s32.totalorder %s12198_s21, %s10319_s3  ;;  %s235_s6 = int_to_ptr.vmem [resolvable:$true] %s234_s6 }
 0x128   :  { %p10323_p9 = scmp.lt.u32.totalorder %s10319_s3, %s12198_s21 }
 0x12a   :  { %p10325_p10 = pnand %p10323_p9, %p10320_p8 }
 0x12c   :  { %10328 = shalt.err (!%p10325_p10)
}
 0x12d   :  { %s10329_s14 = scalar_lea.vmem %s235_s6, 16  ;;  %s10333_s17 = scalar_lea.vmem %s235_s6, 32 }
 0x12e   :  { %p10330_p11 = scmp.ne.s32.totalorder %s235_s6, %s10329_s14  ;;  %p10334_p12 = scmp.lt.s32.totalorder %s235_s6, %s235_s6 }
 0x12f   :  { %p10335_p13 = scmp.lt.s32.totalorder %s10333_s17, %s10329_s14 }
 0x131   :  { %p10336_p0 = por %p10335_p13, %p10334_p12 }
 0x133   :  { %p10337_p1 = pnand %p10336_p0, %p10330_p11 }
 0x135   :  { %10340 = shalt.err (!%p10337_p1)
}
 0x136   :  { %237 = dma.hbm_to_vmem [thread:$0]  %s12198_s21, 16, %s235_s6, [#allocation30]  }
 0x137   :  { %10363 = dma.done.wait [#allocation8], 32  }
 0x138   :  { %10364 = vsyncadd [#allocation8], 4294967264 }
 0x139   :  { %10365 = dma.done.wait [#allocation7], 16  }
 0x13a   :  { %10366 = vsyncadd [#allocation7], 4294967280 }
 0x13b   :  { %10367 = dma.done.wait [#allocation5], 1024  }
 0x13c   :  { %10368 = vsyncadd [#allocation5], 4294966272 }
 0x13d   :  { %10369 = dma.done.wait [#allocation12], 1056  }
 0x13e   :  { %10370 = vsyncadd [#allocation12], 4294966240 }
 0x13f   :  { %10371 = dma.done.wait [#allocation15], 2048  }
 0x140   :  { %10372 = vsyncadd [#allocation15], 4294965248 }
 0x141   :  { %10373 = dma.done.wait [#allocation18], 3072  }
 0x142   :  { %10374 = vsyncadd [#allocation18], 4294964224 }
 0x143   :  { %10375 = dma.done.wait [#allocation21], 1056  }
 0x144   :  { %10376 = vsyncadd [#allocation21], 4294966240 }
 0x145   :  { %10377 = dma.done.wait [#allocation24], 2048  }
 0x146   :  { %10378 = vsyncadd [#allocation24], 4294965248 }
 0x147   :  { %10379 = dma.done.wait [#allocation27], 1040  }
 0x148   :  { %10380 = vsyncadd [#allocation27], 4294966256 }
 0x149   :  { %10381 = dma.done.wait [#allocation30], 32  }
 0x14a   :  { %10382 = vsyncadd [#allocation30], 4294967264 }
 0x14b   :  { %289 = sfence }
 0x14c   :  { %s12224_s23 = sld [smem:[#allocation46_spill]]  ;;  %v290_v3 = vlaneseq  ;;  %s292_s1 = sld [smem:[#allocation4]]  ;;  %v10406_v6 = vmov 0.0   ;;  %vm372_vm0 = vcmask 1040384   ;;  %vm374_vm1 = vcmask 1041408   ;;  %v669_v56 = vld [vmem:[#allocation13] sm:$0xff] }
 0x14d   :  { %s10782_s29 = sld [smem:[#allocation4 + $0x80]]  ;;  %s10784_s0 = sld [smem:[#allocation4 + $0x1]]  ;;  %571 = vmatprep.mubr.f32.mxu1 %v10406_v6  ;;  %vm376_vm2 = vcmask 1042432   ;;  %vm378_vm3 = vcmask 1043456   ;;  %vm380_vm4 = vcmask 1044480   ;;  %vm382_vm5 = vcmask 1045504  }
 0x14e   :  { %s10787_s15 = sld [smem:[#allocation4 + $0x81]]  ;;  %s10789_s5 = sld [smem:[#allocation4 + $0x2]]  ;;  %v10792_v8 = vand.u32 127, %v290_v3  ;;  %vm384_vm7 = vcmask 1046528   ;;  %vm398_vm10 = vcmask 326656   ;;  %v10407_v30 = vmov 0.0|0.0  }
 0x14f   :  { %s10794_s28 = sld [smem:[#allocation4 + $0x82]]  ;;  %s10796_s6 = sld [smem:[#allocation4 + $0x3]]  ;;  %v670_v57 = vld [vmem:[#allocation13 + $0x8] sm:$0xff] }
 0x150   :  { %s10798_s26 = sld [smem:[#allocation4 + $0x83]]  ;;  %s10800_s19 = sld [smem:[#allocation4 + $0x4]] }
 0x151   :  { %s10802_s3 = sld [smem:[#allocation4 + $0x84]]  ;;  %s10807_s4 = sld [smem:[#allocation4 + $0x5]] }
 0x152   :  { %v393_v0 = vld [vmem:[%s12224_s23] sm:$0xff]  ;;  %v394_v1 = vld [vmem:[%s12224_s23 + $0x8] sm:$0xff]  ;;  %v395_v2 = vld [vmem:[%s12224_s23 + $0x10] sm:$0xff]  ;;  %v293_v10 = vstv %s292_s1  ;;  %s10816_s16 = sld [smem:[#allocation4 + $0x85]]  ;;  %s10818_s14 = sld [smem:[#allocation4 + $0x6]] }
 0x153   :  { %v8826_v4 = vpack.c.bf16 %v394_v1, %v393_v0  ;;  %v396_v5 = vld [vmem:[%s12224_s23 + $0x18] sm:$0xff]  ;;  %v397_v9 = vld [vmem:[%s12224_s23 + $0x20] sm:$0xff]  ;;  %vm294_vm6 = vcmp.eq.s32.totalorder %v10792_v8, %v293_v10  ;;  %v298_v11 = vstv %s10782_s29  ;;  %v303_v12 = vstv %s10784_s0  ;;  %s10824_s17 = sld [smem:[#allocation4 + $0x86]]  ;;  %s10834_s30 = sld [smem:[#allocation4 + $0x7]] }
 0x154   :  { %v8830_v7 = vpack.c.bf16 %v396_v5, %v395_v2  ;;  %v6825_v13 = vsel %vm294_vm6, 1.0, %v10406_v6  ;;  %vm299_vm8 = vcmp.eq.s32.totalorder %v10792_v8, %v298_v11  ;;  %vm304_vm9 = vcmp.eq.s32.totalorder %v10792_v8, %v303_v12  ;;  %s10836_s13 = sld [smem:[#allocation4 + $0x87]]  ;;  %s12225_s23 = sld [smem:[#allocation47_spill]]  ;;  %v672_v10 = vld [vmem:[#allocation13 + $0x18] sm:$0xff] }
 0x155   :  { %8827 = vmatprep.subr.bf16.mxu0 %v8826_v4  ;;  %v308_v14 = vstv %s10787_s15  ;;  %v6827_v15 = vsel %vm299_vm8, 1.0, %v10406_v6  ;;  %v6829_v16 = vsel %vm304_vm9, 1.0, %v10406_v6  ;;  %v313_v17 = vstv %s10789_s5 }
 0x156   :  { %8829 = vmatpush3.bf16.msra.mxu0 %v8826_v4  ;;  %vm309_vm11 = vcmp.eq.s32.totalorder %v10792_v8, %v308_v14  ;;  %vm314_vm12 = vcmp.eq.s32.totalorder %v10792_v8, %v313_v17  ;;  %v318_v19 = vstv %s10794_s28  ;;  %v323_v20 = vstv %s10796_s6  ;;  %v673_v14 = vld [vmem:[#allocation13 + $0x20] sm:$0xff]  ;;  %v675_v17 = vld [vmem:[#allocation13 + $0x30] sm:$0xff]  ;;  %s6755_s6 = sld [smem:[#allocation9]] }
 0x157   :  { %8831 = vmatprep.subr.bf16.mxu0 %v8830_v7  ;;  %v6831_v18 = vsel %vm309_vm11, 1.0, %v10406_v6  ;;  %v6833_v21 = vsel %vm314_vm12, 1.0, %v10406_v6  ;;  %vm319_vm13 = vcmp.eq.s32.totalorder %v10792_v8, %v318_v19  ;;  %vm324_vm14 = vcmp.eq.s32.totalorder %v10792_v8, %v323_v20  ;;  %v585_v20 = vld [vmem:[#allocation10 + $0x8] sm:$0xff] }
 0x158   :  { %v328_v22 = vstv %s10798_s26  ;;  %v6835_v23 = vsel %vm319_vm13, 1.0, %v10406_v6  ;;  %v6837_v24 = vsel %vm324_vm14, 1.0, %v10406_v6  ;;  %v373_v25 = vsel %vm372_vm0, %v6825_v13, %v6827_v15  ;;  %v674_v15 = vld [vmem:[#allocation13 + $0x28] sm:$0xff]  ;;  %s6975_s26 = sld [smem:[#allocation9 + $0x1]] }
 0x159   :  { %vm329_vm15 = vcmp.eq.s32.totalorder %v10792_v8, %v328_v22  ;;  %v375_v27 = vsel %vm374_vm1, %v373_v25, %v6829_v16  ;;  %v333_v28 = vstv %s10800_s19  ;;  %v338_v29 = vstv %s10802_s3  ;;  %s10409_s19 = smov 64  }
 0x15a   :  { %8833 = vmatpush3.bf16.msra.mxu0 %v8830_v7  ;;  %v6839_v26 = vsel %vm329_vm15, 1.0, %v10406_v6  ;;  %v377_v31 = vsel %vm376_vm2, %v375_v27, %v6831_v18  ;;  %vm334_vm6 = vcmp.eq.s32.totalorder %v10792_v8, %v333_v28  ;;  %vm339_vm8 = vcmp.eq.s32.totalorder %v10792_v8, %v338_v29  ;;  %v481_v42 = vld [vmem:[%s12225_s23 + $0x8] sm:$0xff]  ;;  %v483_v45 = vld [vmem:[%s12225_s23 + $0x18] sm:$0xff]  ;;  %v480_v46 = vld [vmem:[%s12225_s23] sm:$0xff] }
 0x15b   :  { %7579 = vmatprep.subr.mxu0 %v397_v9  ;;  %v343_v32 = vstv %s10807_s4  ;;  %v379_v33 = vsel %vm378_vm3, %v377_v31, %v6833_v21  ;;  %v6841_v34 = vsel %vm334_vm6, 1.0, %v10406_v6  ;;  %v6843_v35 = vsel %vm339_vm8, 1.0, %v10406_v6  ;;  %v482_v47 = vld [vmem:[%s12225_s23 + $0x10] sm:$0xff]  ;;  %v485_v52 = vld [vmem:[%s12225_s23 + $0x28] sm:$0xff]  ;;  %v487_v53 = vld [vmem:[%s12225_s23 + $0x38] sm:$0xff] }
 0x15c   :  { %vm344_vm9 = vcmp.eq.s32.totalorder %v10792_v8, %v343_v32  ;;  %v381_v36 = vsel %vm380_vm4, %v379_v33, %v6835_v23  ;;  %v348_v38 = vstv %s10816_s16  ;;  %v353_v39 = vstv %s10818_s14  ;;  %v484_v61 = vld [vmem:[%s12225_s23 + $0x20] sm:$0xff]  ;;  %v486_v62 = vld [vmem:[%s12225_s23 + $0x30] sm:$0xff]  ;;  %v587_v21 = vld [vmem:[#allocation10 + $0x18] sm:$0xff]  ;;  %s10410_s16 = smov [#allocation32]  }
 0x15d   :  { %v6845_v37 = vsel %vm344_vm9, 1.0, %v10406_v6  ;;  %v383_v40 = vsel %vm382_vm5, %v381_v36, %v6837_v24  ;;  %vm349_vm11 = vcmp.eq.s32.totalorder %v10792_v8, %v348_v38  ;;  %vm354_vm12 = vcmp.eq.s32.totalorder %v10792_v8, %v353_v39  ;;  %v676_v18 = vld [vmem:[#allocation13 + $0x38] sm:$0xff]  ;;  %v685_v23 = vld [vmem:[#allocation16] sm:$0xff]  ;;  %v686_v24 = vld [vmem:[#allocation16 + $0x8] sm:$0xff]  ;;  %s6805_s14 = sshll.u32 %s10410_s16, 4  ;;  %s6806_s14 = int_to_ptr.vmem [resolvable:$true] %s6805_s14 }
 0x15e   :  { %7580 = vmatpush3.msra.mxu0 %v397_v9  ;;  %v358_v41 = vstv %s10824_s17  ;;  %v385_v43 = vsel %vm384_vm7, %v383_v40, %v6839_v26  ;;  %v6847_v44 = vsel %vm349_vm11, 1.0, %v10406_v6  ;;  %v6849_v48 = vsel %vm354_vm12, 1.0, %v10406_v6  ;;  %v671_v9 = vld [vmem:[#allocation13 + $0x10] sm:$0xff]  ;;  %v688_v27 = vld [vmem:[#allocation16 + $0x18] sm:$0xff]  ;;  %v689_v29 = vld [vmem:[#allocation16 + $0x20] sm:$0xff]  ;;  %s10345_s17 = scalar_lea.vmem %s6806_s14, 32  ;;  %p10346_p3 = scmp.lt.s32.totalorder %s6806_s14, %s6806_s14 }
 0x15f   :  { %8850 = vmatprep.subr.bf16.mxu0 %v10407_v30  ;;  %vm359_vm13 = vcmp.eq.s32.totalorder %v10792_v8, %v358_v41  ;;  %7581 = vmatprep.mubr.msk.f32.mxu0 %vm398_vm10, %v385_v43  ;;  %v363_v49 = vstv %s10834_s30  ;;  %v368_v50 = vstv %s10836_s13  ;;  %v386_v51 = vsel %vm372_vm0, %v6841_v34, %v6843_v35  ;;  %v687_v26 = vld [vmem:[#allocation16 + $0x10] sm:$0xff]  ;;  %v690_v31 = vld [vmem:[#allocation16 + $0x28] sm:$0xff]  ;;  %v692_v34 = vld [vmem:[#allocation16 + $0x38] sm:$0xff] }
 0x160   :  { %v6851_v54 = vsel %vm359_vm13, 1.0, %v10406_v6  ;;  %vm364_vm14 = vcmp.eq.s32.totalorder %v10792_v8, %v363_v49  ;;  %vm369_vm15 = vcmp.eq.s32.totalorder %v10792_v8, %v368_v50  ;;  %v387_v55 = vsel %vm374_vm1, %v386_v51, %v6845_v37  ;;  %v691_v33 = vld [vmem:[#allocation16 + $0x30] sm:$0xff]  ;;  %v584_v36 = vld [vmem:[#allocation10] sm:$0xff]  ;;  %v589_v38 = vld [vmem:[#allocation10 + $0x28] sm:$0xff] }
 0x161   :  { %v6853_v58 = vsel %vm364_vm14, 1.0, %v10406_v6  ;;  %v388_v59 = vsel %vm376_vm2, %v387_v55, %v6847_v44  ;;  %v8834_v60 = vpack.c.bf16 %v483_v45, %v481_v42  ;;  %v6855_v63 = vsel %vm369_vm15, 1.0, %v10406_v6  ;;  %v586_v37 = vld [vmem:[#allocation10 + $0x10] sm:$0xff]  ;;  %v591_v39 = vld [vmem:[#allocation10 + $0x38] sm:$0xff]  ;;  %v588_v43 = vld [vmem:[#allocation10 + $0x20] sm:$0xff] }
 0x162   :  { %v389_v0 = vsel %vm378_vm3, %v388_v59, %v6849_v48  ;;  %v8836_v1 = vpack.c.bf16 %v482_v47, %v480_v46  ;;  %v8838_v2 = vpack.c.bf16 %v487_v53, %v485_v52  ;;  %v10904_v5 = vpack.c.bf16 %v670_v57, %v669_v56  ;;  %v590_v44 = vld [vmem:[#allocation10 + $0x30] sm:$0xff]  ;;  %v677_v47 = vld [vmem:[#allocation14] sm:$0xff]  ;;  %v680_v51 = vld [vmem:[#allocation14 + $0x18] sm:$0xff] }
 0x163   :  { %v390_v4 = vsel %vm380_vm4, %v389_v0, %v6851_v54  ;;  %8835 = vmatprep.subr.bf16.mxu1 %v8834_v60  ;;  %v8840_v11 = vpack.c.bf16 %v486_v62, %v484_v61  ;;  %v10910_v13 = vpack.c.bf16 %v672_v10, %v671_v9  ;;  %v10914_v16 = vpack.c.bf16 %v674_v15, %v673_v14  ;;  %v678_v48 = vld [vmem:[#allocation14 + $0x8] sm:$0xff]  ;;  %v679_v50 = vld [vmem:[#allocation14 + $0x10] sm:$0xff]  ;;  %v681_v53 = vld [vmem:[#allocation14 + $0x20] sm:$0xff] }
 0x164   :  { %v391_v7 = vsel %vm382_vm5, %v390_v4, %v6853_v58  ;;  %8837 = vmatpush1.bf16.msra.mxu1 %v8836_v1  ;;  %v10919_v19 = vpack.c.bf16 %v676_v18, %v675_v17  ;;  %v8842_v22 = vpack.c.bf16 %v587_v21, %v585_v20  ;;  %v10923_v25 = vpack.c.bf16 %v686_v24, %v685_v23  ;;  %v682_v54 = vld [vmem:[#allocation14 + $0x28] sm:$0xff]  ;;  %v683_v56 = vld [vmem:[#allocation14 + $0x30] sm:$0xff]  ;;  %v684_v57 = vld [vmem:[#allocation14 + $0x38] sm:$0xff] }
 0x165   :  { %v392_v12 = vsel %vm384_vm7, %v391_v7, %v6855_v63  ;;  %8839 = vmatprep.subr.bf16.mxu1 %v8838_v2  ;;  %vm10408_vm0 = vmmov 0   ;;  %v10932_v28 = vpack.c.bf16 %v688_v27, %v687_v26  ;;  %v10936_v32 = vpack.c.bf16 %v690_v31, %v689_v29  ;;  %v693_v59 = vld [vmem:[#allocation17] sm:$0xff]  ;;  %v694_v60 = vld [vmem:[#allocation17 + $0x8] sm:$0xff]  ;;  %v695_v62 = vld [vmem:[#allocation17 + $0x10] sm:$0xff] }
 0x166   :  { %7582 = vmatmul.mubr.msk.f32.vlgmr.msra.gmra.mrb[0].mxu0 %vm398_vm10, %v392_v12  ;;  %v10940_v35 = vpack.c.bf16 %v692_v34, %v691_v33  ;;  %vm500_vm2 = vcmask 261120   ;;  %v8844_v40 = vpack.c.bf16 %v586_v37, %v584_v36  ;;  %v8846_v42 = vpack.c.bf16 %v591_v39, %v589_v38  ;;  %v696_v63 = vld [vmem:[#allocation17 + $0x18] sm:$0xff]  ;;  %v697_v1 = vld [vmem:[#allocation17 + $0x20] sm:$0xff]  ;;  %v698_v2 = vld [vmem:[#allocation17 + $0x28] sm:$0xff] }
 0x167   :  { %8852 = vmatpush3.bf16.msra.mxu0 %v10904_v5  ;;  %7600 = vmatprep.mubr.msk.f32.mxu0 %vm10408_vm0, %v10406_v6  ;;  %v8848_v46 = vpack.c.bf16 %v590_v44, %v588_v43  ;;  %v10959_v49 = vpack.c.bf16 %v678_v48, %v677_v47  ;;  %v10965_v52 = vpack.c.bf16 %v680_v51, %v679_v50  ;;  %v699_v7 = vld [vmem:[#allocation17 + $0x30] sm:$0xff]  ;;  %v700_v9 = vld [vmem:[#allocation17 + $0x38] sm:$0xff]  ;;  %v11012_v17 = vshrl.u32 %v290_v3, 7 }
 0x168   :  { %8853 = vmatprep.subr.bf16.mxu0 %v10407_v30  ;;  %8841 = vmatpush1.bf16.msra.mxu1 %v8840_v11  ;;  %v10970_v55 = vpack.c.bf16 %v682_v54, %v681_v53  ;;  %v10976_v58 = vpack.c.bf16 %v684_v57, %v683_v56  ;;  %v10980_v61 = vpack.c.bf16 %v694_v60, %v693_v59  ;;  %v488_v20 = vld [vmem:[#allocation11] sm:$0x3]  ;;  %vm705_vm3 = vcmask 523264  }
 0x169   :  { %8843 = vmatprep.subr.bf16.mxu1 %v8842_v22  ;;  %v10985_v0 = vpack.c.bf16 %v696_v63, %v695_v62  ;;  %v10991_v4 = vpack.c.bf16 %v698_v2, %v697_v1  ;;  %v10995_v10 = vpack.c.bf16 %v700_v9, %v699_v7  ;;  %v492_v18 = vsub.s32 0, %v11012_v17 }
 0x16a   :  { %v496_v22 = vsub.s32 1, %v11012_v17  ;;  %vm1037_vm4 = vcmask 254976   ;;  %vm1039_vm5 = vcmask 517376   ;;  %vm1384_vm7 = vcmask 257026  }
 0x16b   :  { %8855 = vmatpush3.bf16.msra.mxu0 %v10910_v13  ;;  %v493_v24 = vrot.slane %v488_v20, %v492_v18  ;;  %vm1386_vm10 = vcmask 519426   ;;  %vm2072_vm6 = vcmask 261126   ;;  %vm2074_vm8 = vcmask 523526  }
 0x16c   :  { %8856 = vmatprep.subr.bf16.mxu0 %v10407_v30  ;;  %v497_v26 = vrot.slane %v488_v20, %v496_v22  ;;  %vm1728_vm9 = vcmask 259076   ;;  %vm1730_vm11 = vcmask 521476   ;;  %vm6457_vm12 = vcmask 517120  }
 0x16d   :  { %vm6740_vm13 = vcmask 33792  }
 0x16f   :  { %8858 = vmatpush3.bf16.msra.mxu0 %v10914_v16 }
 0x170   :  { %8859 = vmatprep.subr.bf16.mxu0 %v10407_v30 }
 0x173   :  { %8861 = vmatpush3.bf16.msra.mxu0 %v10919_v19 }
 0x174   :  { %8874 = vmatprep.subr.bf16.mxu0 %v10407_v30 }
 0x176   :  { %7601 = vmatmul.mubr.f32.vlgmr.msra.gmra.mrb[2].mxu0 %v10406_v6 }
 0x177   :  { %8876 = vmatpush3.bf16.msra.mxu0 %v10923_v25  ;;  %7638 = vmatprep.mubr.msk.f32.mxu0 %vm10408_vm0, %v10406_v6 }
 0x178   :  { %8877 = vmatprep.subr.bf16.mxu0 %v10407_v30 }
 0x17b   :  { %8879 = vmatpush3.bf16.msra.mxu0 %v10932_v28 }
 0x17c   :  { %8880 = vmatprep.subr.bf16.mxu0 %v10407_v30 }
 0x17f   :  { %8882 = vmatpush3.bf16.msra.mxu0 %v10936_v32 }
 0x180   :  { %8883 = vmatprep.subr.bf16.mxu0 %v10407_v30 }
 0x183   :  { %8885 = vmatpush3.bf16.msra.mxu0 %v10940_v35 }
 0x184   :  { %8898 = vmatprep.subr.bf16.mxu0 %v10407_v30 }
 0x186   :  { %7639 = vmatmul.mubr.f32.vlgmr.msra.gmra.mrb[4].mxu0 %v10406_v6 }
 0x187   :  { %8900 = vmatpush3.bf16.msra.mxu0 %v10904_v5  ;;  %7676 = vmatprep.mubr.msk.f32.mxu0 %vm10408_vm0, %v10406_v6 }
 0x188   :  { %8901 = vmatprep.subr.bf16.mxu0 %v10407_v30 }
 0x18b   :  { %8903 = vmatpush3.bf16.msra.mxu0 %v10910_v13 }
 0x18c   :  { %8904 = vmatprep.subr.bf16.mxu0 %v10407_v30 }
 0x18f   :  { %8906 = vmatpush3.bf16.msra.mxu0 %v10914_v16 }
 0x190   :  { %8907 = vmatprep.subr.bf16.mxu0 %v10407_v30 }
 0x193   :  { %8909 = vmatpush3.bf16.msra.mxu0 %v10919_v19 }
 0x194   :  { %8922 = vmatprep.subr.bf16.mxu0 %v10407_v30 }
 0x239   :  { %v7583_v41 = vpop.f32.mrb[0].mxu0 }
 0x23a   :  { %v471_v45 = vpop.f32.mrb[1].mxu0 }
 0x23b   :  { %6858 = vmatmul.mubr.msk.f32.vlgmr.msra.gmra.mrb[0].mxu1 %vm500_vm2, %v471_v45 }
 0x23c   :  { %8845 = vmatpush1.bf16.msra.mxu1 %v8844_v40  ;;  %577 = vmatprep.mubr.f32.mxu1 %v10406_v6 }
 0x23d   :  { %8847 = vmatprep.subr.bf16.mxu1 %v8846_v42 }
 0x23f   :  { %6859 = vmatmul.mubr.msk.f32.gmra.mrb[2].mxu1 %vm500_vm2, %v7583_v41 }
 0x240   :  { %8849 = vmatpush1.bf16.msra.mxu1 %v8848_v46  ;;  %656 = vmatprep.mubr.f32.mxu1 %v10406_v6 }
 0x241   :  { %8862 = vmatprep.subr.bf16.mxu1 %v10407_v30 }
 0x243   :  { %6860 = vmatmul.mubr.msk.f32.vlgmr.msra.gmra.mrb[4].mxu1 %vm500_vm2, %v471_v45 }
 0x244   :  { %8864 = vmatpush3.bf16.msra.mxu1 %v10959_v49  ;;  %662 = vmatprep.mubr.f32.mxu1 %v10406_v6 }
 0x245   :  { %8865 = vmatprep.subr.bf16.mxu1 %v10407_v30 }
 0x247   :  { %6861 = vmatmul.mubr.msk.f32.gmra.mrb[6].mxu1 %vm500_vm2, %v7583_v41  ;;  %vm6795_vm2 = vcmask 0  }
 0x248   :  { %8867 = vmatpush3.bf16.msra.mxu1 %v10965_v52  ;;  %7619 = vmatprep.mubr.msk.f32.mxu1 %vm10408_vm0, %v10406_v6 }
 0x249   :  { %8868 = vmatprep.subr.bf16.mxu1 %v10407_v30  ;;  %v775_v11 = vpop.f32.mrb[2].mxu0 }
 0x24a   :  { %v7602_v12 = vpop.f32.mrb[3].mxu0 }
 0x24c   :  { %8870 = vmatpush3.bf16.msra.mxu1 %v10970_v55 }
 0x24d   :  { %8871 = vmatprep.subr.bf16.mxu1 %v10407_v30 }
 0x250   :  { %8873 = vmatpush3.bf16.msra.mxu1 %v10976_v58 }
 0x251   :  { %8886 = vmatprep.subr.bf16.mxu1 %v10407_v30 }
 0x253   :  { %7620 = vmatmul.mubr.f32.vlgmr.msra.gmra.mrb[8].mxu1 %v10406_v6 }
 0x254   :  { %8888 = vmatpush3.bf16.msra.mxu1 %v10980_v61  ;;  %7657 = vmatprep.mubr.msk.f32.mxu1 %vm10408_vm0, %v10406_v6 }
 0x255   :  { %8889 = vmatprep.subr.bf16.mxu1 %v10407_v30 }
 0x258   :  { %8891 = vmatpush3.bf16.msra.mxu1 %v10985_v0 }
 0x259   :  { %8892 = vmatprep.subr.bf16.mxu1 %v10407_v30  ;;  %v925_v14 = vpop.f32.mrb[4].mxu0 }
 0x25a   :  { %v7640_v15 = vpop.f32.mrb[5].mxu0 }
 0x25c   :  { %8894 = vmatpush3.bf16.msra.mxu1 %v10991_v4 }
 0x25d   :  { %8895 = vmatprep.subr.bf16.mxu1 %v10407_v30 }
 0x260   :  { %8897 = vmatpush3.bf16.msra.mxu1 %v10995_v10 }
 0x261   :  { %8910 = vmatprep.subr.bf16.mxu1 %v10407_v30 }
 0x263   :  { %7658 = vmatmul.mubr.f32.vlgmr.msra.gmra.mrb[10].mxu1 %v10406_v6 }
 0x264   :  { %8912 = vmatpush3.bf16.msra.mxu1 %v10959_v49  ;;  %7695 = vmatprep.mubr.msk.f32.mxu1 %vm10408_vm0, %v10406_v6 }
 0x265   :  { %8913 = vmatprep.subr.bf16.mxu1 %v10407_v30 }
 0x268   :  { %8915 = vmatpush3.bf16.msra.mxu1 %v10965_v52 }
 0x269   :  { %8916 = vmatprep.subr.bf16.mxu1 %v10407_v30 }
 0x26c   :  { %8918 = vmatpush3.bf16.msra.mxu1 %v10970_v55 }
 0x26d   :  { %8919 = vmatprep.subr.bf16.mxu1 %v10407_v30 }
 0x270   :  { %8921 = vmatpush3.bf16.msra.mxu1 %v10976_v58 }
 0x271   :  { %8934 = vmatprep.subr.bf16.mxu1 %v10407_v30 }
 0x30e   :  { %v573_v21 = vpop.f32.mrb[0].mxu1 }
 0x30f   :  { %v575_v23 = vpop.f32.mrb[1].mxu1  ;;  %v574_v45 = vadd.f32 %v573_v21, %v493_v24 }
 0x310   :  { %v576_v50 = vadd.f32 %v575_v23, %v497_v26 }
 0x312   :  { %v579_v27 = vpop.f32.mrb[2].mxu1 }
 0x313   :  { %v580_v29 = vadd.f32 %v579_v27, %v493_v24  ;;  %v581_v31 = vpop.f32.mrb[3].mxu1 }
 0x314   :  { %v582_v33 = vadd.f32 %v581_v31, %v497_v26 }
 0x316   :  { %v658_v34 = vpop.f32.mrb[4].mxu1 }
 0x317   :  { %v2077_v3 = vrot.slane %v658_v34, 6  ;;  %v2418_v36 = vrot.slane %v658_v34, 2  ;;  %v660_v37 = vpop.f32.mrb[5].mxu1 }
 0x318   :  { %v2232_v38 = vrot.slane %v660_v37, 6  ;;  %v2573_v39 = vrot.slane %v660_v37, 2 }
 0x319   :  { %v11020_v40 = vadd.f32 %v2077_v3, %v580_v29  ;;  %v11022_v41 = vadd.f32 %v2418_v36, %v580_v29 }
 0x31a   :  { %v11024_v42 = vadd.f32 %v2232_v38, %v582_v33  ;;  %v11026_v43 = vadd.f32 %v2573_v39, %v582_v33  ;;  %v664_v44 = vpop.f32.mrb[6].mxu1 }
 0x31b   :  { %v702_v46 = vrot.slane %v664_v44, 6  ;;  %v1041_v47 = vrot.slane %v664_v44, 2  ;;  %v666_v48 = vpop.f32.mrb[7].mxu1 }
 0x31c   :  { %v856_v51 = vrot.slane %v666_v48, 6  ;;  %v1196_v53 = vrot.slane %v666_v48, 2 }
 0x31d   :  { %v11028_v54 = vadd.f32 %v702_v46, %v574_v45  ;;  %v11030_v56 = vadd.f32 %v1041_v47, %v574_v45 }
 0x31e   :  { %v11032_v57 = vadd.f32 %v856_v51, %v576_v50  ;;  %v11034_v59 = vadd.f32 %v1196_v53, %v576_v50 }
 0x31f   :  { %v779_v60 = vadd.f32 %v775_v11, %v11028_v54 }
 0x320   :  { %v929_v2 = vadd.f32 %v925_v14, %v11032_v57 }
 0x321   :  { %v6863_v62 = vmul.f32 -1.442695, %v779_v60 }
 0x323   :  { %9695 = vpow2.f32 %v6863_v62 }
 0x324   :  { %9697 = vtanh.f32 %v929_v2 }
 0x326   :  { %v846_v63 = vpop.f32.mrb[8].mxu1 }
 0x327   :  { %851 = vrot.lane.b32.xlu0 %v846_v63, %s10409_s19  ;;  %v7621_v1 = vpop.f32.mrb[9].mxu1 }
 0x32d   :  { %v9696_v7 = vpop.eup %9695 }
 0x32e   :  { %v1015_v9 = vadd.f32 1.0, %v9696_v7  ;;  %v9698_v20 = vpop.eup %9697 }
 0x330   :  { %9699 = vrcp.f32 %v1015_v9 }
 0x336   :  { %v996_v12 = vpop.f32.mrb[10].mxu1 }
 0x337   :  { %1001 = vrot.lane.b32.xlu0 %v996_v12, %s10409_s19  ;;  %v7659_v15 = vpop.f32.mrb[11].mxu1 }
 0x33a   :  { %v9700_v21 = vpop.eup %9699 }
 0x33b   :  { %v1019_v11 = vmul.f32 %v9700_v21, %v9698_v20 }
 0x33d   :  { %1021 = vrot.lane.b32.xlu1 %v1019_v11, %s10409_s19 }
 0x399   :  { %v852_v23 = vpop.permute.xlu0 %851 }
 0x39a   :  { %v854_v24 = vadd.f32 %v852_v23, %v11028_v54 }
 0x39c   :  { %v6862_v26 = vmul.f32 -1.442695, %v854_v24 }
 0x39e   :  { %9701 = vpow2.f32 %v6862_v26 }
 0x3a8   :  { %v9702_v27 = vpop.eup %9701 }
 0x3a9   :  { %v1008_v14 = vadd.f32 1.0, %v9702_v27  ;;  %v1002_v29 = vpop.permute.xlu0 %1001 }
 0x3aa   :  { %v1004_v31 = vadd.f32 %v1002_v29, %v11032_v57 }
 0x3ab   :  { %9703 = vrcp.f32 %v1008_v14 }
 0x3ac   :  { %v6864_v33 = vmul.f32 -1.442695, %v1004_v31 }
 0x3ae   :  { %9705 = vpow2.f32 %v6864_v33 }
 0x3af   :  { %v1022_v36 = vpop.permute.xlu1 %1021 }
 0x3b5   :  { %v9704_v34 = vpop.eup %9703 }
 0x3b6   :  { %v1011_v3 = vmul.f32 0.0, %v9704_v34 }
 0x3b8   :  { %v9706_v37 = vpop.eup %9705  ;;  %v11043_v38 = vadd.f32 %v1022_v36, %v1011_v3 }
 0x3b9   :  { %v1028_v39 = vadd.f32 1.0, %v9706_v37 }
 0x3ba   :  { %9707 = vtanh.f32 %v11043_v38 }
 0x3bb   :  { %9709 = vrcp.f32 %v1028_v39  ;;  %v1356_v39 = vrot.slane %v11043_v38, 6 }
 0x3c4   :  { %v9708_v44 = vpop.eup %9707 }
 0x3c5   :  { %v9710_v45 = vpop.eup %9709 }
 0x3c6   :  { %v1032_v46 = vmul.f32 %v9710_v45, %v9708_v44 }
 0x3c8   :  { %1034 = vrot.lane.b32.xlu1 %v1032_v46, %s10409_s19 }
 0x43a   :  { %v1035_v47 = vpop.permute.xlu1 %1034 }
 0x43b   :  { %7677 = vmatmul.mubr.msk.f32.vlgmr.msra.gmra.mrb[6].mxu0 %vm705_vm3, %v1035_v47  ;;  %7696 = vmatmul.mubr.msk.f32.vlgmr.msra.gmra.mrb[12].mxu1 %vm705_vm3, %v1035_v47  ;;  %1038 = vst.msk [vmem:[#allocation2] sm:$0x3] %vm1037_vm4, %v1035_v47 }
 0x43c   :  { %1040 = vst.msk [vmem:[#allocation2 + $0xe] sm:$0x3] %vm1039_vm5, %v1035_v47  ;;  %8924 = vmatpush3.bf16.msra.mxu0 %v10923_v25  ;;  %8936 = vmatpush3.bf16.msra.mxu1 %v10980_v61 }
 0x43d   :  { %8925 = vmatprep.subr.bf16.mxu0 %v10407_v30  ;;  %8937 = vmatprep.subr.bf16.mxu1 %v10407_v30 }
 0x43e   :  { %7714 = vmatprep.mubr.msk.f32.mxu0 %vm10408_vm0, %v10406_v6  ;;  %7733 = vmatprep.mubr.msk.f32.mxu1 %vm10408_vm0, %v10406_v6 }
 0x440   :  { %8927 = vmatpush3.bf16.msra.mxu0 %v10932_v28  ;;  %8939 = vmatpush3.bf16.msra.mxu1 %v10985_v0 }
 0x441   :  { %8928 = vmatprep.subr.bf16.mxu0 %v10407_v30  ;;  %8940 = vmatprep.subr.bf16.mxu1 %v10407_v30 }
 0x444   :  { %8930 = vmatpush3.bf16.msra.mxu0 %v10936_v32  ;;  %8942 = vmatpush3.bf16.msra.mxu1 %v10991_v4 }
 0x445   :  { %8931 = vmatprep.subr.bf16.mxu0 %v10407_v30  ;;  %8943 = vmatprep.subr.bf16.mxu1 %v10407_v30 }
 0x448   :  { %8933 = vmatpush3.bf16.msra.mxu0 %v10940_v35  ;;  %8945 = vmatpush3.bf16.msra.mxu1 %v10995_v10 }
 0x449   :  { %8946 = vmatprep.subr.bf16.mxu0 %v10407_v30  ;;  %8958 = vmatprep.subr.bf16.mxu1 %v10407_v30 }
 0x44b   :  { %7715 = vmatmul.mubr.msk.f32.vlgmr.msra.gmra.mrb[8].mxu0 %vm705_vm3, %v1035_v47  ;;  %7734 = vmatmul.mubr.msk.f32.vlgmr.msra.gmra.mrb[14].mxu1 %vm705_vm3, %v1035_v47 }
 0x44c   :  { %8948 = vmatpush3.bf16.msra.mxu0 %v10904_v5  ;;  %8960 = vmatpush3.bf16.msra.mxu1 %v10959_v49 }
 0x44d   :  { %8949 = vmatprep.subr.bf16.mxu0 %v10407_v30  ;;  %8961 = vmatprep.subr.bf16.mxu1 %v10407_v30 }
 0x44e   :  { %7752 = vmatprep.mubr.msk.f32.mxu0 %vm10408_vm0, %v10406_v6  ;;  %7771 = vmatprep.mubr.msk.f32.mxu1 %vm10408_vm0, %v10406_v6 }
 0x450   :  { %8951 = vmatpush3.bf16.msra.mxu0 %v10910_v13  ;;  %8963 = vmatpush3.bf16.msra.mxu1 %v10965_v52 }
 0x451   :  { %8952 = vmatprep.subr.bf16.mxu0 %v10407_v30  ;;  %8964 = vmatprep.subr.bf16.mxu1 %v10407_v30 }
 0x454   :  { %8954 = vmatpush3.bf16.msra.mxu0 %v10914_v16  ;;  %8966 = vmatpush3.bf16.msra.mxu1 %v10970_v55 }
 0x455   :  { %8955 = vmatprep.subr.bf16.mxu0 %v10407_v30  ;;  %8967 = vmatprep.subr.bf16.mxu1 %v10407_v30 }
 0x458   :  { %8957 = vmatpush3.bf16.msra.mxu0 %v10919_v19  ;;  %8969 = vmatpush3.bf16.msra.mxu1 %v10976_v58 }
 0x459   :  { %8970 = vmatprep.subr.bf16.mxu0 %v10407_v30  ;;  %8982 = vmatprep.subr.bf16.mxu1 %v10407_v30 }
 0x50e   :  { %v1112_v48 = vpop.f32.mrb[6].mxu0  ;;  %v1186_v50 = vpop.f32.mrb[12].mxu1 }
 0x50f   :  { %v1117_v51 = vrot.slane %v1112_v48, 6  ;;  %v1191_v53 = vrot.slane %v1186_v50, 6  ;;  %v7678_v60 = vpop.f32.mrb[7].mxu0  ;;  %v7697_v62 = vpop.f32.mrb[13].mxu1 }
 0x511   :  { %v1119_v63 = vadd.f32 %v1117_v51, %v11030_v56  ;;  %1192 = vrot.lane.b32.xlu0 %v1191_v53, %s10409_s19 }
 0x513   :  { %v6870_v1 = vmul.f32 -1.442695, %v1119_v63 }
 0x515   :  { %9711 = vpow2.f32 %v6870_v1 }
 0x51e   :  { %v1265_v2 = vpop.f32.mrb[8].mxu0  ;;  %v1339_v7 = vpop.f32.mrb[14].mxu1 }
 0x51f   :  { %v9712_v9 = vpop.eup %9711  ;;  %v1270_v12 = vrot.slane %v1265_v2, 6  ;;  %v1344_v15 = vrot.slane %v1339_v7, 6  ;;  %v7716_v20 = vpop.f32.mrb[9].mxu0 }
 0x520   :  { %v7735_v21 = vpop.f32.mrb[15].mxu1  ;;  %v1362_v11 = vadd.f32 1.0, %v9712_v9 }
 0x521   :  { %v1272_v23 = vadd.f32 %v1270_v12, %v11034_v59  ;;  %1345 = vrot.lane.b32.xlu1 %v1344_v15, %s10409_s19 }
 0x522   :  { %9713 = vrcp.f32 %v1362_v11 }
 0x523   :  { %9715 = vtanh.f32 %v1272_v23 }
 0x52c   :  { %v9714_v24 = vpop.eup %9713 }
 0x52d   :  { %v9716_v26 = vpop.eup %9715 }
 0x52e   :  { %v1366_v27 = vmul.f32 %v9716_v26, %v9714_v24 }
 0x530   :  { %1368 = vrot.lane.b32.xlu0 %v1366_v27, %s10409_s19 }
 0x583   :  { %v1193_v14 = vpop.permute.xlu0 %1192 }
 0x584   :  { %v1195_v29 = vadd.f32 %v1193_v14, %v11030_v56 }
 0x586   :  { %v6869_v31 = vmul.f32 -1.442695, %v1195_v29 }
 0x588   :  { %9717 = vpow2.f32 %v6869_v31 }
 0x592   :  { %v9718_v33 = vpop.eup %9717 }
 0x593   :  { %v1352_v34 = vadd.f32 1.0, %v9718_v33  ;;  %v1346_v3 = vpop.permute.xlu1 %1345 }
 0x594   :  { %v1348_v36 = vadd.f32 %v1346_v3, %v11034_v59 }
 0x595   :  { %9719 = vrcp.f32 %v1352_v34 }
 0x596   :  { %v6871_v37 = vmul.f32 -1.442695, %v1348_v36 }
 0x598   :  { %9721 = vpow2.f32 %v6871_v37 }
 0x59f   :  { %v9720_v44 = vpop.eup %9719 }
 0x5a0   :  { %v1358_v45 = vmul.f32 %v9720_v44, %v1356_v39 }
 0x5a2   :  { %v9722_v46 = vpop.eup %9721  ;;  %v1369_v47 = vpop.permute.xlu0 %1368 }
 0x5a3   :  { %v1375_v48 = vadd.f32 1.0, %v9722_v46  ;;  %v11101_v50 = vadd.f32 %v1369_v47, %v1358_v45 }
 0x5a5   :  { %9723 = vrcp.f32 %v1375_v48 }
 0x5a6   :  { %9725 = vtanh.f32 %v11101_v50 }
 0x5af   :  { %v9724_v51 = vpop.eup %9723 }
 0x5b0   :  { %v9726_v53 = vpop.eup %9725 }
 0x5b1   :  { %v11104_v60 = vmul.f32 %v9726_v53, %v9724_v51  ;;  %v1700_v51 = vrot.slane %v11101_v50, 6 }
 0x5b3   :  { %v1388_v62 = vrot.slane %v11104_v60, 2 }
 0x5b5   :  { %1389 = vrot.lane.b32.xlu1 %v1388_v62, %s10409_s19 }
 0x627   :  { %v1390_v63 = vpop.permute.xlu1 %1389 }
 0x628   :  { %7753 = vmatmul.mubr.msk.f32.vlgmr.msra.gmra.mrb[10].mxu0 %vm705_vm3, %v1390_v63  ;;  %7772 = vmatmul.mubr.msk.f32.vlgmr.msra.gmra.mrb[16].mxu1 %vm705_vm3, %v1390_v63 }
 0x629   :  { %8972 = vmatpush3.bf16.msra.mxu0 %v10923_v25  ;;  %8984 = vmatpush3.bf16.msra.mxu1 %v10980_v61 }
 0x62a   :  { %8973 = vmatprep.subr.bf16.mxu0 %v10407_v30  ;;  %8985 = vmatprep.subr.bf16.mxu1 %v10407_v30 }
 0x62b   :  { %7790 = vmatprep.mubr.msk.f32.mxu0 %vm10408_vm0, %v10406_v6  ;;  %7809 = vmatprep.mubr.msk.f32.mxu1 %vm10408_vm0, %v10406_v6 }
 0x62d   :  { %8975 = vmatpush3.bf16.msra.mxu0 %v10932_v28  ;;  %8987 = vmatpush3.bf16.msra.mxu1 %v10985_v0 }
 0x62e   :  { %8976 = vmatprep.subr.bf16.mxu0 %v10407_v30  ;;  %8988 = vmatprep.subr.bf16.mxu1 %v10407_v30 }
 0x631   :  { %8978 = vmatpush3.bf16.msra.mxu0 %v10936_v32  ;;  %8990 = vmatpush3.bf16.msra.mxu1 %v10991_v4 }
 0x632   :  { %8979 = vmatprep.subr.bf16.mxu0 %v10407_v30  ;;  %8991 = vmatprep.subr.bf16.mxu1 %v10407_v30 }
 0x635   :  { %8981 = vmatpush3.bf16.msra.mxu0 %v10940_v35  ;;  %8993 = vmatpush3.bf16.msra.mxu1 %v10995_v10 }
 0x636   :  { %8994 = vmatprep.subr.bf16.mxu0 %v10407_v30  ;;  %9006 = vmatprep.subr.bf16.mxu1 %v10407_v30 }
 0x638   :  { %7791 = vmatmul.mubr.msk.f32.vlgmr.msra.gmra.mrb[12].mxu0 %vm705_vm3, %v1390_v63  ;;  %7810 = vmatmul.mubr.msk.f32.vlgmr.msra.gmra.mrb[18].mxu1 %vm705_vm3, %v1390_v63 }
 0x639   :  { %8996 = vmatpush3.bf16.msra.mxu0 %v10904_v5  ;;  %9008 = vmatpush3.bf16.msra.mxu1 %v10959_v49 }
 0x63a   :  { %8997 = vmatprep.subr.bf16.mxu0 %v10407_v30  ;;  %9009 = vmatprep.subr.bf16.mxu1 %v10407_v30 }
 0x63b   :  { %7828 = vmatprep.mubr.msk.f32.mxu0 %vm10408_vm0, %v10406_v6  ;;  %7847 = vmatprep.mubr.msk.f32.mxu1 %vm10408_vm0, %v10406_v6 }
 0x63d   :  { %8999 = vmatpush3.bf16.msra.mxu0 %v10910_v13  ;;  %9011 = vmatpush3.bf16.msra.mxu1 %v10965_v52 }
 0x63e   :  { %9000 = vmatprep.subr.bf16.mxu0 %v10407_v30  ;;  %9012 = vmatprep.subr.bf16.mxu1 %v10407_v30 }
 0x641   :  { %9002 = vmatpush3.bf16.msra.mxu0 %v10914_v16  ;;  %9014 = vmatpush3.bf16.msra.mxu1 %v10970_v55 }
 0x642   :  { %9003 = vmatprep.subr.bf16.mxu0 %v10407_v30  ;;  %9015 = vmatprep.subr.bf16.mxu1 %v10407_v30 }
 0x645   :  { %9005 = vmatpush3.bf16.msra.mxu0 %v10919_v19  ;;  %9017 = vmatpush3.bf16.msra.mxu1 %v10976_v58 }
 0x646   :  { %9018 = vmatprep.subr.bf16.mxu0 %v10407_v30  ;;  %9030 = vmatprep.subr.bf16.mxu1 %v10407_v30 }
 0x6fb   :  { %v1459_v38 = vpop.f32.mrb[10].mxu0  ;;  %v1533_v1 = vpop.f32.mrb[16].mxu1 }
 0x6fc   :  { %v1464_v2 = vrot.slane %v1459_v38, 4  ;;  %v1538_v7 = vrot.slane %v1533_v1, 4  ;;  %v7754_v9 = vpop.f32.mrb[11].mxu0  ;;  %v7773_v12 = vpop.f32.mrb[17].mxu1 }
 0x6fe   :  { %v1466_v15 = vadd.f32 %v1464_v2, %v11028_v54  ;;  %1539 = vrot.lane.b32.xlu0 %v1538_v7, %s10409_s19 }
 0x700   :  { %v6877_v20 = vmul.f32 -1.442695, %v1466_v15 }
 0x702   :  { %9727 = vpow2.f32 %v6877_v20 }
 0x70b   :  { %v1609_v21 = vpop.f32.mrb[12].mxu0  ;;  %v1683_v11 = vpop.f32.mrb[18].mxu1 }
 0x70c   :  { %v9728_v23 = vpop.eup %9727  ;;  %v1614_v24 = vrot.slane %v1609_v21, 4  ;;  %v1688_v26 = vrot.slane %v1683_v11, 4  ;;  %v7792_v27 = vpop.f32.mrb[13].mxu0 }
 0x70d   :  { %v7811_v14 = vpop.f32.mrb[19].mxu1  ;;  %v1706_v29 = vadd.f32 1.0, %v9728_v23 }
 0x70e   :  { %v1616_v31 = vadd.f32 %v1614_v24, %v11032_v57  ;;  %1689 = vrot.lane.b32.xlu1 %v1688_v26, %s10409_s19 }
 0x70f   :  { %9729 = vrcp.f32 %v1706_v29 }
 0x710   :  { %9731 = vtanh.f32 %v1616_v31 }
 0x719   :  { %v9730_v33 = vpop.eup %9729 }
 0x71a   :  { %v9732_v34 = vpop.eup %9731 }
 0x71b   :  { %v1710_v3 = vmul.f32 %v9732_v34, %v9730_v33 }
 0x71d   :  { %1712 = vrot.lane.b32.xlu0 %v1710_v3, %s10409_s19 }
 0x770   :  { %v1540_v36 = vpop.permute.xlu0 %1539 }
 0x771   :  { %v1542_v37 = vadd.f32 %v1540_v36, %v11028_v54 }
 0x773   :  { %v6876_v39 = vmul.f32 -1.442695, %v1542_v37 }
 0x775   :  { %9733 = vpow2.f32 %v6876_v39 }
 0x77f   :  { %v9734_v44 = vpop.eup %9733 }
 0x780   :  { %v1696_v45 = vadd.f32 1.0, %v9734_v44  ;;  %v1690_v46 = vpop.permute.xlu1 %1689 }
 0x781   :  { %v1692_v47 = vadd.f32 %v1690_v46, %v11032_v57 }
 0x782   :  { %9735 = vrcp.f32 %v1696_v45 }
 0x783   :  { %v6878_v48 = vmul.f32 -1.442695, %v1692_v47 }
 0x785   :  { %9737 = vpow2.f32 %v6878_v48 }
 0x78c   :  { %v9736_v53 = vpop.eup %9735 }
 0x78d   :  { %v1702_v62 = vmul.f32 %v9736_v53, %v1700_v51 }
 0x78f   :  { %v9738_v63 = vpop.eup %9737  ;;  %v1713_v38 = vpop.permute.xlu0 %1712 }
 0x790   :  { %v1719_v1 = vadd.f32 1.0, %v9738_v63  ;;  %v11160_v2 = vadd.f32 %v1713_v38, %v1702_v62 }
 0x792   :  { %9739 = vrcp.f32 %v1719_v1  ;;  %v2044_v1 = vrot.slane %v11160_v2, 6 }
 0x793   :  { %9741 = vtanh.f32 %v11160_v2 }
 0x79c   :  { %v9740_v54 = vpop.eup %9739 }
 0x79d   :  { %v9742_v7 = vpop.eup %9741 }
 0x79e   :  { %v11163_v9 = vmul.f32 %v9742_v7, %v9740_v54 }
 0x7a0   :  { %v1732_v57 = vrot.slane %v11163_v9, 4 }
 0x7a2   :  { %1733 = vrot.lane.b32.xlu1 %v1732_v57, %s10409_s19 }
 0x814   :  { %v1734_v12 = vpop.permute.xlu1 %1733 }
 0x815   :  { %7829 = vmatmul.mubr.msk.f32.vlgmr.msra.gmra.mrb[14].mxu0 %vm705_vm3, %v1734_v12  ;;  %7848 = vmatmul.mubr.msk.f32.vlgmr.msra.gmra.mrb[20].mxu1 %vm705_vm3, %v1734_v12 }
 0x816   :  { %9020 = vmatpush3.bf16.msra.mxu0 %v10923_v25  ;;  %9032 = vmatpush3.bf16.msra.mxu1 %v10980_v61 }
 0x817   :  { %9021 = vmatprep.subr.bf16.mxu0 %v10407_v30  ;;  %9033 = vmatprep.subr.bf16.mxu1 %v10407_v30 }
 0x818   :  { %7866 = vmatprep.mubr.msk.f32.mxu0 %vm10408_vm0, %v10406_v6  ;;  %7885 = vmatprep.mubr.msk.f32.mxu1 %vm10408_vm0, %v10406_v6 }
 0x81a   :  { %9023 = vmatpush3.bf16.msra.mxu0 %v10932_v28  ;;  %9035 = vmatpush3.bf16.msra.mxu1 %v10985_v0 }
 0x81b   :  { %9024 = vmatprep.subr.bf16.mxu0 %v10407_v30  ;;  %9036 = vmatprep.subr.bf16.mxu1 %v10407_v30 }
 0x81e   :  { %9026 = vmatpush3.bf16.msra.mxu0 %v10936_v32  ;;  %9038 = vmatpush3.bf16.msra.mxu1 %v10991_v4 }
 0x81f   :  { %9027 = vmatprep.subr.bf16.mxu0 %v10407_v30  ;;  %9039 = vmatprep.subr.bf16.mxu1 %v10407_v30 }
 0x822   :  { %9029 = vmatpush3.bf16.msra.mxu0 %v10940_v35  ;;  %9041 = vmatpush3.bf16.msra.mxu1 %v10995_v10 }
 0x823   :  { %9042 = vmatprep.subr.bf16.mxu0 %v10407_v30  ;;  %9054 = vmatprep.subr.bf16.mxu1 %v10407_v30 }
 0x825   :  { %7867 = vmatmul.mubr.msk.f32.vlgmr.msra.gmra.mrb[16].mxu0 %vm705_vm3, %v1734_v12  ;;  %7886 = vmatmul.mubr.msk.f32.vlgmr.msra.gmra.mrb[22].mxu1 %vm705_vm3, %v1734_v12 }
 0x826   :  { %9044 = vmatpush3.bf16.msra.mxu0 %v10904_v5  ;;  %9056 = vmatpush3.bf16.msra.mxu1 %v10959_v49 }
 0x827   :  { %9045 = vmatprep.subr.bf16.mxu0 %v10407_v30  ;;  %9057 = vmatprep.subr.bf16.mxu1 %v10407_v30 }
 0x828   :  { %7904 = vmatprep.mubr.msk.f32.mxu0 %vm10408_vm0, %v10406_v6  ;;  %7923 = vmatprep.mubr.msk.f32.mxu1 %vm10408_vm0, %v10406_v6 }
 0x82a   :  { %9047 = vmatpush3.bf16.msra.mxu0 %v10910_v13  ;;  %9059 = vmatpush3.bf16.msra.mxu1 %v10965_v52 }
 0x82b   :  { %9048 = vmatprep.subr.bf16.mxu0 %v10407_v30  ;;  %9060 = vmatprep.subr.bf16.mxu1 %v10407_v30 }
 0x82e   :  { %9050 = vmatpush3.bf16.msra.mxu0 %v10914_v16  ;;  %9062 = vmatpush3.bf16.msra.mxu1 %v10970_v55 }
 0x82f   :  { %9051 = vmatprep.subr.bf16.mxu0 %v10407_v30  ;;  %9063 = vmatprep.subr.bf16.mxu1 %v10407_v30 }
 0x832   :  { %9053 = vmatpush3.bf16.msra.mxu0 %v10919_v19  ;;  %9065 = vmatpush3.bf16.msra.mxu1 %v10976_v58 }
 0x833   :  { %9066 = vmatprep.subr.bf16.mxu0 %v10407_v30  ;;  %9078 = vmatprep.subr.bf16.mxu1 %v10407_v30 }
 0x8e8   :  { %v1803_v50 = vpop.f32.mrb[14].mxu0  ;;  %v1877_v15 = vpop.f32.mrb[20].mxu1 }
 0x8e9   :  { %v1808_v20 = vrot.slane %v1803_v50, 2  ;;  %v1882_v21 = vrot.slane %v1877_v15, 2  ;;  %v7830_v11 = vpop.f32.mrb[15].mxu0  ;;  %v7849_v23 = vpop.f32.mrb[21].mxu1 }
 0x8eb   :  { %v1810_v24 = vadd.f32 %v1808_v20, %v11030_v56  ;;  %1883 = vrot.lane.b32.xlu0 %v1882_v21, %s10409_s19 }
 0x8ed   :  { %v6884_v26 = vmul.f32 -1.442695, %v1810_v24 }
 0x8ef   :  { %9743 = vpow2.f32 %v6884_v26 }
 0x8f8   :  { %v1953_v27 = vpop.f32.mrb[16].mxu0  ;;  %v2027_v14 = vpop.f32.mrb[22].mxu1 }
 0x8f9   :  { %v9744_v29 = vpop.eup %9743  ;;  %v1958_v31 = vrot.slane %v1953_v27, 2  ;;  %v2032_v33 = vrot.slane %v2027_v14, 2  ;;  %v7868_v34 = vpop.f32.mrb[17].mxu0 }
 0x8fa   :  { %v7887_v3 = vpop.f32.mrb[23].mxu1  ;;  %v2050_v36 = vadd.f32 1.0, %v9744_v29 }
 0x8fb   :  { %v1960_v37 = vadd.f32 %v1958_v31, %v11034_v59  ;;  %2033 = vrot.lane.b32.xlu1 %v2032_v33, %s10409_s19 }
 0x8fc   :  { %9745 = vrcp.f32 %v2050_v36 }
 0x8fd   :  { %9747 = vtanh.f32 %v1960_v37 }
 0x906   :  { %v9746_v39 = vpop.eup %9745 }
 0x907   :  { %v9748_v44 = vpop.eup %9747 }
 0x908   :  { %v2054_v45 = vmul.f32 %v9748_v44, %v9746_v39 }
 0x90a   :  { %2056 = vrot.lane.b32.xlu0 %v2054_v45, %s10409_s19 }
 0x95d   :  { %v1884_v46 = vpop.permute.xlu0 %1883 }
 0x95e   :  { %v1886_v47 = vadd.f32 %v1884_v46, %v11030_v56 }
 0x960   :  { %v6883_v48 = vmul.f32 -1.442695, %v1886_v47 }
 0x962   :  { %9749 = vpow2.f32 %v6883_v48 }
 0x96c   :  { %v9750_v51 = vpop.eup %9749 }
 0x96d   :  { %v2040_v53 = vadd.f32 1.0, %v9750_v51  ;;  %v2034_v62 = vpop.permute.xlu1 %2033 }
 0x96e   :  { %v2036_v63 = vadd.f32 %v2034_v62, %v11034_v59 }
 0x96f   :  { %9751 = vrcp.f32 %v2040_v53 }
 0x970   :  { %v6885_v38 = vmul.f32 -1.442695, %v2036_v63 }
 0x972   :  { %9753 = vpow2.f32 %v6885_v38 }
 0x979   :  { %v9752_v54 = vpop.eup %9751 }
 0x97a   :  { %v2046_v7 = vmul.f32 %v9752_v54, %v2044_v1 }
 0x97c   :  { %v9754_v57 = vpop.eup %9753  ;;  %v2057_v12 = vpop.permute.xlu0 %2056 }
 0x97d   :  { %v2063_v50 = vadd.f32 1.0, %v9754_v57  ;;  %v11219_v15 = vadd.f32 %v2057_v12, %v2046_v7 }
 0x97f   :  { %9755 = vrcp.f32 %v2063_v50  ;;  %v2388_v1 = vrot.slane %v11219_v15, 6 }
 0x980   :  { %9757 = vtanh.f32 %v11219_v15 }
 0x989   :  { %v9756_v56 = vpop.eup %9755 }
 0x98a   :  { %v9758_v20 = vpop.eup %9757 }
 0x98b   :  { %v11222_v21 = vmul.f32 %v9758_v20, %v9756_v56 }
 0x98d   :  { %v2080_v59 = vrot.slane %v11222_v21, 6 }
 0x98f   :  { %2081 = vrot.lane.b32.xlu1 %v2080_v59, %s10409_s19 }
 0xa01   :  { %v2082_v11 = vpop.permute.xlu1 %2081 }
 0xa02   :  { %7905 = vmatmul.mubr.msk.f32.vlgmr.msra.gmra.mrb[18].mxu0 %vm705_vm3, %v2082_v11  ;;  %7924 = vmatmul.mubr.msk.f32.vlgmr.msra.gmra.mrb[24].mxu1 %vm705_vm3, %v2082_v11 }
 0xa03   :  { %9068 = vmatpush3.bf16.msra.mxu0 %v10923_v25  ;;  %9080 = vmatpush3.bf16.msra.mxu1 %v10980_v61 }
 0xa04   :  { %9069 = vmatprep.subr.bf16.mxu0 %v10407_v30  ;;  %9081 = vmatprep.subr.bf16.mxu1 %v10407_v30 }
 0xa05   :  { %7942 = vmatprep.mubr.msk.f32.mxu0 %vm10408_vm0, %v10406_v6  ;;  %7961 = vmatprep.mubr.msk.f32.mxu1 %vm10408_vm0, %v10406_v6 }
 0xa07   :  { %9071 = vmatpush3.bf16.msra.mxu0 %v10932_v28  ;;  %9083 = vmatpush3.bf16.msra.mxu1 %v10985_v0 }
 0xa08   :  { %9072 = vmatprep.subr.bf16.mxu0 %v10407_v30  ;;  %9084 = vmatprep.subr.bf16.mxu1 %v10407_v30 }
 0xa0b   :  { %9074 = vmatpush3.bf16.msra.mxu0 %v10936_v32  ;;  %9086 = vmatpush3.bf16.msra.mxu1 %v10991_v4 }
 0xa0c   :  { %9075 = vmatprep.subr.bf16.mxu0 %v10407_v30  ;;  %9087 = vmatprep.subr.bf16.mxu1 %v10407_v30 }
 0xa0f   :  { %9077 = vmatpush3.bf16.msra.mxu0 %v10940_v35  ;;  %9089 = vmatpush3.bf16.msra.mxu1 %v10995_v10 }
 0xa10   :  { %9090 = vmatprep.subr.bf16.mxu0 %v10407_v30  ;;  %9102 = vmatprep.subr.bf16.mxu1 %v10407_v30 }
 0xa12   :  { %7943 = vmatmul.mubr.msk.f32.vlgmr.msra.gmra.mrb[20].mxu0 %vm705_vm3, %v2082_v11  ;;  %7962 = vmatmul.mubr.msk.f32.vlgmr.msra.gmra.mrb[26].mxu1 %vm705_vm3, %v2082_v11 }
 0xa13   :  { %9092 = vmatpush3.bf16.msra.mxu0 %v10904_v5  ;;  %9104 = vmatpush3.bf16.msra.mxu1 %v10959_v49 }
 0xa14   :  { %9093 = vmatprep.subr.bf16.mxu0 %v10407_v30  ;;  %9105 = vmatprep.subr.bf16.mxu1 %v10407_v30 }
 0xa15   :  { %7980 = vmatprep.mubr.msk.f32.mxu0 %vm10408_vm0, %v10406_v6  ;;  %7999 = vmatprep.mubr.msk.f32.mxu1 %vm10408_vm0, %v10406_v6 }
 0xa17   :  { %9095 = vmatpush3.bf16.msra.mxu0 %v10910_v13  ;;  %9107 = vmatpush3.bf16.msra.mxu1 %v10965_v52 }
 0xa18   :  { %9096 = vmatprep.subr.bf16.mxu0 %v10407_v30  ;;  %9108 = vmatprep.subr.bf16.mxu1 %v10407_v30 }
 0xa1b   :  { %9098 = vmatpush3.bf16.msra.mxu0 %v10914_v16  ;;  %9110 = vmatpush3.bf16.msra.mxu1 %v10970_v55 }
 0xa1c   :  { %9099 = vmatprep.subr.bf16.mxu0 %v10407_v30  ;;  %9111 = vmatprep.subr.bf16.mxu1 %v10407_v30 }
 0xa1f   :  { %9101 = vmatpush3.bf16.msra.mxu0 %v10919_v19  ;;  %9113 = vmatpush3.bf16.msra.mxu1 %v10976_v58 }
 0xa20   :  { %9114 = vmatprep.subr.bf16.mxu0 %v10407_v30  ;;  %9126 = vmatprep.subr.bf16.mxu1 %v10407_v30 }
 0xad5   :  { %v2151_v2 = vpop.f32.mrb[18].mxu0  ;;  %v2222_v23 = vpop.f32.mrb[24].mxu1 }
 0xad6   :  { %v2155_v24 = vadd.f32 %v2151_v2, %v11020_v40  ;;  %2227 = vrot.lane.b32.xlu0 %v2222_v23, %s10409_s19  ;;  %v7906_v26 = vpop.f32.mrb[19].mxu0  ;;  %v7925_v27 = vpop.f32.mrb[25].mxu1 }
 0xad8   :  { %v6891_v14 = vmul.f32 -1.442695, %v2155_v24 }
 0xada   :  { %9759 = vpow2.f32 %v6891_v14 }
 0xae4   :  { %v9760_v29 = vpop.eup %9759 }
 0xae5   :  { %v2394_v31 = vadd.f32 1.0, %v9760_v29  ;;  %v2301_v33 = vpop.f32.mrb[20].mxu0  ;;  %v2372_v34 = vpop.f32.mrb[26].mxu1 }
 0xae6   :  { %v2305_v3 = vadd.f32 %v2301_v33, %v11024_v42  ;;  %2377 = vrot.lane.b32.xlu1 %v2372_v34, %s10409_s19  ;;  %v7944_v36 = vpop.f32.mrb[21].mxu0  ;;  %v7963_v37 = vpop.f32.mrb[27].mxu1 }
 0xae7   :  { %9761 = vrcp.f32 %v2394_v31 }
 0xae8   :  { %9763 = vtanh.f32 %v2305_v3 }
 0xaf1   :  { %v9762_v39 = vpop.eup %9761 }
 0xaf2   :  { %v9764_v44 = vpop.eup %9763 }
 0xaf3   :  { %v2398_v45 = vmul.f32 %v9764_v44, %v9762_v39 }
 0xaf5   :  { %2400 = vrot.lane.b32.xlu0 %v2398_v45, %s10409_s19 }
 0xb48   :  { %v2228_v46 = vpop.permute.xlu0 %2227 }
 0xb49   :  { %v2230_v47 = vadd.f32 %v2228_v46, %v11020_v40 }
 0xb4b   :  { %v6890_v48 = vmul.f32 -1.442695, %v2230_v47 }
 0xb4d   :  { %9765 = vpow2.f32 %v6890_v48 }
 0xb57   :  { %v9766_v51 = vpop.eup %9765 }
 0xb58   :  { %v2384_v53 = vadd.f32 1.0, %v9766_v51  ;;  %v2378_v62 = vpop.permute.xlu1 %2377 }
 0xb59   :  { %v2380_v63 = vadd.f32 %v2378_v62, %v11024_v42 }
 0xb5a   :  { %9767 = vrcp.f32 %v2384_v53 }
 0xb5b   :  { %v6892_v38 = vmul.f32 -1.442695, %v2380_v63 }
 0xb5d   :  { %9769 = vpow2.f32 %v6892_v38 }
 0xb64   :  { %v9768_v54 = vpop.eup %9767 }
 0xb65   :  { %v2390_v7 = vmul.f32 %v9768_v54, %v2388_v1 }
 0xb67   :  { %v9770_v57 = vpop.eup %9769  ;;  %v2401_v12 = vpop.permute.xlu0 %2400 }
 0xb68   :  { %v2407_v50 = vadd.f32 1.0, %v9770_v57  ;;  %v11278_v56 = vadd.f32 %v2401_v12, %v2390_v7 }
 0xb6a   :  { %9771 = vrcp.f32 %v2407_v50  ;;  %v2733_v12 = vrot.slane %v11278_v56, 6 }
 0xb6b   :  { %9773 = vtanh.f32 %v11278_v56 }
 0xb74   :  { %v9772_v20 = vpop.eup %9771 }
 0xb75   :  { %v9774_v59 = vpop.eup %9773 }
 0xb76   :  { %v2411_v11 = vmul.f32 %v9774_v59, %v9772_v20 }
 0xb78   :  { %2413 = vrot.lane.b32.xlu1 %v2411_v11, %s10409_s19 }
 0xbea   :  { %v11282_v2 = vpop.permute.xlu1 %2413 }
 0xbeb   :  { %7981 = vmatmul.mubr.msk.f32.vlgmr.msra.gmra.mrb[22].mxu0 %vm705_vm3, %v11282_v2  ;;  %8000 = vmatmul.mubr.msk.f32.vlgmr.msra.gmra.mrb[28].mxu1 %vm705_vm3, %v11282_v2 }
 0xbec   :  { %9116 = vmatpush3.bf16.msra.mxu0 %v10923_v25  ;;  %9128 = vmatpush3.bf16.msra.mxu1 %v10980_v61 }
 0xbed   :  { %9117 = vmatprep.subr.bf16.mxu0 %v10407_v30  ;;  %9129 = vmatprep.subr.bf16.mxu1 %v10407_v30 }
 0xbee   :  { %8018 = vmatprep.mubr.msk.f32.mxu0 %vm10408_vm0, %v10406_v6  ;;  %8037 = vmatprep.mubr.msk.f32.mxu1 %vm10408_vm0, %v10406_v6 }
 0xbf0   :  { %9119 = vmatpush3.bf16.msra.mxu0 %v10932_v28  ;;  %9131 = vmatpush3.bf16.msra.mxu1 %v10985_v0 }
 0xbf1   :  { %9120 = vmatprep.subr.bf16.mxu0 %v10407_v30  ;;  %9132 = vmatprep.subr.bf16.mxu1 %v10407_v30 }
 0xbf4   :  { %9122 = vmatpush3.bf16.msra.mxu0 %v10936_v32  ;;  %9134 = vmatpush3.bf16.msra.mxu1 %v10991_v4 }
 0xbf5   :  { %9123 = vmatprep.subr.bf16.mxu0 %v10407_v30  ;;  %9135 = vmatprep.subr.bf16.mxu1 %v10407_v30 }
 0xbf8   :  { %9125 = vmatpush3.bf16.msra.mxu0 %v10940_v35  ;;  %9137 = vmatpush3.bf16.msra.mxu1 %v10995_v10 }
 0xbf9   :  { %9138 = vmatprep.subr.bf16.mxu0 %v10407_v30  ;;  %9150 = vmatprep.subr.bf16.mxu1 %v10407_v30 }
 0xbfb   :  { %8019 = vmatmul.mubr.msk.f32.vlgmr.msra.gmra.mrb[24].mxu0 %vm705_vm3, %v11282_v2  ;;  %8038 = vmatmul.mubr.msk.f32.vlgmr.msra.gmra.mrb[30].mxu1 %vm705_vm3, %v11282_v2 }
 0xbfc   :  { %9140 = vmatpush3.bf16.msra.mxu0 %v10904_v5  ;;  %9152 = vmatpush3.bf16.msra.mxu1 %v10959_v49 }
 0xbfd   :  { %9141 = vmatprep.subr.bf16.mxu0 %v10407_v30  ;;  %9153 = vmatprep.subr.bf16.mxu1 %v10407_v30 }
 0xbfe   :  { %8056 = vmatprep.mubr.msk.f32.mxu0 %vm10408_vm0, %v10406_v6  ;;  %8075 = vmatprep.mubr.msk.f32.mxu1 %vm10408_vm0, %v10406_v6 }
 0xc00   :  { %9143 = vmatpush3.bf16.msra.mxu0 %v10910_v13  ;;  %9155 = vmatpush3.bf16.msra.mxu1 %v10965_v52 }
 0xc01   :  { %9144 = vmatprep.subr.bf16.mxu0 %v10407_v30  ;;  %9156 = vmatprep.subr.bf16.mxu1 %v10407_v30 }
 0xc04   :  { %9146 = vmatpush3.bf16.msra.mxu0 %v10914_v16  ;;  %9158 = vmatpush3.bf16.msra.mxu1 %v10970_v55 }
 0xc05   :  { %9147 = vmatprep.subr.bf16.mxu0 %v10407_v30  ;;  %9159 = vmatprep.subr.bf16.mxu1 %v10407_v30 }
 0xc08   :  { %9149 = vmatpush3.bf16.msra.mxu0 %v10919_v19  ;;  %9161 = vmatpush3.bf16.msra.mxu1 %v10976_v58 }
 0xc09   :  { %9162 = vmatprep.subr.bf16.mxu0 %v10407_v30  ;;  %9174 = vmatprep.subr.bf16.mxu1 %v10407_v30 }
 0xcbe   :  { %v2489_v15 = vpop.f32.mrb[22].mxu0  ;;  %v2563_v23 = vpop.f32.mrb[28].mxu1 }
 0xcbf   :  { %v2494_v24 = vrot.slane %v2489_v15, 6  ;;  %v2568_v26 = vrot.slane %v2563_v23, 6  ;;  %v7982_v27 = vpop.f32.mrb[23].mxu0  ;;  %v8001_v14 = vpop.f32.mrb[29].mxu1 }
 0xcc1   :  { %v2496_v29 = vadd.f32 %v2494_v24, %v11022_v41  ;;  %2569 = vrot.lane.b32.xlu0 %v2568_v26, %s10409_s19 }
 0xcc3   :  { %v6898_v31 = vmul.f32 -1.442695, %v2496_v29 }
 0xcc5   :  { %9775 = vpow2.f32 %v6898_v31 }
 0xcce   :  { %v2642_v33 = vpop.f32.mrb[24].mxu0  ;;  %v2716_v34 = vpop.f32.mrb[30].mxu1 }
 0xccf   :  { %v9776_v3 = vpop.eup %9775  ;;  %v2647_v36 = vrot.slane %v2642_v33, 6  ;;  %v2721_v37 = vrot.slane %v2716_v34, 6  ;;  %v8020_v39 = vpop.f32.mrb[25].mxu0 }
 0xcd0   :  { %v8039_v44 = vpop.f32.mrb[31].mxu1  ;;  %v2739_v45 = vadd.f32 1.0, %v9776_v3 }
 0xcd1   :  { %v2649_v46 = vadd.f32 %v2647_v36, %v11026_v43  ;;  %2722 = vrot.lane.b32.xlu1 %v2721_v37, %s10409_s19 }
 0xcd2   :  { %9777 = vrcp.f32 %v2739_v45 }
 0xcd3   :  { %9779 = vtanh.f32 %v2649_v46 }
 0xcdc   :  { %v9778_v47 = vpop.eup %9777 }
 0xcdd   :  { %v9780_v48 = vpop.eup %9779 }
 0xcde   :  { %v2743_v51 = vmul.f32 %v9780_v48, %v9778_v47 }
 0xce0   :  { %2745 = vrot.lane.b32.xlu0 %v2743_v51, %s10409_s19 }
 0xd33   :  { %v2570_v53 = vpop.permute.xlu0 %2569 }
 0xd34   :  { %v2572_v62 = vadd.f32 %v2570_v53, %v11022_v41 }
 0xd36   :  { %v6897_v63 = vmul.f32 -1.442695, %v2572_v62 }
 0xd38   :  { %9781 = vpow2.f32 %v6897_v63 }
 0xd42   :  { %v9782_v38 = vpop.eup %9781 }
 0xd43   :  { %v2729_v1 = vadd.f32 1.0, %v9782_v38  ;;  %v2723_v54 = vpop.permute.xlu1 %2722 }
 0xd44   :  { %v2725_v7 = vadd.f32 %v2723_v54, %v11026_v43 }
 0xd45   :  { %9783 = vrcp.f32 %v2729_v1 }
 0xd46   :  { %v6899_v57 = vmul.f32 -1.442695, %v2725_v7 }
 0xd48   :  { %9785 = vpow2.f32 %v6899_v57 }
 0xd4f   :  { %v9784_v50 = vpop.eup %9783 }
 0xd50   :  { %v2735_v20 = vmul.f32 %v9784_v50, %v2733_v12 }
 0xd52   :  { %v9786_v59 = vpop.eup %9785  ;;  %v2746_v11 = vpop.permute.xlu0 %2745 }
 0xd53   :  { %v2752_v15 = vadd.f32 1.0, %v9786_v59  ;;  %v11340_v23 = vadd.f32 %v2746_v11, %v2735_v20 }
 0xd55   :  { %9787 = vrcp.f32 %v2752_v15  ;;  %v3075_v7 = vrot.slane %v11340_v23, 6 }
 0xd56   :  { %9789 = vtanh.f32 %v11340_v23 }
 0xd5f   :  { %v9788_v24 = vpop.eup %9787 }
 0xd60   :  { %v9790_v26 = vpop.eup %9789 }
 0xd61   :  { %v11343_v27 = vmul.f32 %v9790_v26, %v9788_v24 }
 0xd63   :  { %v2763_v14 = vrot.slane %v11343_v27, 2 }
 0xd65   :  { %2764 = vrot.lane.b32.xlu1 %v2763_v14, %s10409_s19 }
 0xdd7   :  { %v2765_v29 = vpop.permute.xlu1 %2764 }
 0xdd8   :  { %8057 = vmatmul.mubr.msk.f32.vlgmr.msra.gmra.mrb[26].mxu0 %vm705_vm3, %v2765_v29  ;;  %8076 = vmatmul.mubr.msk.f32.vlgmr.msra.gmra.mrb[32].mxu1 %vm705_vm3, %v2765_v29 }
 0xdd9   :  { %9164 = vmatpush3.bf16.msra.mxu0 %v10923_v25  ;;  %9176 = vmatpush3.bf16.msra.mxu1 %v10980_v61 }
 0xdda   :  { %9165 = vmatprep.subr.bf16.mxu0 %v10407_v30  ;;  %9177 = vmatprep.subr.bf16.mxu1 %v10407_v30 }
 0xddb   :  { %8094 = vmatprep.mubr.msk.f32.mxu0 %vm10408_vm0, %v10406_v6  ;;  %8113 = vmatprep.mubr.msk.f32.mxu1 %vm10408_vm0, %v10406_v6 }
 0xddd   :  { %9167 = vmatpush3.bf16.msra.mxu0 %v10932_v28  ;;  %9179 = vmatpush3.bf16.msra.mxu1 %v10985_v0 }
 0xdde   :  { %9168 = vmatprep.subr.bf16.mxu0 %v10407_v30  ;;  %9180 = vmatprep.subr.bf16.mxu1 %v10407_v30 }
 0xde1   :  { %9170 = vmatpush3.bf16.msra.mxu0 %v10936_v32  ;;  %9182 = vmatpush3.bf16.msra.mxu1 %v10991_v4 }
 0xde2   :  { %9171 = vmatprep.subr.bf16.mxu0 %v10407_v30  ;;  %9183 = vmatprep.subr.bf16.mxu1 %v10407_v30 }
 0xde5   :  { %9173 = vmatpush3.bf16.msra.mxu0 %v10940_v35  ;;  %9185 = vmatpush3.bf16.msra.mxu1 %v10995_v10 }
 0xde6   :  { %9186 = vmatprep.subr.bf16.mxu0 %v10407_v30  ;;  %9198 = vmatprep.subr.bf16.mxu1 %v10407_v30 }
 0xde8   :  { %8095 = vmatmul.mubr.msk.f32.vlgmr.msra.gmra.mrb[28].mxu0 %vm705_vm3, %v2765_v29  ;;  %8114 = vmatmul.mubr.msk.f32.vlgmr.msra.gmra.mrb[34].mxu1 %vm705_vm3, %v2765_v29 }
 0xde9   :  { %9188 = vmatpush3.bf16.msra.mxu0 %v10904_v5  ;;  %9200 = vmatpush3.bf16.msra.mxu1 %v10959_v49 }
 0xdea   :  { %9189 = vmatprep.subr.bf16.mxu0 %v10407_v30  ;;  %9201 = vmatprep.subr.bf16.mxu1 %v10407_v30 }
 0xdeb   :  { %8132 = vmatprep.mubr.msk.f32.mxu0 %vm10408_vm0, %v10406_v6  ;;  %8151 = vmatprep.mubr.msk.f32.mxu1 %vm10408_vm0, %v10406_v6 }
 0xded   :  { %9191 = vmatpush3.bf16.msra.mxu0 %v10910_v13  ;;  %9203 = vmatpush3.bf16.msra.mxu1 %v10965_v52 }
 0xdee   :  { %9192 = vmatprep.subr.bf16.mxu0 %v10407_v30  ;;  %9204 = vmatprep.subr.bf16.mxu1 %v10407_v30 }
 0xdf1   :  { %9194 = vmatpush3.bf16.msra.mxu0 %v10914_v16  ;;  %9206 = vmatpush3.bf16.msra.mxu1 %v10970_v55 }
 0xdf2   :  { %9195 = vmatprep.subr.bf16.mxu0 %v10407_v30  ;;  %9207 = vmatprep.subr.bf16.mxu1 %v10407_v30 }
 0xdf5   :  { %9197 = vmatpush3.bf16.msra.mxu0 %v10919_v19  ;;  %9209 = vmatpush3.bf16.msra.mxu1 %v10976_v58 }
 0xdf6   :  { %9210 = vmatprep.subr.bf16.mxu0 %v10407_v30  ;;  %9222 = vmatprep.subr.bf16.mxu1 %v10407_v30 }
 0xeab   :  { %v2834_v5 = vpop.f32.mrb[26].mxu0  ;;  %v2908_v13 = vpop.f32.mrb[32].mxu1 }
 0xeac   :  { %v2839_v49 = vrot.slane %v2834_v5, 4  ;;  %v2913_v52 = vrot.slane %v2908_v13, 4  ;;  %v8058_v56 = vpop.f32.mrb[27].mxu0  ;;  %v8077_v16 = vpop.f32.mrb[33].mxu1 }
 0xeae   :  { %v2841_v55 = vadd.f32 %v2839_v49, %v11020_v40  ;;  %2914 = vrot.lane.b32.xlu0 %v2913_v52, %s10409_s19 }
 0xeb0   :  { %v6905_v31 = vmul.f32 -1.442695, %v2841_v55 }
 0xeb2   :  { %9791 = vpow2.f32 %v6905_v31 }
 0xebb   :  { %v2984_v33 = vpop.f32.mrb[28].mxu0  ;;  %v3058_v19 = vpop.f32.mrb[34].mxu1 }
 0xebc   :  { %v9792_v34 = vpop.eup %9791  ;;  %v2989_v58 = vrot.slane %v2984_v33, 4  ;;  %v3063_v3 = vrot.slane %v3058_v19, 4  ;;  %v8096_v36 = vpop.f32.mrb[29].mxu0  ;;  %v3450_v19 = vld [vmem:[%s12187_s10 + $0x8] sm:$0xff] }
 0xebd   :  { %v8115_v37 = vpop.f32.mrb[35].mxu1  ;;  %v3081_v39 = vadd.f32 1.0, %v9792_v34  ;;  %v3452_v34 = vld [vmem:[%s12187_s10 + $0x18] sm:$0xff]  ;;  %v3451_v36 = vld [vmem:[%s12187_s10 + $0x10] sm:$0xff] }
 0xebe   :  { %v2991_v44 = vadd.f32 %v2989_v58, %v11024_v42  ;;  %3064 = vrot.lane.b32.xlu1 %v3063_v3, %s10409_s19  ;;  %v3561_v58 = vld [vmem:[#allocation19 + $0x8] sm:$0xff]  ;;  %v3449_v3 = vld [vmem:[%s12187_s10] sm:$0xff] }
 0xebf   :  { %9793 = vrcp.f32 %v3081_v39  ;;  %v9236_v39 = vpack.c.bf16 %v3451_v36, %v3449_v3  ;;  %v3572_v36 = vld [vmem:[#allocation19 + $0x60] sm:$0xff] }
 0xec0   :  { %9795 = vtanh.f32 %v2991_v44  ;;  %v3560_v44 = vld [vmem:[#allocation19] sm:$0xff] }
 0xec9   :  { %v9794_v45 = vpop.eup %9793 }
 0xeca   :  { %v9796_v46 = vpop.eup %9795 }
 0xecb   :  { %v3085_v47 = vmul.f32 %v9796_v46, %v9794_v45  ;;  %v3562_v45 = vld [vmem:[#allocation19 + $0x10] sm:$0xff]  ;;  %v3454_v46 = vld [vmem:[%s12187_s10 + $0x28] sm:$0xff] }
 0xecd   :  { %3087 = vrot.lane.b32.xlu0 %v3085_v47, %s10409_s19  ;;  %v3456_v47 = vld [vmem:[%s12187_s10 + $0x38] sm:$0xff] }
 0xf20   :  { %v2915_v48 = vpop.permute.xlu0 %2914 }
 0xf21   :  { %v2917_v51 = vadd.f32 %v2915_v48, %v11020_v40  ;;  %v3565_v48 = vld [vmem:[#allocation19 + $0x28] sm:$0xff] }
 0xf23   :  { %v6904_v53 = vmul.f32 -1.442695, %v2917_v51  ;;  %v3567_v51 = vld [vmem:[#allocation19 + $0x38] sm:$0xff] }
 0xf25   :  { %9797 = vpow2.f32 %v6904_v53  ;;  %v9238_v53 = vpack.c.bf16 %v3456_v47, %v3454_v46 }
 0xf2f   :  { %v9798_v62 = vpop.eup %9797 }
 0xf30   :  { %v3071_v63 = vadd.f32 1.0, %v9798_v62  ;;  %v3065_v38 = vpop.permute.xlu1 %3064  ;;  %v9254_v62 = vpack.c.bf16 %v3567_v51, %v3565_v48  ;;  %v3653_v48 = vld [vmem:[#allocation22] sm:$0xff]  ;;  %v3654_v51 = vld [vmem:[#allocation22 + $0x8] sm:$0xff] }
 0xf31   :  { %v3067_v1 = vadd.f32 %v3065_v38, %v11024_v42  ;;  %v3455_v38 = vld [vmem:[%s12187_s10 + $0x30] sm:$0xff] }
 0xf32   :  { %9799 = vrcp.f32 %v3071_v63  ;;  %v3453_v63 = vld [vmem:[%s12187_s10 + $0x20] sm:$0xff] }
 0xf33   :  { %v6906_v54 = vmul.f32 -1.442695, %v3067_v1  ;;  %v3564_v1 = vld [vmem:[#allocation19 + $0x20] sm:$0xff] }
 0xf35   :  { %9801 = vpow2.f32 %v6906_v54  ;;  %v9240_v54 = vpack.c.bf16 %v3455_v38, %v3453_v63  ;;  %v11511_v63 = vpack.c.bf16 %v3654_v51, %v3653_v48 }
 0xf3c   :  { %v9800_v57 = vpop.eup %9799 }
 0xf3d   :  { %v3077_v12 = vmul.f32 %v9800_v57, %v3075_v7  ;;  %v3566_v7 = vld [vmem:[#allocation19 + $0x30] sm:$0xff]  ;;  %v3458_v57 = vld [vmem:[%s12187_s10 + $0x48] sm:$0xff] }
 0xf3f   :  { %v9802_v50 = vpop.eup %9801  ;;  %v3088_v20 = vpop.permute.xlu0 %3087 }
 0xf40   :  { %v3094_v59 = vadd.f32 1.0, %v9802_v50  ;;  %v11399_v11 = vadd.f32 %v3088_v20, %v3077_v12  ;;  %v3460_v12 = vld [vmem:[%s12187_s10 + $0x58] sm:$0xff]  ;;  %v9256_v50 = vpack.c.bf16 %v3566_v7, %v3564_v1 }
 0xf41   :  { %v9242_v20 = vpack.c.bf16 %v3460_v12, %v3458_v57  ;;  %v3655_v1 = vld [vmem:[#allocation22 + $0x10] sm:$0xff]  ;;  %v3664_v57 = vld [vmem:[#allocation23 + $0x18] sm:$0xff] }
 0xf42   :  { %9803 = vrcp.f32 %v3094_v59  ;;  %v3569_v59 = vld [vmem:[#allocation19 + $0x48] sm:$0xff]  ;;  %v3663_v7 = vld [vmem:[#allocation23 + $0x10] sm:$0xff] }
 0xf43   :  { %9805 = vtanh.f32 %v11399_v11 }
 0xf4c   :  { %v9804_v40 = vpop.eup %9803 }
 0xf4d   :  { %v9806_v15 = vpop.eup %9805 }
 0xf4e   :  { %v3098_v24 = vmul.f32 %v9806_v15, %v9804_v40  ;;  %v3571_v40 = vld [vmem:[#allocation19 + $0x58] sm:$0xff] }
 0xf4f   :  { %v9258_v15 = vpack.c.bf16 %v3571_v40, %v3569_v59  ;;  %v3657_v59 = vld [vmem:[#allocation22 + $0x20] sm:$0xff]  ;;  %v3658_v40 = vld [vmem:[#allocation22 + $0x28] sm:$0xff] }
 0xf50   :  { %v3105_v26 = vrot.slane %v3098_v24, 4 }
 0xf52   :  { %3106 = vrot.lane.b32.xlu1 %v3105_v26, %s10409_s19 }
 0xfc4   :  { %v3107_v42 = vpop.permute.xlu1 %3106 }
 0xfc5   :  { %8133 = vmatmul.mubr.msk.f32.vlgmr.msra.gmra.mrb[30].mxu0 %vm705_vm3, %v3107_v42  ;;  %8152 = vmatmul.mubr.msk.f32.vlgmr.msra.gmra.mrb[36].mxu1 %vm705_vm3, %v3107_v42 }
 0xfc6   :  { %9212 = vmatpush3.bf16.msra.mxu0 %v10923_v25  ;;  %9224 = vmatpush3.bf16.msra.mxu1 %v10980_v61 }
 0xfc7   :  { %9213 = vmatprep.subr.bf16.mxu0 %v10407_v30  ;;  %9225 = vmatprep.subr.bf16.mxu1 %v10407_v30 }
 0xfc8   :  { %8170 = vmatprep.mubr.msk.f32.mxu0 %vm10408_vm0, %v10406_v6  ;;  %8189 = vmatprep.mubr.msk.f32.mxu1 %vm10408_vm0, %v10406_v6 }
 0xfca   :  { %9215 = vmatpush3.bf16.msra.mxu0 %v10932_v28  ;;  %9227 = vmatpush3.bf16.msra.mxu1 %v10985_v0 }
 0xfcb   :  { %9216 = vmatprep.subr.bf16.mxu0 %v10407_v30  ;;  %9228 = vmatprep.subr.bf16.mxu1 %v10407_v30 }
 0xfce   :  { %9218 = vmatpush3.bf16.msra.mxu0 %v10936_v32  ;;  %9230 = vmatpush3.bf16.msra.mxu1 %v10991_v4 }
 0xfcf   :  { %9219 = vmatprep.subr.bf16.mxu0 %v10407_v30  ;;  %9231 = vmatprep.subr.bf16.mxu1 %v10407_v30 }
 0xfd2   :  { %9221 = vmatpush3.bf16.msra.mxu0 %v10940_v35  ;;  %9233 = vmatpush3.bf16.msra.mxu1 %v10995_v10 }
 0xfd5   :  { %8171 = vmatmul.mubr.msk.f32.vlgmr.msra.gmra.mrb[32].mxu0 %vm705_vm3, %v3107_v42  ;;  %8190 = vmatmul.mubr.msk.f32.vlgmr.msra.gmra.mrb[38].mxu1 %vm705_vm3, %v3107_v42 }
 0xfd6   :  { %3547 = vmatprep.mubr.f32.mxu0 %v10406_v6  ;;  %3640 = vmatprep.mubr.f32.mxu1 %v10406_v6 }
0x1098   :  { %v3176_v25 = vpop.f32.mrb[30].mxu0  ;;  %v3250_v28 = vpop.f32.mrb[36].mxu1 }
0x1099   :  { %v3181_v32 = vrot.slane %v3176_v25, 2  ;;  %v3255_v61 = vrot.slane %v3250_v28, 2  ;;  %v8134_v0 = vpop.f32.mrb[31].mxu0  ;;  %v8153_v4 = vpop.f32.mrb[37].mxu1 }
0x109b   :  { %v3183_v23 = vadd.f32 %v3181_v32, %v11022_v41  ;;  %3256 = vrot.lane.b32.xlu0 %v3255_v61, %s10409_s19 }
0x109d   :  { %v6912_v35 = vmul.f32 -1.442695, %v3183_v23 }
0x109f   :  { %9807 = vpow2.f32 %v6912_v35 }
0x10a8   :  { %v3326_v10 = vpop.f32.mrb[32].mxu0  ;;  %v3400_v14 = vpop.f32.mrb[38].mxu1 }
0x10a9   :  { %v9808_v29 = vpop.eup %9807  ;;  %v3331_v5 = vrot.slane %v3326_v10, 2  ;;  %v3405_v13 = vrot.slane %v3400_v14, 2  ;;  %v8172_v49 = vpop.f32.mrb[33].mxu0 }
0x10aa   :  { %v8191_v52 = vpop.f32.mrb[39].mxu1  ;;  %v3423_v56 = vadd.f32 1.0, %v9808_v29 }
0x10ab   :  { %v3333_v16 = vadd.f32 %v3331_v5, %v11026_v43  ;;  %3406 = vrot.lane.b32.xlu1 %v3405_v13, %s10409_s19  ;;  %v3457_v13 = vld [vmem:[%s12187_s10 + $0x40] sm:$0xff]  ;;  %v3570_v52 = vld [vmem:[#allocation19 + $0x50] sm:$0xff] }
0x10ac   :  { %9809 = vrcp.f32 %v3423_v56 }
0x10ad   :  { %9811 = vtanh.f32 %v3333_v16 }
0x10af   :  { %1381 = vrot.lane.b32.xlu1 %v11104_v60, %s10409_s19  ;;  %v9234_v60 = vpack.c.bf16 %v3452_v34, %v3450_v19  ;;  %v3575_v34 = vld [vmem:[#allocation19 + $0x78] sm:$0xff] }
0x10b1   :  { %9235 = vmatprep.subr.bf16.mxu0 %v9234_v60  ;;  %v3463_v60 = vld [vmem:[%s12187_s10 + $0x70] sm:$0xff] }
0x10b2   :  { %9237 = vmatpush1.bf16.msra.mxu0 %v9236_v39 }
0x10b3   :  { %2069 = vrot.lane.b32.xlu1 %v11222_v21, %s10409_s19  ;;  %v3563_v21 = vld [vmem:[#allocation19 + $0x18] sm:$0xff]  ;;  %9239 = vmatprep.subr.bf16.mxu0 %v9238_v53  ;;  %v3661_v53 = vld [vmem:[#allocation23] sm:$0xff] }
0x10b4   :  { %v9250_v37 = vpack.c.bf16 %v3563_v21, %v3561_v58  ;;  %v3461_v58 = vld [vmem:[%s12187_s10 + $0x60] sm:$0xff] }
0x10b5   :  { %v9248_v3 = vpack.c.bf16 %v3463_v60, %v3461_v58  ;;  %v3683_v58 = vld [vmem:[#allocation26 + $0x30] sm:$0xff]  ;;  %v3684_v60 = vld [vmem:[#allocation26 + $0x38] sm:$0xff] }
0x10b6   :  { %v9810_v55 = vpop.eup %9809  ;;  %9251 = vmatprep.subr.bf16.mxu1 %v9250_v37  ;;  %9241 = vmatpush1.bf16.msra.mxu0 %v9240_v54  ;;  %v3574_v37 = vld [vmem:[#allocation19 + $0x70] sm:$0xff]  ;;  %v3656_v54 = vld [vmem:[#allocation22 + $0x18] sm:$0xff] }
0x10b7   :  { %v9812_v31 = vpop.eup %9811  ;;  %3100 = vrot.lane.b32.xlu1 %v3098_v24, %s10409_s19  ;;  %9243 = vmatprep.subr.bf16.mxu0 %v9242_v20  ;;  %v9264_v39 = vpack.c.bf16 %v3574_v37, %v3572_v36  ;;  %v11521_v20 = vpack.c.bf16 %v3664_v57, %v3663_v7  ;;  %v3465_v36 = vld [vmem:[#allocation20] sm:$0x3] }
0x10b8   :  { %v3427_v33 = vmul.f32 %v9812_v31, %v9810_v55  ;;  %v3462_v55 = vld [vmem:[%s12187_s10 + $0x68] sm:$0xff]  ;;  %v3464_v31 = vld [vmem:[%s12187_s10 + $0x78] sm:$0xff]  ;;  %v3470_v37 = vrot.slane %v3465_v36, %v492_v18 }
0x10b9   :  { %v9246_v19 = vpack.c.bf16 %v3464_v31, %v3462_v55  ;;  %v3682_v55 = vld [vmem:[#allocation26 + $0x28] sm:$0xff] }
0x10ba   :  { %3429 = vrot.lane.b32.xlu0 %v3427_v33, %s10409_s19  ;;  %v3573_v33 = vld [vmem:[#allocation19 + $0x68] sm:$0xff] }
0x10bb   :  { %v9262_v21 = vpack.c.bf16 %v3575_v34, %v3573_v33  ;;  %v3676_v34 = vld [vmem:[#allocation25 + $0x38] sm:$0xff] }
0x10be   :  { %1725 = vrot.lane.b32.xlu0 %v11163_v9, %s10409_s19  ;;  %v9252_v9 = vpack.c.bf16 %v3562_v45, %v3560_v44 }
0x10c0   :  { %9253 = vmatpush1.bf16.msra.mxu1 %v9252_v9 }
0x10c1   :  { %9255 = vmatprep.subr.bf16.mxu1 %v9254_v62  ;;  %v3662_v62 = vld [vmem:[#allocation23 + $0x8] sm:$0xff] }
0x10c2   :  { %2758 = vrot.lane.b32.xlu0 %v11343_v27, %s10409_s19  ;;  %v11513_v38 = vpack.c.bf16 %v3662_v62, %v3661_v53 }
0x10c4   :  { %9257 = vmatpush1.bf16.msra.mxu1 %v9256_v50  ;;  %v11519_v50 = vpack.c.bf16 %v3656_v54, %v3655_v1 }
0x10c5   :  { %9259 = vmatprep.subr.bf16.mxu1 %v9258_v15  ;;  %v3665_v15 = vld [vmem:[#allocation23 + $0x20] sm:$0xff] }
0x110d   :  { %v3257_v27 = vpop.permute.xlu0 %3256 }
0x110e   :  { %v3259_v24 = vadd.f32 %v3257_v27, %v11022_v41  ;;  %v3666_v27 = vld [vmem:[#allocation23 + $0x28] sm:$0xff] }
0x1110   :  { %v6911_v26 = vmul.f32 -1.442695, %v3259_v24 }
0x1112   :  { %9813 = vpow2.f32 %v6911_v26  ;;  %v11531_v26 = vpack.c.bf16 %v3658_v40, %v3657_v59 }
0x111c   :  { %v9814_v42 = vpop.eup %9813 }
0x111d   :  { %v3413_v25 = vadd.f32 1.0, %v9814_v42  ;;  %v3407_v28 = vpop.permute.xlu1 %3406  ;;  %v11533_v42 = vpack.c.bf16 %v3666_v27, %v3665_v15 }
0x111e   :  { %v3409_v32 = vadd.f32 %v3407_v28, %v11026_v43  ;;  %v3417_v43 = vrot.slane %v11399_v11, 6  ;;  %v3568_v11 = vld [vmem:[#allocation19 + $0x40] sm:$0xff] }
0x111f   :  { %9815 = vrcp.f32 %v3413_v25  ;;  %v9260_v56 = vpack.c.bf16 %v3570_v52, %v3568_v11  ;;  %v3659_v25 = vld [vmem:[#allocation22 + $0x30] sm:$0xff]  ;;  %v3660_v28 = vld [vmem:[#allocation22 + $0x38] sm:$0xff]  ;;  %v3673_v52 = vld [vmem:[#allocation25 + $0x20] sm:$0xff] }
0x1120   :  { %v6913_v61 = vmul.f32 -1.442695, %v3409_v32  ;;  %v3667_v32 = vld [vmem:[#allocation23 + $0x30] sm:$0xff] }
0x1121   :  { %v1382_v0 = vpop.permute.xlu1 %1381  ;;  %9261 = vmatpush1.bf16.msra.mxu1 %v9260_v56  ;;  %v3674_v56 = vld [vmem:[#allocation25 + $0x28] sm:$0xff] }
0x1122   :  { %9817 = vpow2.f32 %v6913_v61  ;;  %1385 = vst.msk [vmem:[#allocation2] sm:$0xc] %vm1384_vm7, %v1382_v0  ;;  %9263 = vmatprep.subr.bf16.mxu1 %v9262_v21  ;;  %v3668_v61 = vld [vmem:[#allocation23 + $0x38] sm:$0xff]  ;;  %v11573_v31 = vpack.c.bf16 %v3674_v56, %v3673_v52 }
0x1123   :  { %1387 = vst.msk [vmem:[#allocation2 + $0xa] sm:$0xc] %vm1386_vm10, %v1382_v0  ;;  %v11543_v0 = vpack.c.bf16 %v3660_v28, %v3659_v25 }
0x1125   :  { %v2070_v41 = vpop.permute.xlu1 %2069  ;;  %9265 = vmatpush1.bf16.msra.mxu1 %v9264_v39 }
0x1126   :  { %2073 = vst.msk [vmem:[#allocation2] sm:$0xc0] %vm2072_vm6, %v2070_v41  ;;  %9278 = vmatprep.subr.bf16.mxu1 %v10407_v30 }
0x1127   :  { %2075 = vst.msk [vmem:[#allocation2 + $0x2] sm:$0xc0] %vm2074_vm8, %v2070_v41  ;;  %v11545_v41 = vpack.c.bf16 %v3668_v61, %v3667_v32 }
0x1128   :  { %2416 = vst.msk [vmem:[#allocation2 + $0x8] sm:$0x3] %vm1037_vm4, %v11282_v2 }
0x1129   :  { %2417 = vst.msk [vmem:[#allocation2 + $0x6] sm:$0x3] %vm1039_vm5, %v11282_v2  ;;  %v9816_v4 = vpop.eup %9815  ;;  %v3101_v23 = vpop.permute.xlu1 %3100  ;;  %v3459_v2 = vld [vmem:[%s12187_s10 + $0x50] sm:$0xff] }
0x112a   :  { %3103 = vst.msk [vmem:[#allocation2 + $0x8] sm:$0x30] %vm1728_vm9, %v3101_v23  ;;  %v3419_v35 = vmul.f32 %v9816_v4, %v3417_v43  ;;  %v9244_v49 = vpack.c.bf16 %v3459_v2, %v3457_v13  ;;  %v3669_v43 = vld [vmem:[#allocation25] sm:$0xff]  ;;  %v3670_v4 = vld [vmem:[#allocation25 + $0x8] sm:$0xff]  ;;  %v3679_v13 = vld [vmem:[#allocation26 + $0x10] sm:$0xff] }
0x112b   :  { %3104 = vst.msk [vmem:[#allocation2 - $0x2] sm:$0x30] %vm1730_vm11, %v3101_v23  ;;  %v3677_v23 = vld [vmem:[#allocation26] sm:$0xff]  ;;  %v3680_v2 = vld [vmem:[#allocation26 + $0x18] sm:$0xff] }
0x112c   :  { %v9818_v10 = vpop.eup %9817  ;;  %v3430_v14 = vpop.permute.xlu0 %3429  ;;  %9245 = vmatpush1.bf16.msra.mxu0 %v9244_v49  ;;  %v11563_v49 = vpack.c.bf16 %v3680_v2, %v3679_v13 }
0x112d   :  { %v3436_v29 = vadd.f32 1.0, %v9818_v10  ;;  %v3432_v5 = vadd.f32 %v3430_v14, %v3419_v35  ;;  %9247 = vmatprep.subr.bf16.mxu0 %v9246_v19  ;;  %v3678_v35 = vld [vmem:[#allocation26 + $0x8] sm:$0xff]  ;;  %v11551_v10 = vpack.c.bf16 %v3670_v4, %v3669_v43  ;;  %v3675_v19 = vld [vmem:[#allocation25 + $0x30] sm:$0xff] }
0x112e   :  { %v11553_v14 = vpack.c.bf16 %v3678_v35, %v3677_v23  ;;  %v11581_v21 = vpack.c.bf16 %v3676_v34, %v3675_v19 }
0x112f   :  { %9819 = vrcp.f32 %v3436_v29  ;;  %v3671_v29 = vld [vmem:[#allocation25 + $0x10] sm:$0xff] }
0x1130   :  { %9821 = vtanh.f32 %v3432_v5  ;;  %v1726_v16 = vpop.permute.xlu0 %1725  ;;  %9249 = vmatpush1.bf16.msra.mxu0 %v9248_v3  ;;  %v3672_v5 = vld [vmem:[#allocation25 + $0x18] sm:$0xff]  ;;  %v11583_v3 = vpack.c.bf16 %v3684_v60, %v3683_v58 }
0x1131   :  { %1729 = vst.msk [vmem:[#allocation2] sm:$0x30] %vm1728_vm9, %v1726_v16  ;;  %9266 = vmatprep.subr.bf16.mxu0 %v10407_v30  ;;  %v11561_v11 = vpack.c.bf16 %v3672_v5, %v3671_v29 }
0x1132   :  { %1731 = vst.msk [vmem:[#allocation2 + $0x6] sm:$0x30] %vm1730_vm11, %v1726_v16  ;;  %v3681_v16 = vld [vmem:[#allocation26 + $0x20] sm:$0xff] }
0x1133   :  { %v11575_v33 = vpack.c.bf16 %v3682_v55, %v3681_v16 }
0x1134   :  { %v2759_v44 = vpop.permute.xlu0 %2758 }
0x1135   :  { %2761 = vst.msk [vmem:[#allocation2 + $0x8] sm:$0xc] %vm1384_vm7, %v2759_v44 }
0x1136   :  { %2762 = vst.msk [vmem:[#allocation2 + $0x2] sm:$0xc] %vm1386_vm10, %v2759_v44 }
0x1139   :  { %v9820_v45 = vpop.eup %9819 }
0x113a   :  { %v9822_v46 = vpop.eup %9821 }
0x113b   :  { %v3440_v9 = vmul.f32 %v9822_v46, %v9820_v45  ;;  %v3474_v45 = vrot.slane %v3465_v36, %v496_v22 }
0x113d   :  { %3442 = vrot.lane.b32.xlu0 %v3440_v9, %s10409_s19 }
0x11af   :  { %v3443_v47 = vpop.permute.xlu0 %3442 }
0x11b0   :  { %3445 = vst.msk [vmem:[#allocation2 + $0x8] sm:$0xc0] %vm2072_vm6, %v3443_v47 }
0x11b1   :  { %3446 = vst.msk [vmem:[#allocation2 - $0x6] sm:$0xc0] %vm2074_vm8, %v3443_v47 }
0x11b7   :  { %v3448_v24 = vld [vmem:[#allocation2 + $0x8] sm:$0xff] }
0x11b8   :  { %v3447_v12 = vld [vmem:[#allocation2] sm:$0xff] }
0x11b9   :  { %6914 = vmatmul.mubr.msk.f32.vlgmr.msra.gmra.mrb[34].mxu0 %vm705_vm3, %v3447_v12  ;;  %6916 = vmatmul.mubr.msk.f32.vlgmr.msra.gmra.mrb[40].mxu1 %vm705_vm3, %v3447_v12 }
0x11ba   :  { %9268 = vmatpush3.bf16.msra.mxu0 %v11511_v63  ;;  %9280 = vmatpush3.bf16.msra.mxu1 %v11513_v38 }
0x11bb   :  { %3553 = vmatprep.mubr.f32.mxu0 %v10406_v6  ;;  %3646 = vmatprep.mubr.f32.mxu1 %v10406_v6 }
0x11bc   :  { %9269 = vmatprep.subr.bf16.mxu0 %v10407_v30  ;;  %9281 = vmatprep.subr.bf16.mxu1 %v10407_v30 }
0x11bd   :  { %6915 = vmatmul.mubr.msk.f32.gmra.mrb[36].mxu0 %vm705_vm3, %v3448_v24  ;;  %6917 = vmatmul.mubr.msk.f32.gmra.mrb[42].mxu1 %vm705_vm3, %v3448_v24 }
0x11be   :  { %9271 = vmatpush3.bf16.msra.mxu0 %v11519_v50  ;;  %9283 = vmatpush3.bf16.msra.mxu1 %v11521_v20 }
0x11bf   :  { %9272 = vmatprep.subr.bf16.mxu0 %v10407_v30  ;;  %9284 = vmatprep.subr.bf16.mxu1 %v10407_v30 }
0x11c0   :  { %8208 = vmatprep.mubr.msk.f32.mxu0 %vm10408_vm0, %v10406_v6  ;;  %8227 = vmatprep.mubr.msk.f32.mxu1 %vm10408_vm0, %v10406_v6 }
0x11c2   :  { %9274 = vmatpush3.bf16.msra.mxu0 %v11531_v26  ;;  %9286 = vmatpush3.bf16.msra.mxu1 %v11533_v42 }
0x11c3   :  { %9275 = vmatprep.subr.bf16.mxu0 %v10407_v30  ;;  %9287 = vmatprep.subr.bf16.mxu1 %v10407_v30 }
0x11c6   :  { %9277 = vmatpush3.bf16.msra.mxu0 %v11543_v0  ;;  %9289 = vmatpush3.bf16.msra.mxu1 %v11545_v41 }
0x11c7   :  { %9290 = vmatprep.subr.bf16.mxu0 %v10407_v30  ;;  %9302 = vmatprep.subr.bf16.mxu1 %v10407_v30 }
0x11c9   :  { %8209 = vmatmul.mubr.f32.vlgmr.msra.gmra.mrb[38].mxu0 %v10406_v6  ;;  %8228 = vmatmul.mubr.f32.vlgmr.msra.gmra.mrb[44].mxu1 %v10406_v6 }
0x11ca   :  { %9292 = vmatpush3.bf16.msra.mxu0 %v11551_v10  ;;  %9304 = vmatpush3.bf16.msra.mxu1 %v11553_v14 }
0x11cb   :  { %9293 = vmatprep.subr.bf16.mxu0 %v10407_v30  ;;  %9305 = vmatprep.subr.bf16.mxu1 %v10407_v30 }
0x11cc   :  { %8246 = vmatprep.mubr.msk.f32.mxu0 %vm10408_vm0, %v10406_v6  ;;  %8265 = vmatprep.mubr.msk.f32.mxu1 %vm10408_vm0, %v10406_v6 }
0x11ce   :  { %9295 = vmatpush3.bf16.msra.mxu0 %v11561_v11  ;;  %9307 = vmatpush3.bf16.msra.mxu1 %v11563_v49 }
0x11cf   :  { %9296 = vmatprep.subr.bf16.mxu0 %v10407_v30  ;;  %9308 = vmatprep.subr.bf16.mxu1 %v10407_v30 }
0x11d2   :  { %9298 = vmatpush3.bf16.msra.mxu0 %v11573_v31  ;;  %9310 = vmatpush3.bf16.msra.mxu1 %v11575_v33 }
0x11d3   :  { %9299 = vmatprep.subr.bf16.mxu0 %v10407_v30  ;;  %9311 = vmatprep.subr.bf16.mxu1 %v10407_v30 }
0x11d6   :  { %9301 = vmatpush3.bf16.msra.mxu0 %v11581_v21  ;;  %9313 = vmatpush3.bf16.msra.mxu1 %v11583_v3 }
0x11d7   :  { %9314 = vmatprep.subr.bf16.mxu0 %v10407_v30  ;;  %9326 = vmatprep.subr.bf16.mxu1 %v10407_v30 }
0x11d9   :  { %8247 = vmatmul.mubr.f32.vlgmr.msra.gmra.mrb[40].mxu0 %v10406_v6  ;;  %8266 = vmatmul.mubr.f32.vlgmr.msra.gmra.mrb[46].mxu1 %v10406_v6 }
0x11da   :  { %9316 = vmatpush3.bf16.msra.mxu0 %v11511_v63  ;;  %9328 = vmatpush3.bf16.msra.mxu1 %v11513_v38 }
0x11db   :  { %9317 = vmatprep.subr.bf16.mxu0 %v10407_v30  ;;  %9329 = vmatprep.subr.bf16.mxu1 %v10407_v30 }
0x11dc   :  { %8284 = vmatprep.mubr.msk.f32.mxu0 %vm10408_vm0, %v10406_v6  ;;  %8303 = vmatprep.mubr.msk.f32.mxu1 %vm10408_vm0, %v10406_v6 }
0x11de   :  { %9319 = vmatpush3.bf16.msra.mxu0 %v11519_v50  ;;  %9331 = vmatpush3.bf16.msra.mxu1 %v11521_v20 }
0x11df   :  { %9320 = vmatprep.subr.bf16.mxu0 %v10407_v30  ;;  %9332 = vmatprep.subr.bf16.mxu1 %v10407_v30 }
0x11e2   :  { %9322 = vmatpush3.bf16.msra.mxu0 %v11531_v26  ;;  %9334 = vmatpush3.bf16.msra.mxu1 %v11533_v42 }
0x11e3   :  { %9323 = vmatprep.subr.bf16.mxu0 %v10407_v30  ;;  %9335 = vmatprep.subr.bf16.mxu1 %v10407_v30 }
0x11e6   :  { %9325 = vmatpush3.bf16.msra.mxu0 %v11543_v0  ;;  %9337 = vmatpush3.bf16.msra.mxu1 %v11545_v41 }
0x11e7   :  { %9338 = vmatprep.subr.bf16.mxu0 %v10407_v30  ;;  %9350 = vmatprep.subr.bf16.mxu1 %v10407_v30 }
0x128c   :  { %v3549_v39 = vpop.f32.mrb[34].mxu0  ;;  %v3642_v44 = vpop.f32.mrb[40].mxu1 }
0x128d   :  { %v3551_v46 = vpop.f32.mrb[35].mxu0  ;;  %v3644_v9 = vpop.f32.mrb[41].mxu1  ;;  %v3550_v47 = vadd.f32 %v3549_v39, %v3470_v37  ;;  %v5056_v48 = vrot.slane %v3642_v44, 6  ;;  %v5397_v51 = vrot.slane %v3642_v44, 2 }
0x128e   :  { %v3552_v53 = vadd.f32 %v3551_v46, %v3474_v45  ;;  %v5211_v54 = vrot.slane %v3644_v9, 6  ;;  %v5552_v18 = vrot.slane %v3644_v9, 2 }
0x1290   :  { %v3555_v62 = vpop.f32.mrb[36].mxu0  ;;  %v3648_v1 = vpop.f32.mrb[42].mxu1 }
0x1291   :  { %v3556_v7 = vadd.f32 %v3555_v62, %v3470_v37  ;;  %v3686_v57 = vrot.slane %v3648_v1, 6  ;;  %v4020_v12 = vrot.slane %v3648_v1, 2  ;;  %v3557_v59 = vpop.f32.mrb[37].mxu0  ;;  %v3650_v40 = vpop.f32.mrb[43].mxu1 }
0x1292   :  { %v3558_v15 = vadd.f32 %v3557_v59, %v3474_v45  ;;  %v3836_v27 = vrot.slane %v3650_v40, 6  ;;  %v4175_v24 = vrot.slane %v3650_v40, 2 }
0x1293   :  { %v11617_v17 = vadd.f32 %v5056_v48, %v3556_v7  ;;  %v11619_v22 = vadd.f32 %v5397_v51, %v3556_v7  ;;  %v11621_v25 = vadd.f32 %v3686_v57, %v3550_v47  ;;  %v11623_v28 = vadd.f32 %v4020_v12, %v3550_v47 }
0x1294   :  { %v11625_v32 = vadd.f32 %v5211_v54, %v3558_v15  ;;  %v11627_v61 = vadd.f32 %v5552_v18, %v3558_v15  ;;  %v11629_v43 = vadd.f32 %v3836_v27, %v3552_v53  ;;  %v11631_v4 = vadd.f32 %v4175_v24, %v3552_v53 }
0x129c   :  { %v3755_v23 = vpop.f32.mrb[38].mxu0  ;;  %v3826_v35 = vpop.f32.mrb[44].mxu1 }
0x129d   :  { %v3759_v29 = vadd.f32 %v3755_v23, %v11621_v25  ;;  %3831 = vrot.lane.b32.xlu1 %v3826_v35, %s10409_s19  ;;  %v8210_v5 = vpop.f32.mrb[39].mxu0  ;;  %v8229_v13 = vpop.f32.mrb[45].mxu1 }
0x129f   :  { %v6919_v2 = vmul.f32 -1.442695, %v3759_v29 }
0x12a1   :  { %9823 = vpow2.f32 %v6919_v2 }
0x12ab   :  { %v9824_v52 = vpop.eup %9823 }
0x12ac   :  { %v3995_v56 = vadd.f32 1.0, %v9824_v52  ;;  %v3905_v16 = vpop.f32.mrb[40].mxu0  ;;  %v3976_v55 = vpop.f32.mrb[46].mxu1 }
0x12ad   :  { %v3909_v19 = vadd.f32 %v3905_v16, %v11629_v43  ;;  %3981 = vrot.lane.b32.xlu0 %v3976_v55, %s10409_s19  ;;  %v8248_v34 = vpop.f32.mrb[41].mxu0  ;;  %v8267_v58 = vpop.f32.mrb[47].mxu1 }
0x12ae   :  { %9825 = vrcp.f32 %v3995_v56 }
0x12af   :  { %9827 = vtanh.f32 %v3909_v19 }
0x12b8   :  { %v9826_v60 = vpop.eup %9825 }
0x12b9   :  { %v9828_v36 = vpop.eup %9827 }
0x12ba   :  { %v3999_v37 = vmul.f32 %v9828_v36, %v9826_v60 }
0x12bc   :  { %4001 = vrot.lane.b32.xlu1 %v3999_v37, %s10409_s19 }
0x130f   :  { %v3832_v39 = vpop.permute.xlu1 %3831 }
0x1310   :  { %v3834_v44 = vadd.f32 %v3832_v39, %v11621_v25 }
0x1312   :  { %v6918_v45 = vmul.f32 -1.442695, %v3834_v44 }
0x1314   :  { %9829 = vpow2.f32 %v6918_v45 }
0x131e   :  { %v9830_v46 = vpop.eup %9829 }
0x131f   :  { %v3988_v9 = vadd.f32 1.0, %v9830_v46  ;;  %v3982_v47 = vpop.permute.xlu0 %3981 }
0x1320   :  { %v3984_v48 = vadd.f32 %v3982_v47, %v11629_v43 }
0x1321   :  { %9831 = vrcp.f32 %v3988_v9 }
0x1322   :  { %v6920_v51 = vmul.f32 -1.442695, %v3984_v48 }
0x1324   :  { %9833 = vpow2.f32 %v6920_v51 }
0x132b   :  { %v9832_v53 = vpop.eup %9831 }
0x132c   :  { %v3991_v62 = vmul.f32 0.0, %v9832_v53 }
0x132e   :  { %v9834_v1 = vpop.eup %9833  ;;  %v4002_v54 = vpop.permute.xlu1 %4001 }
0x132f   :  { %v4008_v7 = vadd.f32 1.0, %v9834_v1  ;;  %v11640_v57 = vadd.f32 %v4002_v54, %v3991_v62 }
0x1331   :  { %9835 = vrcp.f32 %v4008_v7  ;;  %v4335_v62 = vrot.slane %v11640_v57, 6 }
0x1332   :  { %9837 = vtanh.f32 %v11640_v57 }
0x133b   :  { %v9836_v12 = vpop.eup %9835 }
0x133c   :  { %v9838_v59 = vpop.eup %9837 }
0x133d   :  { %v4012_v40 = vmul.f32 %v9838_v59, %v9836_v12 }
0x133f   :  { %4014 = vrot.lane.b32.xlu0 %v4012_v40, %s10409_s19 }
0x13b1   :  { %v4015_v18 = vpop.permute.xlu0 %4014 }
0x13b2   :  { %4017 = vst.msk [vmem:[#allocation3] sm:$0x3] %vm1037_vm4, %v4015_v18  ;;  %8285 = vmatmul.mubr.msk.f32.vlgmr.msra.gmra.mrb[42].mxu0 %vm705_vm3, %v4015_v18  ;;  %8304 = vmatmul.mubr.msk.f32.vlgmr.msra.gmra.mrb[48].mxu1 %vm705_vm3, %v4015_v18 }
0x13b3   :  { %4019 = vst.msk [vmem:[#allocation3 + $0xe] sm:$0x3] %vm1039_vm5, %v4015_v18  ;;  %9340 = vmatpush3.bf16.msra.mxu0 %v11551_v10  ;;  %9352 = vmatpush3.bf16.msra.mxu1 %v11553_v14 }
0x13b4   :  { %9341 = vmatprep.subr.bf16.mxu0 %v10407_v30  ;;  %9353 = vmatprep.subr.bf16.mxu1 %v10407_v30 }
0x13b5   :  { %8322 = vmatprep.mubr.msk.f32.mxu0 %vm10408_vm0, %v10406_v6  ;;  %8341 = vmatprep.mubr.msk.f32.mxu1 %vm10408_vm0, %v10406_v6 }
0x13b7   :  { %9343 = vmatpush3.bf16.msra.mxu0 %v11561_v11  ;;  %9355 = vmatpush3.bf16.msra.mxu1 %v11563_v49 }
0x13b8   :  { %9344 = vmatprep.subr.bf16.mxu0 %v10407_v30  ;;  %9356 = vmatprep.subr.bf16.mxu1 %v10407_v30 }
0x13bb   :  { %9346 = vmatpush3.bf16.msra.mxu0 %v11573_v31  ;;  %9358 = vmatpush3.bf16.msra.mxu1 %v11575_v33 }
0x13bc   :  { %9347 = vmatprep.subr.bf16.mxu0 %v10407_v30  ;;  %9359 = vmatprep.subr.bf16.mxu1 %v10407_v30 }
0x13bf   :  { %9349 = vmatpush3.bf16.msra.mxu0 %v11581_v21  ;;  %9361 = vmatpush3.bf16.msra.mxu1 %v11583_v3 }
0x13c0   :  { %9362 = vmatprep.subr.bf16.mxu0 %v10407_v30  ;;  %9374 = vmatprep.subr.bf16.mxu1 %v10407_v30 }
0x13c2   :  { %8323 = vmatmul.mubr.msk.f32.vlgmr.msra.gmra.mrb[44].mxu0 %vm705_vm3, %v4015_v18  ;;  %8342 = vmatmul.mubr.msk.f32.vlgmr.msra.gmra.mrb[50].mxu1 %vm705_vm3, %v4015_v18 }
0x13c3   :  { %9364 = vmatpush3.bf16.msra.mxu0 %v11511_v63  ;;  %9376 = vmatpush3.bf16.msra.mxu1 %v11513_v38 }
0x13c4   :  { %9365 = vmatprep.subr.bf16.mxu0 %v10407_v30  ;;  %9377 = vmatprep.subr.bf16.mxu1 %v10407_v30 }
0x13c5   :  { %8360 = vmatprep.mubr.msk.f32.mxu0 %vm10408_vm0, %v10406_v6  ;;  %8379 = vmatprep.mubr.msk.f32.mxu1 %vm10408_vm0, %v10406_v6 }
0x13c7   :  { %9367 = vmatpush3.bf16.msra.mxu0 %v11519_v50  ;;  %9379 = vmatpush3.bf16.msra.mxu1 %v11521_v20 }
0x13c8   :  { %9368 = vmatprep.subr.bf16.mxu0 %v10407_v30  ;;  %9380 = vmatprep.subr.bf16.mxu1 %v10407_v30 }
0x13cb   :  { %9370 = vmatpush3.bf16.msra.mxu0 %v11531_v26  ;;  %9382 = vmatpush3.bf16.msra.mxu1 %v11533_v42 }
0x13cc   :  { %9371 = vmatprep.subr.bf16.mxu0 %v10407_v30  ;;  %9383 = vmatprep.subr.bf16.mxu1 %v10407_v30 }
0x13cf   :  { %9373 = vmatpush3.bf16.msra.mxu0 %v11543_v0  ;;  %9385 = vmatpush3.bf16.msra.mxu1 %v11545_v41 }
0x13d0   :  { %9386 = vmatprep.subr.bf16.mxu0 %v10407_v30  ;;  %9398 = vmatprep.subr.bf16.mxu1 %v10407_v30 }
0x1485   :  { %v4091_v15 = vpop.f32.mrb[42].mxu0  ;;  %v4165_v27 = vpop.f32.mrb[48].mxu1 }
0x1486   :  { %v4096_v24 = vrot.slane %v4091_v15, 6  ;;  %v4170_v23 = vrot.slane %v4165_v27, 6  ;;  %v8286_v35 = vpop.f32.mrb[43].mxu0  ;;  %v8305_v29 = vpop.f32.mrb[49].mxu1 }
0x1488   :  { %v4098_v5 = vadd.f32 %v4096_v24, %v11623_v28  ;;  %4171 = vrot.lane.b32.xlu1 %v4170_v23, %s10409_s19 }
0x148a   :  { %v6926_v13 = vmul.f32 -1.442695, %v4098_v5 }
0x148c   :  { %9839 = vpow2.f32 %v6926_v13 }
0x1495   :  { %v4244_v2 = vpop.f32.mrb[44].mxu0  ;;  %v4318_v52 = vpop.f32.mrb[50].mxu1 }
0x1496   :  { %v9840_v56 = vpop.eup %9839  ;;  %v4249_v16 = vrot.slane %v4244_v2, 6  ;;  %v4323_v55 = vrot.slane %v4318_v52, 6  ;;  %v8324_v19 = vpop.f32.mrb[45].mxu0 }
0x1497   :  { %v8343_v34 = vpop.f32.mrb[51].mxu1  ;;  %v4341_v58 = vadd.f32 1.0, %v9840_v56 }
0x1498   :  { %v4251_v60 = vadd.f32 %v4249_v16, %v11631_v4  ;;  %4324 = vrot.lane.b32.xlu0 %v4323_v55, %s10409_s19 }
0x1499   :  { %9841 = vrcp.f32 %v4341_v58 }
0x149a   :  { %9843 = vtanh.f32 %v4251_v60 }
0x14a3   :  { %v9842_v36 = vpop.eup %9841 }
0x14a4   :  { %v9844_v37 = vpop.eup %9843 }
0x14a5   :  { %v4345_v39 = vmul.f32 %v9844_v37, %v9842_v36 }
0x14a7   :  { %4347 = vrot.lane.b32.xlu1 %v4345_v39, %s10409_s19 }
0x14fa   :  { %v4172_v44 = vpop.permute.xlu1 %4171 }
0x14fb   :  { %v4174_v45 = vadd.f32 %v4172_v44, %v11623_v28 }
0x14fd   :  { %v6925_v46 = vmul.f32 -1.442695, %v4174_v45 }
0x14ff   :  { %9845 = vpow2.f32 %v6925_v46 }
0x1509   :  { %v9846_v9 = vpop.eup %9845 }
0x150a   :  { %v4331_v47 = vadd.f32 1.0, %v9846_v9  ;;  %v4325_v48 = vpop.permute.xlu0 %4324 }
0x150b   :  { %v4327_v51 = vadd.f32 %v4325_v48, %v11631_v4 }
0x150c   :  { %9847 = vrcp.f32 %v4331_v47 }
0x150d   :  { %v6927_v53 = vmul.f32 -1.442695, %v4327_v51 }
0x150f   :  { %9849 = vpow2.f32 %v6927_v53 }
0x1516   :  { %v9848_v1 = vpop.eup %9847 }
0x1517   :  { %v4337_v54 = vmul.f32 %v9848_v1, %v4335_v62 }
0x1519   :  { %v9850_v7 = vpop.eup %9849  ;;  %v4348_v12 = vpop.permute.xlu1 %4347 }
0x151a   :  { %v4354_v59 = vadd.f32 1.0, %v9850_v7  ;;  %v11698_v40 = vadd.f32 %v4348_v12, %v4337_v54 }
0x151c   :  { %9851 = vrcp.f32 %v4354_v59  ;;  %v4679_v7 = vrot.slane %v11698_v40, 6 }
0x151d   :  { %9853 = vtanh.f32 %v11698_v40 }
0x1526   :  { %v9852_v18 = vpop.eup %9851 }
0x1527   :  { %v9854_v15 = vpop.eup %9853 }
0x1528   :  { %v11701_v27 = vmul.f32 %v9854_v15, %v9852_v18 }
0x152a   :  { %v4367_v24 = vrot.slane %v11701_v27, 2 }
0x152c   :  { %4368 = vrot.lane.b32.xlu0 %v4367_v24, %s10409_s19 }
0x159e   :  { %v4369_v23 = vpop.permute.xlu0 %4368 }
0x159f   :  { %8361 = vmatmul.mubr.msk.f32.vlgmr.msra.gmra.mrb[46].mxu0 %vm705_vm3, %v4369_v23  ;;  %8380 = vmatmul.mubr.msk.f32.vlgmr.msra.gmra.mrb[52].mxu1 %vm705_vm3, %v4369_v23 }
0x15a0   :  { %9388 = vmatpush3.bf16.msra.mxu0 %v11551_v10  ;;  %9400 = vmatpush3.bf16.msra.mxu1 %v11553_v14 }
0x15a1   :  { %9389 = vmatprep.subr.bf16.mxu0 %v10407_v30  ;;  %9401 = vmatprep.subr.bf16.mxu1 %v10407_v30 }
0x15a2   :  { %8398 = vmatprep.mubr.msk.f32.mxu0 %vm10408_vm0, %v10406_v6  ;;  %8417 = vmatprep.mubr.msk.f32.mxu1 %vm10408_vm0, %v10406_v6 }
0x15a4   :  { %9391 = vmatpush3.bf16.msra.mxu0 %v11561_v11  ;;  %9403 = vmatpush3.bf16.msra.mxu1 %v11563_v49 }
0x15a5   :  { %9392 = vmatprep.subr.bf16.mxu0 %v10407_v30  ;;  %9404 = vmatprep.subr.bf16.mxu1 %v10407_v30 }
0x15a8   :  { %9394 = vmatpush3.bf16.msra.mxu0 %v11573_v31  ;;  %9406 = vmatpush3.bf16.msra.mxu1 %v11575_v33 }
0x15a9   :  { %9395 = vmatprep.subr.bf16.mxu0 %v10407_v30  ;;  %9407 = vmatprep.subr.bf16.mxu1 %v10407_v30 }
0x15ac   :  { %9397 = vmatpush3.bf16.msra.mxu0 %v11581_v21  ;;  %9409 = vmatpush3.bf16.msra.mxu1 %v11583_v3 }
0x15ad   :  { %9410 = vmatprep.subr.bf16.mxu0 %v10407_v30  ;;  %9422 = vmatprep.subr.bf16.mxu1 %v10407_v30 }
0x15af   :  { %8399 = vmatmul.mubr.msk.f32.vlgmr.msra.gmra.mrb[48].mxu0 %vm705_vm3, %v4369_v23  ;;  %8418 = vmatmul.mubr.msk.f32.vlgmr.msra.gmra.mrb[54].mxu1 %vm705_vm3, %v4369_v23 }
0x15b0   :  { %9412 = vmatpush3.bf16.msra.mxu0 %v11511_v63  ;;  %9424 = vmatpush3.bf16.msra.mxu1 %v11513_v38 }
0x15b1   :  { %9413 = vmatprep.subr.bf16.mxu0 %v10407_v30  ;;  %9425 = vmatprep.subr.bf16.mxu1 %v10407_v30 }
0x15b2   :  { %8436 = vmatprep.mubr.msk.f32.mxu0 %vm10408_vm0, %v10406_v6  ;;  %8455 = vmatprep.mubr.msk.f32.mxu1 %vm10408_vm0, %v10406_v6 }
0x15b4   :  { %9415 = vmatpush3.bf16.msra.mxu0 %v11519_v50  ;;  %9427 = vmatpush3.bf16.msra.mxu1 %v11521_v20 }
0x15b5   :  { %9416 = vmatprep.subr.bf16.mxu0 %v10407_v30  ;;  %9428 = vmatprep.subr.bf16.mxu1 %v10407_v30 }
0x15b8   :  { %9418 = vmatpush3.bf16.msra.mxu0 %v11531_v26  ;;  %9430 = vmatpush3.bf16.msra.mxu1 %v11533_v42 }
0x15b9   :  { %9419 = vmatprep.subr.bf16.mxu0 %v10407_v30  ;;  %9431 = vmatprep.subr.bf16.mxu1 %v10407_v30 }
0x15bc   :  { %9421 = vmatpush3.bf16.msra.mxu0 %v11543_v0  ;;  %9433 = vmatpush3.bf16.msra.mxu1 %v11545_v41 }
0x15bd   :  { %9434 = vmatprep.subr.bf16.mxu0 %v10407_v30  ;;  %9446 = vmatprep.subr.bf16.mxu1 %v10407_v30 }
0x1672   :  { %v4438_v57 = vpop.f32.mrb[46].mxu0  ;;  %v4512_v35 = vpop.f32.mrb[52].mxu1 }
0x1673   :  { %v4443_v29 = vrot.slane %v4438_v57, 4  ;;  %v4517_v5 = vrot.slane %v4512_v35, 4  ;;  %v8362_v13 = vpop.f32.mrb[47].mxu0  ;;  %v8381_v2 = vpop.f32.mrb[53].mxu1 }
0x1675   :  { %v4445_v52 = vadd.f32 %v4443_v29, %v11621_v25  ;;  %4518 = vrot.lane.b32.xlu1 %v4517_v5, %s10409_s19 }
0x1677   :  { %v6933_v56 = vmul.f32 -1.442695, %v4445_v52 }
0x1679   :  { %9855 = vpow2.f32 %v6933_v56 }
0x1682   :  { %v4588_v16 = vpop.f32.mrb[48].mxu0  ;;  %v4662_v55 = vpop.f32.mrb[54].mxu1 }
0x1683   :  { %v9856_v19 = vpop.eup %9855  ;;  %v4593_v34 = vrot.slane %v4588_v16, 4  ;;  %v4667_v58 = vrot.slane %v4662_v55, 4  ;;  %v8400_v60 = vpop.f32.mrb[49].mxu0 }
0x1684   :  { %v8419_v36 = vpop.f32.mrb[55].mxu1  ;;  %v4685_v37 = vadd.f32 1.0, %v9856_v19 }
0x1685   :  { %v4595_v39 = vadd.f32 %v4593_v34, %v11629_v43  ;;  %4668 = vrot.lane.b32.xlu0 %v4667_v58, %s10409_s19 }
0x1686   :  { %9857 = vrcp.f32 %v4685_v37 }
0x1687   :  { %9859 = vtanh.f32 %v4595_v39 }
0x1690   :  { %v9858_v44 = vpop.eup %9857 }
0x1691   :  { %v9860_v45 = vpop.eup %9859 }
0x1692   :  { %v4689_v46 = vmul.f32 %v9860_v45, %v9858_v44 }
0x1694   :  { %4691 = vrot.lane.b32.xlu1 %v4689_v46, %s10409_s19 }
0x16e7   :  { %v4519_v9 = vpop.permute.xlu1 %4518 }
0x16e8   :  { %v4521_v47 = vadd.f32 %v4519_v9, %v11621_v25 }
0x16ea   :  { %v6932_v48 = vmul.f32 -1.442695, %v4521_v47 }
0x16ec   :  { %9861 = vpow2.f32 %v6932_v48 }
0x16f6   :  { %v9862_v51 = vpop.eup %9861 }
0x16f7   :  { %v4675_v53 = vadd.f32 1.0, %v9862_v51  ;;  %v4669_v62 = vpop.permute.xlu0 %4668 }
0x16f8   :  { %v4671_v1 = vadd.f32 %v4669_v62, %v11629_v43 }
0x16f9   :  { %9863 = vrcp.f32 %v4675_v53 }
0x16fa   :  { %v6934_v54 = vmul.f32 -1.442695, %v4671_v1 }
0x16fc   :  { %9865 = vpow2.f32 %v6934_v54 }
0x1703   :  { %v9864_v12 = vpop.eup %9863 }
0x1704   :  { %v4681_v59 = vmul.f32 %v9864_v12, %v4679_v7 }
0x1706   :  { %v9866_v18 = vpop.eup %9865  ;;  %v4692_v15 = vpop.permute.xlu1 %4691 }
0x1707   :  { %v4698_v24 = vadd.f32 1.0, %v9866_v18  ;;  %v11757_v23 = vadd.f32 %v4692_v15, %v4681_v59 }
0x1709   :  { %9867 = vrcp.f32 %v4698_v24  ;;  %v5023_v59 = vrot.slane %v11757_v23, 6 }
0x170a   :  { %9869 = vtanh.f32 %v11757_v23 }
0x1713   :  { %v9868_v25 = vpop.eup %9867 }
0x1714   :  { %v9870_v57 = vpop.eup %9869 }
0x1715   :  { %v11760_v35 = vmul.f32 %v9870_v57, %v9868_v25 }
0x1717   :  { %v4711_v43 = vrot.slane %v11760_v35, 4 }
0x1719   :  { %4712 = vrot.lane.b32.xlu0 %v4711_v43, %s10409_s19 }
0x178b   :  { %v4713_v29 = vpop.permute.xlu0 %4712 }
0x178c   :  { %8437 = vmatmul.mubr.msk.f32.vlgmr.msra.gmra.mrb[50].mxu0 %vm705_vm3, %v4713_v29  ;;  %8456 = vmatmul.mubr.msk.f32.vlgmr.msra.gmra.mrb[56].mxu1 %vm705_vm3, %v4713_v29 }
0x178d   :  { %9436 = vmatpush3.bf16.msra.mxu0 %v11551_v10  ;;  %9448 = vmatpush3.bf16.msra.mxu1 %v11553_v14 }
0x178e   :  { %9437 = vmatprep.subr.bf16.mxu0 %v10407_v30  ;;  %9449 = vmatprep.subr.bf16.mxu1 %v10407_v30 }
0x178f   :  { %8474 = vmatprep.mubr.msk.f32.mxu0 %vm10408_vm0, %v10406_v6  ;;  %8493 = vmatprep.mubr.msk.f32.mxu1 %vm10408_vm0, %v10406_v6 }
0x1791   :  { %9439 = vmatpush3.bf16.msra.mxu0 %v11561_v11  ;;  %9451 = vmatpush3.bf16.msra.mxu1 %v11563_v49 }
0x1792   :  { %9440 = vmatprep.subr.bf16.mxu0 %v10407_v30  ;;  %9452 = vmatprep.subr.bf16.mxu1 %v10407_v30 }
0x1795   :  { %9442 = vmatpush3.bf16.msra.mxu0 %v11573_v31  ;;  %9454 = vmatpush3.bf16.msra.mxu1 %v11575_v33 }
0x1796   :  { %9443 = vmatprep.subr.bf16.mxu0 %v10407_v30  ;;  %9455 = vmatprep.subr.bf16.mxu1 %v10407_v30 }
0x1799   :  { %9445 = vmatpush3.bf16.msra.mxu0 %v11581_v21  ;;  %9457 = vmatpush3.bf16.msra.mxu1 %v11583_v3 }
0x179a   :  { %9458 = vmatprep.subr.bf16.mxu0 %v10407_v30  ;;  %9470 = vmatprep.subr.bf16.mxu1 %v10407_v30 }
0x179c   :  { %8475 = vmatmul.mubr.msk.f32.vlgmr.msra.gmra.mrb[52].mxu0 %vm705_vm3, %v4713_v29  ;;  %8494 = vmatmul.mubr.msk.f32.vlgmr.msra.gmra.mrb[58].mxu1 %vm705_vm3, %v4713_v29 }
0x179d   :  { %9460 = vmatpush3.bf16.msra.mxu0 %v11511_v63  ;;  %9472 = vmatpush3.bf16.msra.mxu1 %v11513_v38 }
0x179e   :  { %9461 = vmatprep.subr.bf16.mxu0 %v10407_v30  ;;  %9473 = vmatprep.subr.bf16.mxu1 %v10407_v30 }
0x179f   :  { %8512 = vmatprep.mubr.msk.f32.mxu0 %vm10408_vm0, %v10406_v6  ;;  %8531 = vmatprep.mubr.msk.f32.mxu1 %vm10408_vm0, %v10406_v6 }
0x17a1   :  { %9463 = vmatpush3.bf16.msra.mxu0 %v11519_v50  ;;  %9475 = vmatpush3.bf16.msra.mxu1 %v11521_v20 }
0x17a2   :  { %9464 = vmatprep.subr.bf16.mxu0 %v10407_v30  ;;  %9476 = vmatprep.subr.bf16.mxu1 %v10407_v30 }
0x17a5   :  { %9466 = vmatpush3.bf16.msra.mxu0 %v11531_v26  ;;  %9478 = vmatpush3.bf16.msra.mxu1 %v11533_v42 }
0x17a6   :  { %9467 = vmatprep.subr.bf16.mxu0 %v10407_v30  ;;  %9479 = vmatprep.subr.bf16.mxu1 %v10407_v30 }
0x17a9   :  { %9469 = vmatpush3.bf16.msra.mxu0 %v11543_v0  ;;  %9481 = vmatpush3.bf16.msra.mxu1 %v11545_v41 }
0x17aa   :  { %9482 = vmatprep.subr.bf16.mxu0 %v10407_v30  ;;  %9494 = vmatprep.subr.bf16.mxu1 %v10407_v30 }
0x185f   :  { %v4782_v40 = vpop.f32.mrb[50].mxu0  ;;  %v4856_v5 = vpop.f32.mrb[56].mxu1 }
0x1860   :  { %v4787_v13 = vrot.slane %v4782_v40, 2  ;;  %v4861_v2 = vrot.slane %v4856_v5, 2  ;;  %v8438_v52 = vpop.f32.mrb[51].mxu0  ;;  %v8457_v56 = vpop.f32.mrb[57].mxu1 }
0x1862   :  { %v4789_v16 = vadd.f32 %v4787_v13, %v11623_v28  ;;  %4862 = vrot.lane.b32.xlu1 %v4861_v2, %s10409_s19 }
0x1864   :  { %v6940_v55 = vmul.f32 -1.442695, %v4789_v16 }
0x1866   :  { %9871 = vpow2.f32 %v6940_v55 }
0x186f   :  { %v4932_v19 = vpop.f32.mrb[52].mxu0  ;;  %v5006_v34 = vpop.f32.mrb[58].mxu1 }
0x1870   :  { %v9872_v58 = vpop.eup %9871  ;;  %v4937_v60 = vrot.slane %v4932_v19, 2  ;;  %v5011_v36 = vrot.slane %v5006_v34, 2  ;;  %v8476_v37 = vpop.f32.mrb[53].mxu0 }
0x1871   :  { %v8495_v39 = vpop.f32.mrb[59].mxu1  ;;  %v5029_v44 = vadd.f32 1.0, %v9872_v58 }
0x1872   :  { %v4939_v45 = vadd.f32 %v4937_v60, %v11631_v4  ;;  %5012 = vrot.lane.b32.xlu0 %v5011_v36, %s10409_s19 }
0x1873   :  { %9873 = vrcp.f32 %v5029_v44 }
0x1874   :  { %9875 = vtanh.f32 %v4939_v45 }
0x187d   :  { %v9874_v46 = vpop.eup %9873 }
0x187e   :  { %v9876_v9 = vpop.eup %9875 }
0x187f   :  { %v5033_v47 = vmul.f32 %v9876_v9, %v9874_v46 }
0x1881   :  { %5035 = vrot.lane.b32.xlu1 %v5033_v47, %s10409_s19 }
0x18d4   :  { %v4863_v48 = vpop.permute.xlu1 %4862 }
0x18d5   :  { %v4865_v51 = vadd.f32 %v4863_v48, %v11623_v28 }
0x18d7   :  { %v6939_v53 = vmul.f32 -1.442695, %v4865_v51 }
0x18d9   :  { %9877 = vpow2.f32 %v6939_v53 }
0x18e3   :  { %v9878_v62 = vpop.eup %9877 }
0x18e4   :  { %v5019_v1 = vadd.f32 1.0, %v9878_v62  ;;  %v5013_v54 = vpop.permute.xlu0 %5012 }
0x18e5   :  { %v5015_v7 = vadd.f32 %v5013_v54, %v11631_v4 }
0x18e6   :  { %9879 = vrcp.f32 %v5019_v1 }
0x18e7   :  { %v6941_v12 = vmul.f32 -1.442695, %v5015_v7 }
0x18e9   :  { %9881 = vpow2.f32 %v6941_v12 }
0x18f0   :  { %v9880_v18 = vpop.eup %9879 }
0x18f1   :  { %v5025_v15 = vmul.f32 %v9880_v18, %v5023_v59 }
0x18f3   :  { %v9882_v24 = vpop.eup %9881  ;;  %v5036_v25 = vpop.permute.xlu1 %5035 }
0x18f4   :  { %v5042_v57 = vadd.f32 1.0, %v9882_v24  ;;  %v11816_v43 = vadd.f32 %v5036_v25, %v5025_v15 }
0x18f6   :  { %9883 = vrcp.f32 %v5042_v57  ;;  %v5367_v54 = vrot.slane %v11816_v43, 6 }
0x18f7   :  { %9885 = vtanh.f32 %v11816_v43 }
0x1900   :  { %v9884_v28 = vpop.eup %9883 }
0x1901   :  { %v9886_v29 = vpop.eup %9885 }
0x1902   :  { %v11819_v40 = vmul.f32 %v9886_v29, %v9884_v28 }
0x1904   :  { %v5059_v4 = vrot.slane %v11819_v40, 6 }
0x1906   :  { %5060 = vrot.lane.b32.xlu0 %v5059_v4, %s10409_s19 }
0x1978   :  { %v5061_v5 = vpop.permute.xlu0 %5060 }
0x1979   :  { %8513 = vmatmul.mubr.msk.f32.vlgmr.msra.gmra.mrb[54].mxu0 %vm705_vm3, %v5061_v5  ;;  %8532 = vmatmul.mubr.msk.f32.vlgmr.msra.gmra.mrb[60].mxu1 %vm705_vm3, %v5061_v5 }
0x197a   :  { %9484 = vmatpush3.bf16.msra.mxu0 %v11551_v10  ;;  %9496 = vmatpush3.bf16.msra.mxu1 %v11553_v14 }
0x197b   :  { %9485 = vmatprep.subr.bf16.mxu0 %v10407_v30  ;;  %9497 = vmatprep.subr.bf16.mxu1 %v10407_v30 }
0x197c   :  { %8550 = vmatprep.mubr.msk.f32.mxu0 %vm10408_vm0, %v10406_v6  ;;  %8569 = vmatprep.mubr.msk.f32.mxu1 %vm10408_vm0, %v10406_v6 }
0x197e   :  { %9487 = vmatpush3.bf16.msra.mxu0 %v11561_v11  ;;  %9499 = vmatpush3.bf16.msra.mxu1 %v11563_v49 }
0x197f   :  { %9488 = vmatprep.subr.bf16.mxu0 %v10407_v30  ;;  %9500 = vmatprep.subr.bf16.mxu1 %v10407_v30 }
0x1982   :  { %9490 = vmatpush3.bf16.msra.mxu0 %v11573_v31  ;;  %9502 = vmatpush3.bf16.msra.mxu1 %v11575_v33 }
0x1983   :  { %9491 = vmatprep.subr.bf16.mxu0 %v10407_v30  ;;  %9503 = vmatprep.subr.bf16.mxu1 %v10407_v30 }
0x1986   :  { %9493 = vmatpush3.bf16.msra.mxu0 %v11581_v21  ;;  %9505 = vmatpush3.bf16.msra.mxu1 %v11583_v3 }
0x1987   :  { %9506 = vmatprep.subr.bf16.mxu0 %v10407_v30  ;;  %9518 = vmatprep.subr.bf16.mxu1 %v10407_v30 }
0x1989   :  { %8551 = vmatmul.mubr.msk.f32.vlgmr.msra.gmra.mrb[56].mxu0 %vm705_vm3, %v5061_v5  ;;  %8570 = vmatmul.mubr.msk.f32.vlgmr.msra.gmra.mrb[62].mxu1 %vm705_vm3, %v5061_v5 }
0x198a   :  { %9508 = vmatpush3.bf16.msra.mxu0 %v11511_v63  ;;  %9520 = vmatpush3.bf16.msra.mxu1 %v11513_v38 }
0x198b   :  { %9509 = vmatprep.subr.bf16.mxu0 %v10407_v30  ;;  %9521 = vmatprep.subr.bf16.mxu1 %v10407_v30 }
0x198c   :  { %8588 = vmatprep.mubr.msk.f32.mxu0 %vm10408_vm0, %v10406_v6  ;;  %8607 = vmatprep.mubr.msk.f32.mxu1 %vm10408_vm0, %v10406_v6 }
0x198e   :  { %9511 = vmatpush3.bf16.msra.mxu0 %v11519_v50  ;;  %9523 = vmatpush3.bf16.msra.mxu1 %v11521_v20 }
0x198f   :  { %9512 = vmatprep.subr.bf16.mxu0 %v10407_v30  ;;  %9524 = vmatprep.subr.bf16.mxu1 %v10407_v30 }
0x1992   :  { %9514 = vmatpush3.bf16.msra.mxu0 %v11531_v26  ;;  %9526 = vmatpush3.bf16.msra.mxu1 %v11533_v42 }
0x1993   :  { %9515 = vmatprep.subr.bf16.mxu0 %v10407_v30  ;;  %9527 = vmatprep.subr.bf16.mxu1 %v10407_v30 }
0x1996   :  { %9517 = vmatpush3.bf16.msra.mxu0 %v11543_v0  ;;  %9529 = vmatpush3.bf16.msra.mxu1 %v11545_v41 }
0x1997   :  { %9530 = vmatprep.subr.bf16.mxu0 %v10407_v30  ;;  %9542 = vmatprep.subr.bf16.mxu1 %v10407_v30 }
0x1a4c   :  { %v5130_v23 = vpop.f32.mrb[54].mxu0  ;;  %v5201_v13 = vpop.f32.mrb[60].mxu1 }
0x1a4d   :  { %v5134_v2 = vadd.f32 %v5130_v23, %v11617_v17  ;;  %5206 = vrot.lane.b32.xlu1 %v5201_v13, %s10409_s19  ;;  %v8514_v52 = vpop.f32.mrb[55].mxu0  ;;  %v8533_v56 = vpop.f32.mrb[61].mxu1 }
0x1a4f   :  { %v6947_v16 = vmul.f32 -1.442695, %v5134_v2 }
0x1a51   :  { %9887 = vpow2.f32 %v6947_v16 }
0x1a5b   :  { %v9888_v55 = vpop.eup %9887 }
0x1a5c   :  { %v5373_v19 = vadd.f32 1.0, %v9888_v55  ;;  %v5280_v34 = vpop.f32.mrb[56].mxu0  ;;  %v5351_v58 = vpop.f32.mrb[62].mxu1 }
0x1a5d   :  { %v5284_v60 = vadd.f32 %v5280_v34, %v11625_v32  ;;  %5356 = vrot.lane.b32.xlu0 %v5351_v58, %s10409_s19  ;;  %v8552_v36 = vpop.f32.mrb[57].mxu0  ;;  %v8571_v37 = vpop.f32.mrb[63].mxu1 }
0x1a5e   :  { %9889 = vrcp.f32 %v5373_v19 }
0x1a5f   :  { %9891 = vtanh.f32 %v5284_v60 }
0x1a68   :  { %v9890_v39 = vpop.eup %9889 }
0x1a69   :  { %v9892_v44 = vpop.eup %9891 }
0x1a6a   :  { %v5377_v45 = vmul.f32 %v9892_v44, %v9890_v39 }
0x1a6c   :  { %5379 = vrot.lane.b32.xlu1 %v5377_v45, %s10409_s19 }
0x1abf   :  { %v5207_v46 = vpop.permute.xlu1 %5206 }
0x1ac0   :  { %v5209_v9 = vadd.f32 %v5207_v46, %v11617_v17 }
0x1ac2   :  { %v6946_v47 = vmul.f32 -1.442695, %v5209_v9 }
0x1ac4   :  { %9893 = vpow2.f32 %v6946_v47 }
0x1ace   :  { %v9894_v48 = vpop.eup %9893 }
0x1acf   :  { %v5363_v51 = vadd.f32 1.0, %v9894_v48  ;;  %v5357_v53 = vpop.permute.xlu0 %5356 }
0x1ad0   :  { %v5359_v62 = vadd.f32 %v5357_v53, %v11625_v32 }
0x1ad1   :  { %9895 = vrcp.f32 %v5363_v51 }
0x1ad2   :  { %v6948_v1 = vmul.f32 -1.442695, %v5359_v62 }
0x1ad4   :  { %9897 = vpow2.f32 %v6948_v1 }
0x1adb   :  { %v9896_v7 = vpop.eup %9895 }
0x1adc   :  { %v5369_v12 = vmul.f32 %v9896_v7, %v5367_v54 }
0x1ade   :  { %v9898_v59 = vpop.eup %9897  ;;  %v5380_v18 = vpop.permute.xlu1 %5379 }
0x1adf   :  { %v5386_v15 = vadd.f32 1.0, %v9898_v59  ;;  %v11875_v24 = vadd.f32 %v5380_v18, %v5369_v12 }
0x1ae1   :  { %9899 = vrcp.f32 %v5386_v15  ;;  %v5712_v7 = vrot.slane %v11875_v24, 6 }
0x1ae2   :  { %9901 = vtanh.f32 %v11875_v24 }
0x1aeb   :  { %v9900_v25 = vpop.eup %9899 }
0x1aec   :  { %v9902_v57 = vpop.eup %9901 }
0x1aed   :  { %v5390_v28 = vmul.f32 %v9902_v57, %v9900_v25 }
0x1aef   :  { %5392 = vrot.lane.b32.xlu0 %v5390_v28, %s10409_s19 }
0x1b61   :  { %v11879_v29 = vpop.permute.xlu0 %5392 }
0x1b62   :  { %8589 = vmatmul.mubr.msk.f32.vlgmr.msra.gmra.mrb[58].mxu0 %vm705_vm3, %v11879_v29  ;;  %8608 = vmatmul.mubr.msk.f32.vlgmr.msra.gmra.mrb[64].mxu1 %vm705_vm3, %v11879_v29 }
0x1b63   :  { %9532 = vmatpush3.bf16.msra.mxu0 %v11551_v10  ;;  %9544 = vmatpush3.bf16.msra.mxu1 %v11553_v14 }
0x1b64   :  { %9533 = vmatprep.subr.bf16.mxu0 %v10407_v30  ;;  %9545 = vmatprep.subr.bf16.mxu1 %v10407_v30 }
0x1b65   :  { %8626 = vmatprep.mubr.msk.f32.mxu0 %vm10408_vm0, %v10406_v6  ;;  %8645 = vmatprep.mubr.msk.f32.mxu1 %vm10408_vm0, %v10406_v6 }
0x1b67   :  { %9535 = vmatpush3.bf16.msra.mxu0 %v11561_v11  ;;  %9547 = vmatpush3.bf16.msra.mxu1 %v11563_v49 }
0x1b68   :  { %9536 = vmatprep.subr.bf16.mxu0 %v10407_v30  ;;  %9548 = vmatprep.subr.bf16.mxu1 %v10407_v30 }
0x1b6b   :  { %9538 = vmatpush3.bf16.msra.mxu0 %v11573_v31  ;;  %9550 = vmatpush3.bf16.msra.mxu1 %v11575_v33 }
0x1b6c   :  { %9539 = vmatprep.subr.bf16.mxu0 %v10407_v30  ;;  %9551 = vmatprep.subr.bf16.mxu1 %v10407_v30 }
0x1b6f   :  { %9541 = vmatpush3.bf16.msra.mxu0 %v11581_v21  ;;  %9553 = vmatpush3.bf16.msra.mxu1 %v11583_v3 }
0x1b70   :  { %9554 = vmatprep.subr.bf16.mxu0 %v10407_v30  ;;  %9566 = vmatprep.subr.bf16.mxu1 %v10407_v30 }
0x1b72   :  { %8627 = vmatmul.mubr.msk.f32.vlgmr.msra.gmra.mrb[60].mxu0 %vm705_vm3, %v11879_v29  ;;  %8646 = vmatmul.mubr.msk.f32.vlgmr.msra.gmra.mrb[66].mxu1 %vm705_vm3, %v11879_v29 }
0x1b73   :  { %9556 = vmatpush3.bf16.msra.mxu0 %v11511_v63  ;;  %9568 = vmatpush3.bf16.msra.mxu1 %v11513_v38 }
0x1b74   :  { %9557 = vmatprep.subr.bf16.mxu0 %v10407_v30  ;;  %9569 = vmatprep.subr.bf16.mxu1 %v10407_v30 }
0x1b75   :  { %8664 = vmatprep.mubr.msk.f32.mxu0 %vm10408_vm0, %v10406_v6  ;;  %8683 = vmatprep.mubr.msk.f32.mxu1 %vm10408_vm0, %v10406_v6 }
0x1b77   :  { %9559 = vmatpush3.bf16.msra.mxu0 %v11519_v50  ;;  %9571 = vmatpush3.bf16.msra.mxu1 %v11521_v20 }
0x1b78   :  { %9560 = vmatprep.subr.bf16.mxu0 %v10407_v30  ;;  %9572 = vmatprep.subr.bf16.mxu1 %v10407_v30 }
0x1b7b   :  { %9562 = vmatpush3.bf16.msra.mxu0 %v11531_v26  ;;  %9574 = vmatpush3.bf16.msra.mxu1 %v11533_v42 }
0x1b7c   :  { %9563 = vmatprep.subr.bf16.mxu0 %v10407_v30  ;;  %9575 = vmatprep.subr.bf16.mxu1 %v10407_v30 }
0x1b7f   :  { %9565 = vmatpush3.bf16.msra.mxu0 %v11543_v0  ;;  %9577 = vmatpush3.bf16.msra.mxu1 %v11545_v41 }
0x1b80   :  { %9578 = vmatprep.subr.bf16.mxu0 %v10407_v30  ;;  %9590 = vmatprep.subr.bf16.mxu1 %v10407_v30 }
0x1c35   :  { %v5468_v43 = vpop.f32.mrb[58].mxu0  ;;  %v5542_v4 = vpop.f32.mrb[64].mxu1 }
0x1c36   :  { %v5473_v5 = vrot.slane %v5468_v43, 6  ;;  %v5547_v23 = vrot.slane %v5542_v4, 6  ;;  %v8590_v13 = vpop.f32.mrb[59].mxu0  ;;  %v8609_v2 = vpop.f32.mrb[65].mxu1 }
0x1c38   :  { %v5475_v52 = vadd.f32 %v5473_v5, %v11619_v22  ;;  %5548 = vrot.lane.b32.xlu1 %v5547_v23, %s10409_s19 }
0x1c3a   :  { %v6954_v56 = vmul.f32 -1.442695, %v5475_v52 }
0x1c3c   :  { %9903 = vpow2.f32 %v6954_v56 }
0x1c45   :  { %v5621_v16 = vpop.f32.mrb[60].mxu0  ;;  %v5695_v55 = vpop.f32.mrb[66].mxu1 }
0x1c46   :  { %v9904_v19 = vpop.eup %9903  ;;  %v5626_v34 = vrot.slane %v5621_v16, 6  ;;  %v5700_v58 = vrot.slane %v5695_v55, 6  ;;  %v8628_v60 = vpop.f32.mrb[61].mxu0 }
0x1c47   :  { %v8647_v36 = vpop.f32.mrb[67].mxu1  ;;  %v5718_v37 = vadd.f32 1.0, %v9904_v19 }
0x1c48   :  { %v5628_v39 = vadd.f32 %v5626_v34, %v11627_v61  ;;  %5701 = vrot.lane.b32.xlu0 %v5700_v58, %s10409_s19 }
0x1c49   :  { %9905 = vrcp.f32 %v5718_v37 }
0x1c4a   :  { %9907 = vtanh.f32 %v5628_v39 }
0x1c53   :  { %v9906_v44 = vpop.eup %9905 }
0x1c54   :  { %v9908_v45 = vpop.eup %9907 }
0x1c55   :  { %v5722_v46 = vmul.f32 %v9908_v45, %v9906_v44 }
0x1c57   :  { %5724 = vrot.lane.b32.xlu1 %v5722_v46, %s10409_s19 }
0x1caa   :  { %v5549_v9 = vpop.permute.xlu1 %5548 }
0x1cab   :  { %v5551_v47 = vadd.f32 %v5549_v9, %v11619_v22 }
0x1cad   :  { %v6953_v48 = vmul.f32 -1.442695, %v5551_v47 }
0x1caf   :  { %9909 = vpow2.f32 %v6953_v48 }
0x1cb9   :  { %v9910_v51 = vpop.eup %9909 }
0x1cba   :  { %v5708_v53 = vadd.f32 1.0, %v9910_v51  ;;  %v5702_v62 = vpop.permute.xlu0 %5701 }
0x1cbb   :  { %v5704_v1 = vadd.f32 %v5702_v62, %v11627_v61 }
0x1cbc   :  { %9911 = vrcp.f32 %v5708_v53 }
0x1cbd   :  { %v6955_v54 = vmul.f32 -1.442695, %v5704_v1 }
0x1cbf   :  { %9913 = vpow2.f32 %v6955_v54 }
0x1cc6   :  { %v9912_v12 = vpop.eup %9911 }
0x1cc7   :  { %v5714_v59 = vmul.f32 %v9912_v12, %v5712_v7 }
0x1cc9   :  { %v9914_v18 = vpop.eup %9913  ;;  %v5725_v15 = vpop.permute.xlu1 %5724 }
0x1cca   :  { %v5731_v25 = vadd.f32 1.0, %v9914_v18  ;;  %v11937_v57 = vadd.f32 %v5725_v15, %v5714_v59 }
0x1ccc   :  { %9915 = vrcp.f32 %v5731_v25  ;;  %v6054_v51 = vrot.slane %v11937_v57, 6 }
0x1ccd   :  { %9917 = vtanh.f32 %v11937_v57 }
0x1cd6   :  { %v9916_v28 = vpop.eup %9915 }
0x1cd7   :  { %v9918_v43 = vpop.eup %9917 }
0x1cd8   :  { %v11940_v4 = vmul.f32 %v9918_v43, %v9916_v28 }
0x1cda   :  { %v5742_v5 = vrot.slane %v11940_v4, 2 }
0x1cdc   :  { %5743 = vrot.lane.b32.xlu0 %v5742_v5, %s10409_s19 }
0x1d4e   :  { %v5744_v23 = vpop.permute.xlu0 %5743 }
0x1d4f   :  { %8665 = vmatmul.mubr.msk.f32.vlgmr.msra.gmra.mrb[62].mxu0 %vm705_vm3, %v5744_v23  ;;  %8684 = vmatmul.mubr.msk.f32.vlgmr.msra.gmra.mrb[68].mxu1 %vm705_vm3, %v5744_v23 }
0x1d50   :  { %9580 = vmatpush3.bf16.msra.mxu0 %v11551_v10  ;;  %9592 = vmatpush3.bf16.msra.mxu1 %v11553_v14 }
0x1d51   :  { %9581 = vmatprep.subr.bf16.mxu0 %v10407_v30  ;;  %9593 = vmatprep.subr.bf16.mxu1 %v10407_v30 }
0x1d52   :  { %8702 = vmatprep.mubr.msk.f32.mxu0 %vm10408_vm0, %v10406_v6  ;;  %8721 = vmatprep.mubr.msk.f32.mxu1 %vm10408_vm0, %v10406_v6 }
0x1d54   :  { %9583 = vmatpush3.bf16.msra.mxu0 %v11561_v11  ;;  %9595 = vmatpush3.bf16.msra.mxu1 %v11563_v49 }
0x1d55   :  { %9584 = vmatprep.subr.bf16.mxu0 %v10407_v30  ;;  %9596 = vmatprep.subr.bf16.mxu1 %v10407_v30 }
0x1d58   :  { %9586 = vmatpush3.bf16.msra.mxu0 %v11573_v31  ;;  %9598 = vmatpush3.bf16.msra.mxu1 %v11575_v33 }
0x1d59   :  { %9587 = vmatprep.subr.bf16.mxu0 %v10407_v30  ;;  %9599 = vmatprep.subr.bf16.mxu1 %v10407_v30 }
0x1d5c   :  { %9589 = vmatpush3.bf16.msra.mxu0 %v11581_v21  ;;  %9601 = vmatpush3.bf16.msra.mxu1 %v11583_v3 }
0x1d5d   :  { %9602 = vmatprep.subr.bf16.mxu0 %v10407_v30  ;;  %9614 = vmatprep.subr.bf16.mxu1 %v10407_v30 }
0x1d5f   :  { %8703 = vmatmul.mubr.msk.f32.vlgmr.msra.gmra.mrb[64].mxu0 %vm705_vm3, %v5744_v23  ;;  %8722 = vmatmul.mubr.msk.f32.vlgmr.msra.gmra.mrb[70].mxu1 %vm705_vm3, %v5744_v23 }
0x1d60   :  { %9604 = vmatpush3.bf16.msra.mxu0 %v11511_v63  ;;  %9616 = vmatpush3.bf16.msra.mxu1 %v11513_v38 }
0x1d61   :  { %9605 = vmatprep.subr.bf16.mxu0 %v10407_v30  ;;  %9617 = vmatprep.subr.bf16.mxu1 %v10407_v30 }
0x1d62   :  { %8740 = vmatprep.mubr.msk.f32.mxu0 %vm10408_vm0, %v10406_v6  ;;  %8759 = vmatprep.mubr.msk.f32.mxu1 %vm10408_vm0, %v10406_v6 }
0x1d64   :  { %9607 = vmatpush3.bf16.msra.mxu0 %v11519_v50  ;;  %9619 = vmatpush3.bf16.msra.mxu1 %v11521_v20 }
0x1d65   :  { %9608 = vmatprep.subr.bf16.mxu0 %v10407_v30  ;;  %9620 = vmatprep.subr.bf16.mxu1 %v10407_v30 }
0x1d68   :  { %9610 = vmatpush3.bf16.msra.mxu0 %v11531_v26  ;;  %9622 = vmatpush3.bf16.msra.mxu1 %v11533_v42 }
0x1d69   :  { %9611 = vmatprep.subr.bf16.mxu0 %v10407_v30  ;;  %9623 = vmatprep.subr.bf16.mxu1 %v10407_v30 }
0x1d6c   :  { %9613 = vmatpush3.bf16.msra.mxu0 %v11543_v0  ;;  %9625 = vmatpush3.bf16.msra.mxu1 %v11545_v41 }
0x1d6d   :  { %9626 = vmatprep.subr.bf16.mxu0 %v10407_v30  ;;  %9638 = vmatprep.subr.bf16.mxu1 %v10407_v30 }
0x1e22   :  { %v5813_v63 = vpop.f32.mrb[62].mxu0  ;;  %v5887_v38 = vpop.f32.mrb[68].mxu1 }
0x1e23   :  { %v5818_v50 = vrot.slane %v5813_v63, 4  ;;  %v5892_v20 = vrot.slane %v5887_v38, 4  ;;  %v8666_v24 = vpop.f32.mrb[63].mxu0  ;;  %v8685_v26 = vpop.f32.mrb[69].mxu1 }
0x1e25   :  { %v5820_v42 = vadd.f32 %v5818_v50, %v11617_v17  ;;  %5893 = vrot.lane.b32.xlu1 %v5892_v20, %s10409_s19 }
0x1e27   :  { %v6961_v13 = vmul.f32 -1.442695, %v5820_v42 }
0x1e29   :  { %9919 = vpow2.f32 %v6961_v13 }
0x1e32   :  { %v5963_v2 = vpop.f32.mrb[64].mxu0  ;;  %v6037_v0 = vpop.f32.mrb[70].mxu1 }
0x1e33   :  { %v9920_v52 = vpop.eup %9919  ;;  %v5968_v41 = vrot.slane %v5963_v2, 4  ;;  %v6042_v56 = vrot.slane %v6037_v0, 4  ;;  %v8704_v16 = vpop.f32.mrb[65].mxu0 }
0x1e34   :  { %v8723_v55 = vpop.f32.mrb[71].mxu1  ;;  %v6060_v19 = vadd.f32 1.0, %v9920_v52 }
0x1e35   :  { %v5970_v34 = vadd.f32 %v5968_v41, %v11625_v32  ;;  %6043 = vrot.lane.b32.xlu0 %v6042_v56, %s10409_s19 }
0x1e36   :  { %9921 = vrcp.f32 %v6060_v19 }
0x1e37   :  { %9923 = vtanh.f32 %v5970_v34 }
0x1e40   :  { %v9922_v58 = vpop.eup %9921 }
0x1e41   :  { %v9924_v60 = vpop.eup %9923 }
0x1e42   :  { %v6064_v36 = vmul.f32 %v9924_v60, %v9922_v58 }
0x1e44   :  { %6066 = vrot.lane.b32.xlu1 %v6064_v36, %s10409_s19 }
0x1e97   :  { %v5894_v37 = vpop.permute.xlu1 %5893 }
0x1e98   :  { %v5896_v39 = vadd.f32 %v5894_v37, %v11617_v17 }
0x1e9a   :  { %v6960_v44 = vmul.f32 -1.442695, %v5896_v39 }
0x1e9c   :  { %9925 = vpow2.f32 %v6960_v44 }
0x1ea6   :  { %v9926_v45 = vpop.eup %9925 }
0x1ea7   :  { %v6050_v46 = vadd.f32 1.0, %v9926_v45  ;;  %v6044_v9 = vpop.permute.xlu0 %6043 }
0x1ea8   :  { %v6046_v47 = vadd.f32 %v6044_v9, %v11625_v32 }
0x1ea9   :  { %9927 = vrcp.f32 %v6050_v46 }
0x1eaa   :  { %v6962_v48 = vmul.f32 -1.442695, %v6046_v47  ;;  %v6970_v47 = vld [vmem:[#allocation28] ss:$0 sm:$0xff] }
0x1eac   :  { %9929 = vpow2.f32 %v6962_v48 }
0x1eb3   :  { %v9928_v53 = vpop.eup %9927 }
0x1eb4   :  { %v6056_v62 = vmul.f32 %v9928_v53, %v6054_v51 }
0x1eb6   :  { %v9930_v1 = vpop.eup %9929  ;;  %v6067_v54 = vpop.permute.xlu1 %6066 }
0x1eb7   :  { %v6073_v7 = vadd.f32 1.0, %v9930_v1  ;;  %v11996_v12 = vadd.f32 %v6067_v54, %v6056_v62 }
0x1eb9   :  { %9931 = vrcp.f32 %v6073_v7 }
0x1eba   :  { %9933 = vtanh.f32 %v11996_v12 }
0x1ec3   :  { %v9932_v17 = vpop.eup %9931 }
0x1ec4   :  { %v9934_v59 = vpop.eup %9933 }
0x1ec5   :  { %v6077_v18 = vmul.f32 %v9934_v59, %v9932_v17 }
0x1ec7   :  { %v6084_v15 = vrot.slane %v6077_v18, 4 }
0x1ec9   :  { %6085 = vrot.lane.b32.xlu0 %v6084_v15, %s10409_s19 }
0x1f3b   :  { %v6086_v32 = vpop.permute.xlu0 %6085 }
0x1f3c   :  { %8741 = vmatmul.mubr.msk.f32.vlgmr.msra.gmra.mrb[66].mxu0 %vm705_vm3, %v6086_v32  ;;  %8760 = vmatmul.mubr.msk.f32.vlgmr.msra.gmra.mrb[72].mxu1 %vm705_vm3, %v6086_v32 }
0x1f3d   :  { %9628 = vmatpush3.bf16.msra.mxu0 %v11551_v10  ;;  %9640 = vmatpush3.bf16.msra.mxu1 %v11553_v14 }
0x1f3e   :  { %9629 = vmatprep.subr.bf16.mxu0 %v10407_v30  ;;  %9641 = vmatprep.subr.bf16.mxu1 %v10407_v30 }
0x1f3f   :  { %8778 = vmatprep.mubr.msk.f32.mxu0 %vm10408_vm0, %v10406_v6  ;;  %8797 = vmatprep.mubr.msk.f32.mxu1 %vm10408_vm0, %v10406_v6 }
0x1f41   :  { %9631 = vmatpush3.bf16.msra.mxu0 %v11561_v11  ;;  %9643 = vmatpush3.bf16.msra.mxu1 %v11563_v49 }
0x1f42   :  { %9632 = vmatprep.subr.bf16.mxu0 %v10407_v30  ;;  %9644 = vmatprep.subr.bf16.mxu1 %v10407_v30 }
0x1f45   :  { %9634 = vmatpush3.bf16.msra.mxu0 %v11573_v31  ;;  %9646 = vmatpush3.bf16.msra.mxu1 %v11575_v33 }
0x1f46   :  { %9635 = vmatprep.subr.bf16.mxu0 %v10407_v30  ;;  %9647 = vmatprep.subr.bf16.mxu1 %v10407_v30 }
0x1f49   :  { %9637 = vmatpush3.bf16.msra.mxu0 %v11581_v21  ;;  %9649 = vmatpush3.bf16.msra.mxu1 %v11583_v3 }
0x1f4a   :  { %9650 = vmatprep.subr.bf16.mxu0 %v10407_v30  ;;  %9662 = vmatprep.subr.bf16.mxu1 %v10407_v30 }
0x1f4c   :  { %8779 = vmatmul.mubr.msk.f32.vlgmr.msra.gmra.mrb[68].mxu0 %vm705_vm3, %v6086_v32  ;;  %8798 = vmatmul.mubr.msk.f32.vlgmr.msra.gmra.mrb[74].mxu1 %vm705_vm3, %v6086_v32 }
0x1f4d   :  { %8816 = vmatprep.mubr.msk.f32.mxu0 %vm10408_vm0, %v10406_v6  ;;  %8823 = vmatprep.mubr.msk.f32.mxu1 %vm10408_vm0, %v10406_v6  ;;  %vm6759_vm0 = vcmask 32768  }
0x200f   :  { %v6155_v10 = vpop.f32.mrb[66].mxu0  ;;  %v6229_v14 = vpop.f32.mrb[72].mxu1 }
0x2010   :  { %v6160_v11 = vrot.slane %v6155_v10, 2  ;;  %v6234_v49 = vrot.slane %v6229_v14, 2  ;;  %v8742_v31 = vpop.f32.mrb[67].mxu0  ;;  %v8761_v33 = vpop.f32.mrb[73].mxu1 }
0x2012   :  { %v6162_v21 = vadd.f32 %v6160_v11, %v11619_v22  ;;  %6235 = vrot.lane.b32.xlu1 %v6234_v49, %s10409_s19 }
0x2014   :  { %v6968_v3 = vmul.f32 -1.442695, %v6162_v21 }
0x2016   :  { %9935 = vpow2.f32 %v6968_v3 }
0x201f   :  { %v6305_v25 = vpop.f32.mrb[68].mxu0  ;;  %v6379_v57 = vpop.f32.mrb[74].mxu1 }
0x2020   :  { %v9936_v28 = vpop.eup %9935  ;;  %v6310_v43 = vrot.slane %v6305_v25, 2  ;;  %v6384_v5 = vrot.slane %v6379_v57, 2  ;;  %v8780_v23 = vpop.f32.mrb[69].mxu0 }
0x2021   :  { %v8799_v63 = vpop.f32.mrb[75].mxu1  ;;  %v6402_v6 = vadd.f32 1.0, %v9936_v28 }
0x2022   :  { %v6312_v38 = vadd.f32 %v6310_v43, %v11627_v61  ;;  %6385 = vrot.lane.b32.xlu0 %v6384_v5, %s10409_s19 }
0x2023   :  { %9937 = vrcp.f32 %v6402_v6  ;;  %v6569_v6 = vld [vmem:[%s12195_s18] sm:$0xff] }
0x2024   :  { %9939 = vtanh.f32 %v6312_v38  ;;  %v6570_v38 = vld [vmem:[%s12195_s18 + $0x8] sm:$0xff] }
0x2026   :  { %4360 = vrot.lane.b32.xlu0 %v11701_v27, %s10409_s19 }
0x202a   :  { %5048 = vrot.lane.b32.xlu0 %v11819_v40, %s10409_s19 }
0x202d   :  { %v9938_v50 = vpop.eup %9937 }
0x202e   :  { %v9940_v20 = vpop.eup %9939  ;;  %6079 = vrot.lane.b32.xlu0 %v6077_v18, %s10409_s19 }
0x202f   :  { %v6406_v24 = vmul.f32 %v9940_v20, %v9938_v50  ;;  %v6571_v50 = vld [vmem:[%s12195_s18 + $0x10] sm:$0xff]  ;;  %v9651_v20 = vpack.c.bf16 %v6570_v38, %v6569_v6 }
0x2031   :  { %6408 = vrot.lane.b32.xlu1 %v6406_v24, %s10409_s19  ;;  %v6572_v24 = vld [vmem:[%s12195_s18 + $0x18] sm:$0xff]  ;;  %9652 = vmatpush3.bf16.msra.mxu0 %v9651_v20 }
0x2032   :  { %9653 = vmatprep.subr.bf16.mxu0 %v10407_v30 }
0x2035   :  { %4704 = vrot.lane.b32.xlu1 %v11760_v35, %s10409_s19 }
0x2039   :  { %5737 = vrot.lane.b32.xlu1 %v11940_v4, %s10409_s19 }
0x2084   :  { %v6236_v26 = vpop.permute.xlu1 %6235 }
0x2085   :  { %v6238_v42 = vadd.f32 %v6236_v26, %v11619_v22  ;;  %v6396_v22 = vrot.slane %v11996_v12, 6  ;;  %v9654_v26 = vpack.c.bf16 %v6572_v24, %v6571_v50 }
0x2087   :  { %v6967_v27 = vmul.f32 -1.442695, %v6238_v42  ;;  %v6573_v42 = vld [vmem:[%s12195_s18 + $0x20] sm:$0xff]  ;;  %9655 = vmatpush3.bf16.msra.mxu0 %v9654_v26 }
0x2088   :  { %9656 = vmatprep.subr.bf16.mxu0 %v10407_v30 }
0x2089   :  { %9941 = vpow2.f32 %v6967_v27  ;;  %v6574_v27 = vld [vmem:[%s12195_s18 + $0x28] sm:$0xff] }
0x2093   :  { %v9942_v13 = vpop.eup %9941 }
0x2094   :  { %v6392_v40 = vadd.f32 1.0, %v9942_v13  ;;  %v6386_v2 = vpop.permute.xlu0 %6385  ;;  %v9657_v13 = vpack.c.bf16 %v6574_v27, %v6573_v42 }
0x2095   :  { %v6388_v0 = vadd.f32 %v6386_v2, %v11627_v61  ;;  %v6576_v2 = vld [vmem:[%s12195_s18 + $0x38] sm:$0xff] }
0x2096   :  { %9943 = vrcp.f32 %v6392_v40  ;;  %v6575_v40 = vld [vmem:[%s12195_s18 + $0x30] sm:$0xff]  ;;  %9658 = vmatpush3.bf16.msra.mxu0 %v9657_v13 }
0x2097   :  { %v6969_v52 = vmul.f32 -1.442695, %v6388_v0  ;;  %v9660_v0 = vpack.c.bf16 %v6576_v2, %v6575_v40  ;;  %9659 = vmatprep.subr.bf16.mxu0 %v10407_v30 }
0x2098   :  { %v4361_v41 = vpop.permute.xlu0 %4360 }
0x2099   :  { %9945 = vpow2.f32 %v6969_v52  ;;  %4364 = vst.msk [vmem:[#allocation3] sm:$0xc] %vm1384_vm7, %v4361_v41  ;;  %v6657_v52 = vld [vmem:[%s12197_s20] sm:$0xff] }
0x209a   :  { %4366 = vst.msk [vmem:[#allocation3 + $0xa] sm:$0xc] %vm1386_vm10, %v4361_v41  ;;  %9661 = vmatpush3.bf16.msra.mxu0 %v9660_v0  ;;  %v6658_v41 = vld [vmem:[%s12197_s20 + $0x8] sm:$0xff] }
0x209c   :  { %v5049_v35 = vpop.permute.xlu0 %5048 }
0x209d   :  { %5052 = vst.msk [vmem:[#allocation3] sm:$0xc0] %vm2072_vm6, %v5049_v35 }
0x209e   :  { %5054 = vst.msk [vmem:[#allocation3 + $0x2] sm:$0xc0] %vm2074_vm8, %v5049_v35  ;;  %v9663_v35 = vpack.c.bf16 %v6658_v41, %v6657_v52 }
0x209f   :  { %5395 = vst.msk [vmem:[#allocation3 + $0x8] sm:$0x3] %vm1037_vm4, %v11879_v29 }
0x20a0   :  { %5396 = vst.msk [vmem:[#allocation3 + $0x6] sm:$0x3] %vm1039_vm5, %v11879_v29  ;;  %v9944_v61 = vpop.eup %9943  ;;  %v6080_v4 = vpop.permute.xlu0 %6079  ;;  %9664 = vmatpush3.bf16.msra.mxu1 %v9663_v35 }
0x20a1   :  { %6082 = vst.msk [vmem:[#allocation3 + $0x8] sm:$0x30] %vm1728_vm9, %v6080_v4  ;;  %v6398_v56 = vmul.f32 %v9944_v61, %v6396_v22 }
0x20a2   :  { %6083 = vst.msk [vmem:[#allocation3 - $0x2] sm:$0x30] %vm1730_vm11, %v6080_v4 }
0x20a3   :  { %v9946_v16 = vpop.eup %9945  ;;  %v6409_v55 = vpop.permute.xlu1 %6408 }
0x20a4   :  { %v6415_v19 = vadd.f32 1.0, %v9946_v16  ;;  %v6411_v34 = vadd.f32 %v6409_v55, %v6398_v56 }
0x20a6   :  { %9947 = vrcp.f32 %v6415_v19  ;;  %v12074_v12 = vld [vmem:[#allocation3 + $0x8] sm:$0x3] }
0x20a7   :  { %9949 = vtanh.f32 %v6411_v34  ;;  %v4705_v58 = vpop.permute.xlu1 %4704  ;;  %v12059_v36 = vld [vmem:[#allocation3 + $0x6] sm:$0x3] }
0x20a8   :  { %4708 = vst.msk [vmem:[#allocation3] sm:$0x30] %vm1728_vm9, %v4705_v58  ;;  %9951 = vtanh.f32 %v12059_v36  ;;  %v12078_v59 = vld [vmem:[#allocation3 + $0xc] sm:$0x3] }
0x20a9   :  { %4710 = vst.msk [vmem:[#allocation3 + $0x6] sm:$0x30] %vm1730_vm11, %v4705_v58  ;;  %v12070_v1 = vld [vmem:[#allocation3 + $0x2] sm:$0x3] }
0x20ab   :  { %v5738_v29 = vpop.permute.xlu1 %5737 }
0x20ac   :  { %5740 = vst.msk [vmem:[#allocation3 + $0x8] sm:$0xc] %vm1384_vm7, %v5738_v29 }
0x20ad   :  { %5741 = vst.msk [vmem:[#allocation3 + $0x2] sm:$0xc] %vm1386_vm10, %v5738_v29 }
0x20b0   :  { %v9948_v60 = vpop.eup %9947 }
0x20b1   :  { %v9950_v37 = vpop.eup %9949 }
0x20b2   :  { %v6419_v39 = vmul.f32 %v9950_v37, %v9948_v60  ;;  %v9952_v46 = vpop.eup %9951 }
0x20b3   :  { %v12066_v45 = vld [vmem:[#allocation3 + $0xa] sm:$0x3]  ;;  %v6452_v53 = vmul.f32 %v9952_v46, %v6970_v47 }
0x20b4   :  { %v12061_v44 = vld [vmem:[#allocation3 + $0x4] sm:$0x3]  ;;  %6421 = vrot.lane.b32.xlu1 %v6419_v39, %s10409_s19  ;;  %s10341_s19 = scalar_lea.vmem %s6806_s14, 16 }
0x20b5   :  { %9953 = vtanh.f32 %v12061_v44  ;;  %v6467_v54 = vsel %vm6457_vm12, %v6452_v53, 0.0  ;;  %p10342_p2 = scmp.ne.s32.totalorder %s6806_s14, %s10341_s19  ;;  %p10347_p4 = scmp.lt.s32.totalorder %s10345_s17, %s10341_s19 }
0x20b6   :  { %9955 = vtanh.f32 %v12066_v45 }
0x20b7   :  { %9957 = vtanh.f32 %v12070_v1  ;;  %p10348_p5 = por %p10347_p4, %p10346_p3 }
0x20b8   :  { %9959 = vtanh.f32 %v12074_v12 }
0x20b9   :  { %9961 = vtanh.f32 %v12078_v59  ;;  %p10349_p6 = pnand %p10348_p5, %p10342_p2 }
0x20bf   :  { %v9954_v9 = vpop.eup %9953 }
0x20c0   :  { %v6451_v48 = vmul.f32 %v9954_v9, %v6970_v47  ;;  %v9956_v62 = vpop.eup %9955 }
0x20c1   :  { %v6454_v7 = vmul.f32 %v9956_v62, %v6970_v47  ;;  %v9958_v18 = vpop.eup %9957 }
0x20c2   :  { %v6464_v51 = vsel %vm6457_vm12, %v6451_v48, 0.0  ;;  %v6450_v15 = vmul.f32 %v9958_v18, %v6970_v47  ;;  %v9960_v32 = vpop.eup %9959 }
0x20c3   :  { %6465 = vadd.xlane.f32.xlu0 %v6464_v51  ;;  %v6473_v17 = vsel %vm6457_vm12, %v6454_v7, 0.0  ;;  %v6453_v14 = vmul.f32 %v9960_v32, %v6970_v47  ;;  %v9962_v11 = vpop.eup %9961 }
0x20c4   :  { %v6461_v10 = vsel %vm6457_vm12, %v6450_v15, 0.0  ;;  %v6455_v31 = vmul.f32 %v9962_v11, %v6970_v47 }
0x20c5   :  { %v6470_v49 = vsel %vm6457_vm12, %v6453_v14, 0.0 }
0x20c6   :  { %v6476_v33 = vsel %vm6457_vm12, %v6455_v31, 0.0 }
0x20c7   :  { %6468 = vadd.xlane.f32.xlu0 %v6467_v54 }
0x20cb   :  { %6474 = vadd.xlane.f32.xlu0 %v6473_v17 }
0x20d8   :  { %6462 = vadd.xlane.f32.xlu1 %v6461_v10 }
0x20dc   :  { %6471 = vadd.xlane.f32.xlu1 %v6470_v49 }
0x20e0   :  { %6477 = vadd.xlane.f32.xlu1 %v6476_v33 }
0x2126   :  { %v6422_v21 = vpop.permute.xlu1 %6421 }
0x2127   :  { %6424 = vst.msk [vmem:[#allocation3 + $0x8] sm:$0xc0] %vm2072_vm6, %v6422_v21 }
0x2128   :  { %6425 = vst.msk [vmem:[#allocation3 - $0x6] sm:$0xc0] %vm2074_vm8, %v6422_v21 }
0x212e   :  { %v12088_v25 = vld [vmem:[#allocation3 + $0xe] sm:$0x3] }
0x212f   :  { %v12086_v3 = vld [vmem:[#allocation3] sm:$0x3] }
0x2130   :  { %9963 = vtanh.f32 %v12086_v3 }
0x2131   :  { %9965 = vtanh.f32 %v12088_v25 }
0x213a   :  { %v9964_v57 = vpop.eup %9963 }
0x213b   :  { %v9966_v28 = vpop.eup %9965  ;;  %v6449_v43 = vmul.f32 %v9964_v57, %v6970_v47 }
0x213c   :  { %v6456_v23 = vmul.f32 %v9966_v28, %v6970_v47 }
0x213d   :  { %v6458_v5 = vsel %vm6457_vm12, %v6449_v43, 0.0 }
0x213e   :  { %6459 = vadd.xlane.f32.xlu0 %v6458_v5  ;;  %v6479_v63 = vsel %vm6457_vm12, %v6456_v23, 0.0 }
0x2142   :  { %6480 = vadd.xlane.f32.xlu0 %v6479_v63 }
0x2150   :  { %v6466_v22 = vpop.xlane.xlu0 %6465 }
0x2151   :  { %v6484_v39 = vsel %vm374_vm1, %v6466_v22, -inf }
0x2154   :  { %v6469_v4 = vpop.xlane.xlu0 %6468 }
0x2155   :  { %v6485_v46 = vsel %vm374_vm1, %v6469_v4, -inf }
0x2158   :  { %v6475_v16 = vpop.xlane.xlu0 %6474 }
0x2159   :  { %v6488_v9 = vsel %vm374_vm1, %v6475_v16, -inf }
0x2165   :  { %v6463_v61 = vpop.xlane.xlu1 %6462 }
0x2166   :  { %v6483_v34 = vsel %vm374_vm1, %v6463_v61, -inf }
0x2167   :  { %v6489_v48 = vmax.f32 %v6483_v34, %v6488_v9 }
0x2169   :  { %v6472_v56 = vpop.xlane.xlu1 %6471 }
0x216a   :  { %v6486_v58 = vsel %vm374_vm1, %v6472_v56, -inf }
0x216d   :  { %v6478_v55 = vpop.xlane.xlu1 %6477 }
0x216e   :  { %v6490_v29 = vsel %vm374_vm1, %v6478_v55, -inf }
0x216f   :  { %v6491_v51 = vmax.f32 %v6484_v39, %v6490_v29 }
0x21cb   :  { %v6460_v19 = vpop.xlane.xlu0 %6459 }
0x21cc   :  { %v6482_v30 = vsel %vm374_vm1, %v6460_v19, -inf }
0x21cd   :  { %v6487_v60 = vmax.f32 %v6482_v30, %v6486_v58 }
0x21cf   :  { %v6481_v37 = vpop.xlane.xlu0 %6480  ;;  %v6494_v62 = vmax.f32 %v6487_v60, %v6489_v48 }
0x21d0   :  { %v6492_v47 = vsel %vm374_vm1, %v6481_v37, -inf }
0x21d1   :  { %v6493_v53 = vmax.f32 %v6485_v46, %v6492_v47 }
0x21d3   :  { %v6495_v54 = vmax.f32 %v6491_v51, %v6493_v53 }
0x21d5   :  { %v6496_v7 = vmax.f32 %v6494_v62, %v6495_v54 }
0x21d7   :  { %v6497_v17 = vsub.f32 %v6460_v19, %v6496_v7  ;;  %v6498_v18 = vsub.f32 %v6463_v61, %v6496_v7  ;;  %v6499_v15 = vsub.f32 %v6466_v22, %v6496_v7  ;;  %v6500_v32 = vsub.f32 %v6469_v4, %v6496_v7 }
0x21d8   :  { %v6501_v10 = vsub.f32 %v6472_v56, %v6496_v7  ;;  %v6502_v31 = vsub.f32 %v6475_v16, %v6496_v7  ;;  %v6503_v21 = vsub.f32 %v6478_v55, %v6496_v7  ;;  %v6504_v28 = vsub.f32 %v6481_v37, %v6496_v7 }
0x21d9   :  { %v6505_v14 = vmul.f32 1.442695, %v6497_v17  ;;  %v6507_v11 = vmul.f32 1.442695, %v6498_v18  ;;  %v6509_v49 = vmul.f32 1.442695, %v6499_v15 }
0x21da   :  { %v6511_v33 = vmul.f32 1.442695, %v6500_v32  ;;  %v6513_v57 = vmul.f32 1.442695, %v6501_v10  ;;  %v6515_v43 = vmul.f32 1.442695, %v6502_v31 }
0x21db   :  { %9967 = vpow2.f32 %v6505_v14  ;;  %v6517_v5 = vmul.f32 1.442695, %v6503_v21  ;;  %v6519_v23 = vmul.f32 1.442695, %v6504_v28 }
0x21dc   :  { %9969 = vpow2.f32 %v6507_v11 }
0x21dd   :  { %9971 = vpow2.f32 %v6509_v49 }
0x21de   :  { %9973 = vpow2.f32 %v6511_v33 }
0x21df   :  { %9975 = vpow2.f32 %v6513_v57  ;;  %v6971_v57 = vld [vmem:[#allocation29] ss:$0 sm:$0xff] }
0x21e0   :  { %9977 = vpow2.f32 %v6515_v43 }
0x21e1   :  { %9979 = vpow2.f32 %v6517_v5  ;;  %v6973_v5 = vld [vmem:[#allocation31] ss:$0 sm:$0xff] }
0x21e2   :  { %9981 = vpow2.f32 %v6519_v23 }
0x21e5   :  { %v9968_v63 = vpop.eup %9967 }
0x21e6   :  { %v9970_v6 = vpop.eup %9969  ;;  %v6521_v38 = vsel %vm374_vm1, %v9968_v63, 0.0 }
0x21e7   :  { %v9972_v50 = vpop.eup %9971  ;;  %v6522_v20 = vsel %vm374_vm1, %v9970_v6, 0.0 }
0x21e8   :  { %v9974_v24 = vpop.eup %9973  ;;  %v6523_v26 = vadd.f32 %v6522_v20, %v6521_v38  ;;  %v6524_v42 = vsel %vm374_vm1, %v9972_v50, 0.0 }
0x21e9   :  { %v9976_v27 = vpop.eup %9975  ;;  %v6526_v40 = vsel %vm374_vm1, %v9974_v24, 0.0 }
0x21ea   :  { %v6525_v13 = vadd.f32 %v6524_v42, %v6523_v26  ;;  %v9978_v2 = vpop.eup %9977  ;;  %v6528_v52 = vsel %vm374_vm1, %v9976_v27, 0.0 }
0x21eb   :  { %v9980_v41 = vpop.eup %9979  ;;  %v6530_v22 = vsel %vm374_vm1, %v9978_v2, 0.0 }
0x21ec   :  { %v6527_v0 = vadd.f32 %v6526_v40, %v6525_v13  ;;  %v9982_v61 = vpop.eup %9981  ;;  %v6532_v56 = vsel %vm374_vm1, %v9980_v41, 0.0  ;;  %v6756_v40 = vstv %s6755_s6 }
0x21ed   :  { %v6534_v55 = vsel %vm374_vm1, %v9982_v61, 0.0  ;;  %vm6666_vm1 = vcmask 130048   ;;  %vm6757_vm14 = vcmp.eq.s32.totalorder %v10792_v8, %v6756_v40 }
0x21ee   :  { %v6529_v35 = vadd.f32 %v6528_v52, %v6527_v0 }
0x21f0   :  { %v6531_v4 = vadd.f32 %v6530_v22, %v6529_v35 }
0x21f2   :  { %v6533_v16 = vadd.f32 %v6532_v56, %v6531_v4 }
0x21f4   :  { %v6535_v19 = vadd.f32 %v6534_v55, %v6533_v16 }
0x21f6   :  { %9983 = vrcp.f32 %v6535_v19 }
0x2200   :  { %v9984_v30 = vpop.eup %9983 }
0x2201   :  { %v6537_v34 = vmul.f32 %v9984_v30, %v9968_v63  ;;  %v6538_v58 = vmul.f32 %v9984_v30, %v9970_v6  ;;  %v6539_v29 = vmul.f32 %v9984_v30, %v9972_v50  ;;  %v6540_v60 = vmul.f32 %v9984_v30, %v9974_v24 }
0x2202   :  { %v6541_v37 = vmul.f32 %v9984_v30, %v9976_v27  ;;  %v6542_v47 = vmul.f32 %v9984_v30, %v9978_v2  ;;  %v6543_v54 = vmul.f32 %v9984_v30, %v9980_v41  ;;  %v6544_v15 = vmul.f32 %v9984_v30, %v9982_v61 }
0x2203   :  { %v6545_v39 = vmul.f32 %v6537_v34, %v12086_v3  ;;  %v6546_v46 = vmul.f32 %v6538_v58, %v12070_v1  ;;  %v6547_v9 = vmul.f32 %v6539_v29, %v12061_v44  ;;  %v6548_v48 = vmul.f32 %v6540_v60, %v12059_v36 }
0x2204   :  { %v6549_v7 = vmul.f32 %v6541_v37, %v12074_v12  ;;  %v6550_v3 = vmul.f32 %v6542_v47, %v12066_v45  ;;  %v6551_v32 = vmul.f32 %v6543_v54, %v12078_v59  ;;  %v6552_v14 = vmul.f32 %v6544_v15, %v12088_v25 }
0x2205   :  { %v6553_v51 = vsel %vm6457_vm12, %v6545_v39, 0.0  ;;  %v6554_v53 = vsel %vm6457_vm12, %v6546_v46, 0.0  ;;  %v6556_v17 = vsel %vm6457_vm12, %v6547_v9, 0.0  ;;  %v6558_v1 = vsel %vm6457_vm12, %v6548_v48, 0.0 }
0x2206   :  { %v6555_v62 = vadd.f32 %v6554_v53, %v6553_v51  ;;  %v6560_v36 = vsel %vm6457_vm12, %v6549_v7, 0.0  ;;  %v6562_v11 = vsel %vm6457_vm12, %v6550_v3, 0.0  ;;  %v6564_v12 = vsel %vm6457_vm12, %v6551_v32, 0.0 }
0x2207   :  { %v6566_v33 = vsel %vm6457_vm12, %v6552_v14, 0.0  ;;  %v6773_v2 = vstv %s6975_s26 }
0x2208   :  { %v6557_v18 = vadd.f32 %v6556_v17, %v6555_v62  ;;  %vm6774_vm15 = vcmp.eq.s32.totalorder %v10792_v8, %v6773_v2 }
0x220a   :  { %v6559_v44 = vadd.f32 %v6558_v1, %v6557_v18 }
0x220c   :  { %v6561_v10 = vadd.f32 %v6560_v36, %v6559_v44 }
0x220e   :  { %v6563_v49 = vadd.f32 %v6562_v11, %v6561_v10 }
0x2210   :  { %v6565_v31 = vadd.f32 %v6564_v12, %v6563_v49 }
0x2212   :  { %v6567_v21 = vadd.f32 %v6566_v33, %v6565_v31 }
0x2214   :  { %v6568_v45 = vmax.f32 %v6567_v21, 0.0 }
0x2216   :  { %8817 = vmatmul.mubr.msk.f32.vlgmr.msra.gmra.mrb[70].mxu0 %vm705_vm3, %v6568_v45 }
0x22e9   :  { %v6653_v28 = vpop.f32.mrb[70].mxu0 }
0x22ea   :  { %v6654_v59 = vadd.f32 %v6971_v57, %v6653_v28  ;;  %v8818_v43 = vpop.f32.mrb[71].mxu0 }
0x22ec   :  { %8824 = vmatmul.mubr.msk.f32.vlgmr.msra.gmra.mrb[76].mxu1 %vm6666_vm1, %v6654_v59 }
0x23bf   :  { %v6736_v25 = vpop.f32.mrb[76].mxu1 }
0x23c0   :  { %v6737_v23 = vadd.f32 %v6973_v5, %v6736_v25  ;;  %v8825_v63 = vpop.f32.mrb[77].mxu1 }
0x23c2   :  { %v6742_v6 = vsel %vm6740_vm13, %v6737_v23, -inf  ;;  %6741 = vst.msk [vmem:[%s12199_s22] sm:$0x3] %vm6740_vm13, %v6737_v23 }
0x23c3   :  { %6743 = vmax.xlane.f32.xlu1 %v6742_v6 }
0x2450   :  { %v6744_v38 = vpop.xlane.xlu1 %6743 }
0x2451   :  { %v6745_v50 = vsub.f32 %v6737_v23, %v6744_v38 }
0x2453   :  { %v6746_v20 = vmul.f32 1.442695, %v6745_v50 }
0x2455   :  { %9985 = vpow2.f32 %v6746_v20 }
0x245f   :  { %v9986_v24 = vpop.eup %9985 }
0x2460   :  { %v6748_v26 = vsel %vm6740_vm13, %v9986_v24, 0.0 }
0x2461   :  { %6749 = vadd.xlane.f32.xlu0 %v6748_v26 }
0x24ee   :  { %v6750_v42 = vpop.xlane.xlu0 %6749 }
0x24ef   :  { %9987 = vlog2.f32 %v6750_v42 }
0x24f9   :  { %v9988_v27 = vpop.eup %9987 }
0x24fa   :  { %v6752_v13 = vmul.f32 0.6931472, %v9988_v27 }
0x24fc   :  { %v6753_v0 = vadd.f32 %v6752_v13, %v6744_v38 }
0x24fe   :  { %v6754_v52 = vsub.f32 %v6737_v23, %v6753_v0 }
0x2500   :  { %v6758_v41 = vsel %vm6757_vm14, %v6754_v52, 0.0  ;;  %v6775_v35 = vsel %vm6774_vm15, %v6754_v52, 0.0 }
0x2501   :  { %v6760_v22 = vsel %vm6759_vm0, %v6758_v41, 0.0  ;;  %v6777_v61 = vrot.slane %v6775_v35, 1 }
0x2502   :  { %6761 = vadd.xlane.f32.xlu1 %v6760_v22 }
0x2503   :  { %v6779_v4 = vsel %vm6759_vm0, %v6777_v61, 0.0 }
0x2504   :  { %6780 = vadd.xlane.f32.xlu0 %v6779_v4 }
0x258f   :  { %v6762_v56 = vpop.xlane.xlu1 %6761 }
0x2590   :  { %v6763_v16 = vrot.slane %v6762_v56, 4 }
0x2591   :  { %v6781_v55 = vpop.xlane.xlu0 %6780 }
0x2592   :  { %v6764_v19 = vadd.f32 %v6763_v16, %v6762_v56  ;;  %v6782_v30 = vrot.slane %v6781_v55, 4 }
0x2594   :  { %v6765_v34 = vrot.slane %v6764_v19, 2  ;;  %v6783_v58 = vadd.f32 %v6782_v30, %v6781_v55 }
0x2596   :  { %v6784_v29 = vrot.slane %v6783_v58, 2  ;;  %v6766_v60 = vadd.f32 %v6765_v34, %v6764_v19 }
0x2598   :  { %v6785_v37 = vadd.f32 %v6784_v29, %v6783_v58  ;;  %v6767_v8 = vrot.slane %v6766_v60, 1 }
0x259a   :  { %v6768_v39 = vadd.f32 %v6767_v8, %v6766_v60  ;;  %v6786_v46 = vrot.slane %v6785_v37, 1 }
0x259c   :  { %9665 = vpush %v6768_v39  ;;  %v6787_v9 = vadd.f32 %v6786_v46, %v6785_v37 }
0x259e   :  { %9667 = vpush %v6787_v9 }
0x25cd   :  { %s9666_s22 = spop %9665 }
0x25ce   :  { %s6770_s3 = ssub.f32 0.0, %s9666_s22 }
0x25cf   :  { %s9668_s27 = spop %9667 }
0x25d0   :  { %s6789_s8 = ssub.f32 0.0, %s9668_s27 }
0x25d2   :  { %s6790_s4 = sadd.f32 %s6789_s8, %s6770_s3 }
0x25d4   :  { %s6793_s10 = smul.f32 0.5, %s6790_s4 }
0x25d6   :  { %v6794_v47 = vstv %s6793_s10 }
0x25d7   :  { %6796 = vst.msk [vmem:[#allocation32] sm:$0x1] %vm6795_vm2, %v6794_v47 }
0x25d8   :  { %10352 = shalt.err (!%p10349_p6)
}
0x25d9   :  { %s12226_s21 = sld [smem:[#allocation52_spill]] }
0x25df   :  { %s10353_s25 = scalar_lea.hbm %s12226_s21, 16 }
0x25e0   :  { %p10354_p7 = scmp.ne.s32.totalorder %s12226_s21, %s10353_s25  ;;  %p10357_p8 = scmp.lt.u32.totalorder %s10353_s25, %s12226_s21 }
0x25e2   :  { %p10359_p9 = pnand %p10357_p8, %p10354_p7 }
0x25e4   :  { %10362 = shalt.err (!%p10359_p9)
}
0x25e5   :  { %6808 = dma.vmem_to_hbm [thread:$0]  %s6806_s14, 16, %s12226_s21, [#allocation6]  }
0x25e6   :  { %10383 = dma.done.wait [#allocation6], 16  }
0x25e7   :  { %10384 = vsyncadd [#allocation6], 4294967280 }
0x25e8   :  { %6814 = vsyncpa [#allocation5], 1 }
0x25e9   :  { %6815 = vsyncpa [#allocation12], 1 }
0x25ea   :  { %6816 = vsyncpa [#allocation15], 1 }
0x25eb   :  { %6817 = vsyncpa [#allocation18], 1 }
0x25ec   :  { %6818 = vsyncpa [#allocation21], 1 }
0x25ed   :  { %6819 = vsyncpa [#allocation24], 1 }
0x25ee   :  { %6820 = vsyncpa [#allocation27], 1 }
0x25ef   :  { %6821 = vsyncpa [#allocation30], 1 }
0x25f0   :  { %6822 = vsyncpa [#allocation6], 1 }
0x25f1   :  { %6823 = vsyncpa [#allocation7], 1 }
0x25f2   :  { %6824 = vsyncpa [#allocation8], 1 }

</bundles_post_ra>
